<compile_context>
chip_gen: v7x
topology: tpu7x:2x2x1
jax: 0.10.0
libtpu: 0.0.40
codegen_flags: <defaults>
</compile_context>

<pallas_src>
import functools

import jax
import jax.numpy as jnp
from jax import lax
from jax.experimental import pallas as pl
from jax.experimental.pallas import tpu as pltpu


def _round_up(x, m):
    return ((x + m - 1) // m) * m


def _double_conv_kernel(x_ref, w1_ref, b1_ref, w2_ref, b2_ref, o_ref, a1pad_ref,
                        *, conv1_packed):
    # conv1_packed=True :
    #   x_ref  : (1, H, W, K1p)      bf16, 9-tap-packed im2col input (K1p = round_up(9*Cin,128))
    #   w1_ref : (K1p, Cp)           bf16
    # conv1_packed=False (Cin >= 128):
    #   x_ref  : (1, H+2, W+2, Cin_p) bf16, spatially zero-padded input
    #   w1_ref : (9, Cin_p, Cp)      bf16, one (Cin_p, Cp) slab per (kh,kw) tap
    # b1_ref   : (1, Cp)  f32 folded bias (= b*s + t)
    # w2_ref   : (9, Cp, Cp) bf16
    # b2_ref   : (1, Cp)  f32
    # o_ref    : (1, H, W, Cp) bf16 output block (lane-dense, Cp % 128 == 0)
    # a1pad_ref: (H+2, W+2, Cp) bf16 scratch, spatially padded first activation
    _, H, W, Cp = o_ref.shape
    HW = H * W

    # ---- conv1 ----
    if conv1_packed:
        # Single matmul, K already packed (9*Cin -> 128) in the wrapper.
        k1 = x_ref.shape[-1]
        patches1 = x_ref[0].reshape(HW, k1)
        acc1 = jnp.dot(patches1, w1_ref[...], preferred_element_type=jnp.float32)
    else:
        # Per-tap dot accumulation: no (HW, 9*Cin_p) im2col materialization.
        cin_p = x_ref.shape[-1]
        acc1 = jnp.zeros((HW, Cp), jnp.float32)
        t = 0
        for kh in range(3):
            for kw in range(3):
                tap = x_ref[0, kh:kh + H, kw:kw + W, :].reshape(HW, cin_p)
                acc1 = acc1 + jnp.dot(tap, w1_ref[t], preferred_element_type=jnp.float32)
                t += 1
    a1 = jnp.maximum(acc1 + b1_ref[...], 0.0)                    # folded bias+BN, ReLU (f32)

    # ---- stage a1 into the padded VMEM scratch for conv2 ----
    # Zero only the 1-element border, every step (interior fully overwritten each step;
    # do NOT hoist this under program_id==0 — unsafe with a "parallel" grid axis on megacore).
    a1pad_ref[0:1, :, :] = jnp.zeros((1, W + 2, Cp), a1pad_ref.dtype)
    a1pad_ref[H + 1:H + 2, :, :] = jnp.zeros((1, W + 2, Cp), a1pad_ref.dtype)
    a1pad_ref[:, 0:1, :] = jnp.zeros((H + 2, 1, Cp), a1pad_ref.dtype)
    a1pad_ref[:, W + 1:W + 2, :] = jnp.zeros((H + 2, 1, Cp), a1pad_ref.dtype)
    a1pad_ref[1:1 + H, 1:1 + W, :] = a1.reshape(H, W, Cp).astype(a1pad_ref.dtype)

    # ---- conv2: per-tap dot accumulation (K = Cp per tap) ----
    acc2 = jnp.zeros((HW, Cp), jnp.float32)
    t = 0
    for kh in range(3):
        for kw in range(3):
            tap = a1pad_ref[kh:kh + H, kw:kw + W, :].reshape(HW, Cp)
            acc2 = acc2 + jnp.dot(tap, w2_ref[t], preferred_element_type=jnp.float32)
            t += 1
    a2 = jnp.maximum(acc2 + b2_ref[...], 0.0)                    # folded bias+BN, ReLU (f32)

    o_ref[0] = a2.reshape(H, W, Cp).astype(o_ref.dtype)          # bf16 output


def double_conv_forward(x_nchw, packed, out_layout="NCHW"):
    """x_nchw: (B, Cin, H, W) float32.
    Returns (B, Cout, H, W) bf16 if out_layout=="NCHW", else (B, H, W, Cout) bf16 for chaining."""
    w1f, b1f, w2f, b2f = packed["w1"], packed["b1"], packed["w2"], packed["b2"]
    cout_p, out_ch = packed["cout_p"], packed["out_ch"]
    conv1_packed = packed["conv1_packed"]
    B, Cin, H, W = x_nchw.shape

    # Cast to bf16 FIRST (halves the transpose/pad intermediates), then NCHW -> NHWC.
    x = jnp.transpose(x_nchw.astype(jnp.bfloat16), (0, 2, 3, 1))

    if conv1_packed:
        # Small-channel path: pack the 9 taps along channels in the wrapper -> conv1 K = 9*Cin -> 128.
        k1p = packed["k1p"]
        xp = jnp.pad(x, ((0, 0), (1, 1), (1, 1), (0, 0)))
        patches = jnp.concatenate(
            [xp[:, kh:kh + H, kw:kw + W, :] for kh in range(3) for kw in range(3)], axis=-1)
        x_in = jnp.pad(patches, ((0, 0), (0, 0), (0, 0), (0, k1p - 9 * Cin)))
        x_spec = pl.BlockSpec((1, H, W, k1p), lambda b: (b, 0, 0, 0))
        w1_spec = pl.BlockSpec((k1p, cout_p), lambda b: (0, 0))
        conv1_flops = 2 * B * H * W * k1p * cout_p
        x_bytes = B * H * W * k1p * 2
        w1_bytes = k1p * cout_p * 2
    else:
        # General path (Cin >= 128): spatial halo + channel pad, per-tap dots in the kernel.
        cin_p = packed["cin_p"]
        x_in = jnp.pad(x, ((0, 0), (1, 1), (1, 1), (0, cin_p - Cin)))
        x_spec = pl.BlockSpec((1, H + 2, W + 2, cin_p), lambda b: (b, 0, 0, 0))
        w1_spec = pl.BlockSpec((9, cin_p, cout_p), lambda b: (0, 0, 0))
        conv1_flops = 2 * B * H * W * 9 * cin_p * cout_p
        x_bytes = B * (H + 2) * (W + 2) * cin_p * 2
        w1_bytes = 9 * cin_p * cout_p * 2

    flops = conv1_flops + 2 * B * H * W * 9 * cout_p * cout_p
    bytes_accessed = (x_bytes + w1_bytes
                      + 9 * cout_p * cout_p * 2          # w2 (bf16)
                      + 2 * cout_p * 4                   # biases (f32)
                      + B * H * W * cout_p * 2)          # bf16 output

    out_nhwc = pl.pallas_call(
        functools.partial(_double_conv_kernel, conv1_packed=conv1_packed),
        out_shape=jax.ShapeDtypeStruct((B, H, W, cout_p), jnp.bfloat16),
        grid_spec=pltpu.PrefetchScalarGridSpec(
            num_scalar_prefetch=0,
            grid=(B,),
            in_specs=[
                x_spec,
                w1_spec,
                pl.BlockSpec((1, cout_p), lambda b: (0, 0)),
                pl.BlockSpec((9, cout_p, cout_p), lambda b: (0, 0, 0)),
                pl.BlockSpec((1, cout_p), lambda b: (0, 0)),
            ],
            out_specs=pl.BlockSpec((1, H, W, cout_p), lambda b: (b, 0, 0, 0)),
            scratch_shapes=[pltpu.VMEM((H + 2, W + 2, cout_p), jnp.bfloat16)],
        ),
        compiler_params=pltpu.CompilerParams(
            dimension_semantics=("parallel",),
            vmem_limit_bytes=32 * 1024 * 1024,
        ),
        cost_estimate=pl.CostEstimate(
            flops=flops, transcendentals=0, bytes_accessed=bytes_accessed),
    )(x_in, w1f, b1f, w2f, b2f)

    out_nhwc = out_nhwc[..., :out_ch]
    if out_layout == "NHWC":
        return out_nhwc                                   # bf16 NHWC, for chained blocks
    return jnp.transpose(out_nhwc, (0, 3, 1, 2))          # bf16 NCHW (PyTorch layout)


def _fold_conv_bn(w_oihw, b, gamma, beta, mean, var, eps=1e-5):
    """Fold conv bias + eval-mode BN into the weight and one bias. Returns f32
    (KH, KW, Cin, Cout) weight and (Cout,) bias (pre-padding / pre-bf16)."""
    s = gamma / jnp.sqrt(var + eps)                       # (cout,)
    t = beta - mean * s
    w = jnp.transpose(w_oihw, (2, 3, 1, 0)) * s[None, None, None, :]
    return w, b * s + t


def make_params(key, in_ch, out_ch):
    """Deterministic params mirroring nn.Conv2d / nn.BatchNorm2d (eval-mode running stats),
    returned already folded/packed for the kernel (plus f32 copies for the reference)."""
    ks = jax.random.split(key, 6)

    # Conv1 + BN1 (gamma/beta random, running_mean=0, running_var=1)
    w1 = jax.random.normal(ks[0], (out_ch, in_ch, 3, 3), jnp.float32) * 0.1
    b1 = jax.random.normal(ks[1], (out_ch,), jnp.float32) * 0.1
    g1 = 1.0 + 0.1 * jax.random.normal(ks[2], (out_ch,), jnp.float32)
    be1 = 0.1 * jax.random.normal(ks[3], (out_ch,), jnp.float32)
    m1 = jnp.zeros((out_ch,), jnp.float32)
    v1 = jnp.ones((out_ch,), jnp.float32)

    # Conv2 + BN2 (default gamma=1, beta=0, running stats 0/1)
    w2 = jax.random.normal(ks[4], (out_ch, out_ch, 3, 3), jnp.float32) * 0.1
    b2 = jax.random.normal(ks[5], (out_ch,), jnp.float32) * 0.1
    g2 = jnp.ones((out_ch,), jnp.float32)
    be2 = jnp.zeros((out_ch,), jnp.float32)
    m2 = jnp.zeros((out_ch,), jnp.float32)
    v2 = jnp.ones((out_ch,), jnp.float32)

    w1hw, bias1 = _fold_conv_bn(w1, b1, g1, be1, m1, v1)      # (3,3,in,out), (out,)
    w2hw, bias2 = _fold_conv_bn(w2, b2, g2, be2, m2, v2)      # (3,3,out,out), (out,)

    cout_p = _round_up(out_ch, 128)
    conv1_packed = in_ch < 128                                 # gate: 9*Cin K-packing only for narrow layers
    packed = {"cout_p": cout_p, "out_ch": out_ch, "conv1_packed": conv1_packed}

    if conv1_packed:
        k1p = _round_up(9 * in_ch, 128)
        w1f = jnp.pad(w1hw.reshape(9 * in_ch, out_ch),
                      ((0, k1p - 9 * in_ch), (0, cout_p - out_ch))).astype(jnp.bfloat16)
        packed["k1p"] = k1p
    else:
        cin_p = _round_up(in_ch, 128)
        w1f = jnp.pad(w1hw, ((0, 0), (0, 0), (0, cin_p - in_ch), (0, cout_p - out_ch)))
        w1f = w1f.reshape(9, cin_p, cout_p).astype(jnp.bfloat16)
        packed["cin_p"] = cin_p

    w2f = jnp.pad(w2hw, ((0, 0), (0, 0), (0, cout_p - out_ch), (0, cout_p - out_ch)))
    w2f = w2f.reshape(9, cout_p, cout_p).astype(jnp.bfloat16)

    packed["w1"] = w1f
    packed["w2"] = w2f
    packed["b1"] = jnp.pad(bias1, (0, cout_p - out_ch)).reshape(1, cout_p).astype(jnp.float32)
    packed["b2"] = jnp.pad(bias2, (0, cout_p - out_ch)).reshape(1, cout_p).astype(jnp.float32)
    # f32 folded params for the pure-XLA reference (BN folding is exact algebra in eval mode).
    packed["ref"] = {"w1": w1hw, "b1": bias1, "w2": w2hw, "b2": bias2}
    return packed


def _reference_double_conv(x_nchw, ref):
    """f32 XLA reference of conv->BN->ReLU x2 (BN already folded exactly into w/b)."""
    x = jnp.transpose(x_nchw, (0, 2, 3, 1))
    dn1 = lax.conv_dimension_numbers(x.shape, ref["w1"].shape, ("NHWC", "HWIO", "NHWC"))
    y = lax.conv_general_dilated(x, ref["w1"], (1, 1), "SAME", dimension_numbers=dn1)
    y = jnp.maximum(y + ref["b1"], 0.0)
    dn2 = lax.conv_dimension_numbers(y.shape, ref["w2"].shape, ("NHWC", "HWIO", "NHWC"))
    y = lax.conv_general_dilated(y, ref["w2"], (1, 1), "SAME", dimension_numbers=dn2)
    y = jnp.maximum(y + ref["b2"], 0.0)
    return jnp.transpose(y, (0, 3, 1, 2))


if __name__ == "__main__":
    B, Cin, H, W = 2, 4, 16, 16
    Cout = 8

    key = jax.random.PRNGKey(0)
    kx, kp = jax.random.split(key)
    x = jax.random.normal(kx, (B, Cin, H, W), jnp.float32)
    packed = make_params(kp, Cin, Cout)

    out = double_conv_forward(x, packed)          # (B, Cout, H, W) bf16
    out = jax.block_until_ready(out)
    assert out.shape == (B, Cout, H, W)

    # Loose tolerance: bf16 weights/activations vs f32 reference (accepted policy).
    ref = _reference_double_conv(x, packed["ref"])
    err = float(jnp.max(jnp.abs(out.astype(jnp.float32) - ref)))
    assert err < 1e-1, f"max abs error vs reference: {err}"
    print("KERNEL_OK")
</pallas_src>

<mosaic_0001>
module attributes {stable_mosaic.version = 11 : i64} {
  func.func @_double_conv_kernel(%arg0: i32, %arg1: memref<1x16x16x128xbf16, #tpu.memory_space<vmem>>, %arg2: memref<128x128xbf16, #tpu.memory_space<vmem>>, %arg3: memref<1x128xf32, #tpu.memory_space<vmem>>, %arg4: memref<9x128x128xbf16, #tpu.memory_space<vmem>>, %arg5: memref<1x128xf32, #tpu.memory_space<vmem>>, %arg6: memref<1x16x16x128xbf16, #tpu.memory_space<vmem>>, %arg7: memref<18x18x128xbf16, #tpu.memory_space<vmem>>) attributes {dimension_semantics = [#tpu.dimension_semantics<parallel>], iteration_bounds = array<i64: 2>, scalar_prefetch = 0 : i64, scratch_operands = 1 : i64, tpu.core_type = #tpu.core_type<tc>, window_params = [{transform_indices = @transform_0, window_bounds = array<i64: 1, 16, 16, 128>}, {pipeline_mode = #tpu.pipeline_mode<synchronous>, transform_indices = @transform_1, window_bounds = array<i64: 128, 128>}, {pipeline_mode = #tpu.pipeline_mode<synchronous>, transform_indices = @transform_2, window_bounds = array<i64: 1, 128>}, {pipeline_mode = #tpu.pipeline_mode<synchronous>, transform_indices = @transform_3, window_bounds = array<i64: 9, 128, 128>}, {pipeline_mode = #tpu.pipeline_mode<synchronous>, transform_indices = @transform_4, window_bounds = array<i64: 1, 128>}, {transform_indices = @transform_5, window_bounds = array<i64: 1, 16, 16, 128>}]} {
    %c0 = arith.constant 0 : index
    %c0_0 = arith.constant 0 : index
    %c0_1 = arith.constant 0 : index
    %c0_2 = arith.constant 0 : index
    %0 = vector.load %arg1[%c0, %c0_0, %c0_1, %c0_2] : memref<1x16x16x128xbf16, #tpu.memory_space<vmem>>, vector<1x16x16x128xbf16>
    %1 = vector.shape_cast %0 : vector<1x16x16x128xbf16> to vector<16x16x128xbf16>
    %2 = vector.shape_cast %1 : vector<16x16x128xbf16> to vector<256x128xbf16>
    %c0_3 = arith.constant 0 : index
    %c0_4 = arith.constant 0 : index
    %3 = vector.load %arg2[%c0_3, %c0_4] : memref<128x128xbf16, #tpu.memory_space<vmem>>, vector<128x128xbf16>
    %cst = arith.constant dense<0.000000e+00> : vector<256x128xf32>
    %4 = tpu.matmul %2, %3, %cst {dimension_numbers = #tpu.dot_dimension_numbers<[1], [0], [0], [1], [0, 0, 1, 1], [], []>} : vector<256x128xbf16>, vector<128x128xbf16>, vector<256x128xf32> -> vector<256x128xf32>
    %c0_5 = arith.constant 0 : index
    %c0_6 = arith.constant 0 : index
    %5 = vector.load %arg3[%c0_5, %c0_6] : memref<1x128xf32, #tpu.memory_space<vmem>>, vector<1x128xf32>
    %6 = vector.broadcast %5 : vector<1x128xf32> to vector<256x128xf32>
    %7 = arith.addf %4, %6 : vector<256x128xf32>
    %cst_7 = arith.constant 0.000000e+00 : f32
    %8 = vector.broadcast %cst_7 : f32 to vector<256x128xf32>
    %9 = arith.maximumf %7, %8 : vector<256x128xf32>
    %cst_8 = arith.constant 0.000000e+00 : bf16
    %10 = vector.broadcast %cst_8 : bf16 to vector<1x18x128xbf16>
    %c0_9 = arith.constant 0 : index
    %c0_10 = arith.constant 0 : index
    %c0_11 = arith.constant 0 : index
    %11 = vector.load %arg7[%c0_9, %c0_10, %c0_11] : memref<18x18x128xbf16, #tpu.memory_space<vmem>>, vector<1x18x128xbf16>
    tpu.vector_store %arg7[%c0_9, %c0_10, %c0_11], %10 {strides = array<i32>} : memref<18x18x128xbf16, #tpu.memory_space<vmem>>, vector<1x18x128xbf16>,
    %cst_12 = arith.constant 0.000000e+00 : bf16
    %12 = vector.broadcast %cst_12 : bf16 to vector<1x18x128xbf16>
    %c17 = arith.constant 17 : index
    %c0_13 = arith.constant 0 : index
    %c0_14 = arith.constant 0 : index
    %13 = vector.load %arg7[%c17, %c0_13, %c0_14] : memref<18x18x128xbf16, #tpu.memory_space<vmem>>, vector<1x18x128xbf16>
    tpu.vector_store %arg7[%c17, %c0_13, %c0_14], %12 {strides = array<i32>} : memref<18x18x128xbf16, #tpu.memory_space<vmem>>, vector<1x18x128xbf16>,
    %cst_15 = arith.constant 0.000000e+00 : bf16
    %14 = vector.broadcast %cst_15 : bf16 to vector<18x1x128xbf16>
    %c0_16 = arith.constant 0 : index
    %c0_17 = arith.constant 0 : index
    %c0_18 = arith.constant 0 : index
    %15 = vector.load %arg7[%c0_16, %c0_17, %c0_18] : memref<18x18x128xbf16, #tpu.memory_space<vmem>>, vector<18x1x128xbf16>
    tpu.vector_store %arg7[%c0_16, %c0_17, %c0_18], %14 {strides = array<i32>} : memref<18x18x128xbf16, #tpu.memory_space<vmem>>, vector<18x1x128xbf16>,
    %cst_19 = arith.constant 0.000000e+00 : bf16
    %16 = vector.broadcast %cst_19 : bf16 to vector<18x1x128xbf16>
    %c0_20 = arith.constant 0 : index
    %c17_21 = arith.constant 17 : index
    %c0_22 = arith.constant 0 : index
    %17 = vector.load %arg7[%c0_20, %c17_21, %c0_22] : memref<18x18x128xbf16, #tpu.memory_space<vmem>>, vector<18x1x128xbf16>
    tpu.vector_store %arg7[%c0_20, %c17_21, %c0_22], %16 {strides = array<i32>} : memref<18x18x128xbf16, #tpu.memory_space<vmem>>, vector<18x1x128xbf16>,
    %18 = vector.shape_cast %9 : vector<256x128xf32> to vector<16x16x128xf32>
    %19 = arith.truncf %18 : vector<16x16x128xf32> to vector<16x16x128xbf16>
    %c1 = arith.constant 1 : index
    %c1_23 = arith.constant 1 : index
    %c0_24 = arith.constant 0 : index
    %20 = vector.load %arg7[%c1, %c1_23, %c0_24] : memref<18x18x128xbf16, #tpu.memory_space<vmem>>, vector<16x16x128xbf16>
    tpu.vector_store %arg7[%c1, %c1_23, %c0_24], %19 {strides = array<i32>} : memref<18x18x128xbf16, #tpu.memory_space<vmem>>, vector<16x16x128xbf16>,
    %cst_25 = arith.constant 0.000000e+00 : f32
    %21 = vector.broadcast %cst_25 : f32 to vector<256x128xf32>
    %c0_26 = arith.constant 0 : index
    %c0_27 = arith.constant 0 : index
    %c0_28 = arith.constant 0 : index
    %22 = vector.load %arg7[%c0_26, %c0_27, %c0_28] : memref<18x18x128xbf16, #tpu.memory_space<vmem>>, vector<16x16x128xbf16>
    %23 = vector.shape_cast %22 : vector<16x16x128xbf16> to vector<256x128xbf16>
    %c0_29 = arith.constant 0 : index
    %c0_30 = arith.constant 0 : index
    %c0_31 = arith.constant 0 : index
    %24 = vector.load %arg4[%c0_29, %c0_30, %c0_31] : memref<9x128x128xbf16, #tpu.memory_space<vmem>>, vector<1x128x128xbf16>
    %25 = vector.shape_cast %24 : vector<1x128x128xbf16> to vector<128x128xbf16>
    %cst_32 = arith.constant dense<0.000000e+00> : vector<256x128xf32>
    %26 = tpu.matmul %23, %25, %cst_32 {dimension_numbers = #tpu.dot_dimension_numbers<[1], [0], [0], [1], [0, 0, 1, 1], [], []>} : vector<256x128xbf16>, vector<128x128xbf16>, vector<256x128xf32> -> vector<256x128xf32>
    %27 = arith.addf %21, %26 : vector<256x128xf32>
    %c0_33 = arith.constant 0 : index
    %c1_34 = arith.constant 1 : index
    %c0_35 = arith.constant 0 : index
    %28 = vector.load %arg7[%c0_33, %c1_34, %c0_35] : memref<18x18x128xbf16, #tpu.memory_space<vmem>>, vector<16x16x128xbf16>
    %29 = vector.shape_cast %28 : vector<16x16x128xbf16> to vector<256x128xbf16>
    %c1_36 = arith.constant 1 : index
    %c0_37 = arith.constant 0 : index
    %c0_38 = arith.constant 0 : index
    %30 = vector.load %arg4[%c1_36, %c0_37, %c0_38] : memref<9x128x128xbf16, #tpu.memory_space<vmem>>, vector<1x128x128xbf16>
    %31 = vector.shape_cast %30 : vector<1x128x128xbf16> to vector<128x128xbf16>
    %cst_39 = arith.constant dense<0.000000e+00> : vector<256x128xf32>
    %32 = tpu.matmul %29, %31, %cst_39 {dimension_numbers = #tpu.dot_dimension_numbers<[1], [0], [0], [1], [0, 0, 1, 1], [], []>} : vector<256x128xbf16>, vector<128x128xbf16>, vector<256x128xf32> -> vector<256x128xf32>
    %33 = arith.addf %27, %32 : vector<256x128xf32>
    %c0_40 = arith.constant 0 : index
    %c2 = arith.constant 2 : index
    %c0_41 = arith.constant 0 : index
    %34 = vector.load %arg7[%c0_40, %c2, %c0_41] : memref<18x18x128xbf16, #tpu.memory_space<vmem>>, vector<16x16x128xbf16>
    %35 = vector.shape_cast %34 : vector<16x16x128xbf16> to vector<256x128xbf16>
    %c2_42 = arith.constant 2 : index
    %c0_43 = arith.constant 0 : index
    %c0_44 = arith.constant 0 : index
    %36 = vector.load %arg4[%c2_42, %c0_43, %c0_44] : memref<9x128x128xbf16, #tpu.memory_space<vmem>>, vector<1x128x128xbf16>
    %37 = vector.shape_cast %36 : vector<1x128x128xbf16> to vector<128x128xbf16>
    %cst_45 = arith.constant dense<0.000000e+00> : vector<256x128xf32>
    %38 = tpu.matmul %35, %37, %cst_45 {dimension_numbers = #tpu.dot_dimension_numbers<[1], [0], [0], [1], [0, 0, 1, 1], [], []>} : vector<256x128xbf16>, vector<128x128xbf16>, vector<256x128xf32> -> vector<256x128xf32>
    %39 = arith.addf %33, %38 : vector<256x128xf32>
    %c1_46 = arith.constant 1 : index
    %c0_47 = arith.constant 0 : index
    %c0_48 = arith.constant 0 : index
    %40 = vector.load %arg7[%c1_46, %c0_47, %c0_48] : memref<18x18x128xbf16, #tpu.memory_space<vmem>>, vector<16x16x128xbf16>
    %41 = vector.shape_cast %40 : vector<16x16x128xbf16> to vector<256x128xbf16>
    %c3 = arith.constant 3 : index
    %c0_49 = arith.constant 0 : index
    %c0_50 = arith.constant 0 : index
    %42 = vector.load %arg4[%c3, %c0_49, %c0_50] : memref<9x128x128xbf16, #tpu.memory_space<vmem>>, vector<1x128x128xbf16>
    %43 = vector.shape_cast %42 : vector<1x128x128xbf16> to vector<128x128xbf16>
    %cst_51 = arith.constant dense<0.000000e+00> : vector<256x128xf32>
    %44 = tpu.matmul %41, %43, %cst_51 {dimension_numbers = #tpu.dot_dimension_numbers<[1], [0], [0], [1], [0, 0, 1, 1], [], []>} : vector<256x128xbf16>, vector<128x128xbf16>, vector<256x128xf32> -> vector<256x128xf32>
    %45 = arith.addf %39, %44 : vector<256x128xf32>
    %c1_52 = arith.constant 1 : index
    %c1_53 = arith.constant 1 : index
    %c0_54 = arith.constant 0 : index
    %46 = vector.load %arg7[%c1_52, %c1_53, %c0_54] : memref<18x18x128xbf16, #tpu.memory_space<vmem>>, vector<16x16x128xbf16>
    %47 = vector.shape_cast %46 : vector<16x16x128xbf16> to vector<256x128xbf16>
    %c4 = arith.constant 4 : index
    %c0_55 = arith.constant 0 : index
    %c0_56 = arith.constant 0 : index
    %48 = vector.load %arg4[%c4, %c0_55, %c0_56] : memref<9x128x128xbf16, #tpu.memory_space<vmem>>, vector<1x128x128xbf16>
    %49 = vector.shape_cast %48 : vector<1x128x128xbf16> to vector<128x128xbf16>
    %cst_57 = arith.constant dense<0.000000e+00> : vector<256x128xf32>
    %50 = tpu.matmul %47, %49, %cst_57 {dimension_numbers = #tpu.dot_dimension_numbers<[1], [0], [0], [1], [0, 0, 1, 1], [], []>} : vector<256x128xbf16>, vector<128x128xbf16>, vector<256x128xf32> -> vector<256x128xf32>
    %51 = arith.addf %45, %50 : vector<256x128xf32>
    %c1_58 = arith.constant 1 : index
    %c2_59 = arith.constant 2 : index
    %c0_60 = arith.constant 0 : index
    %52 = vector.load %arg7[%c1_58, %c2_59, %c0_60] : memref<18x18x128xbf16, #tpu.memory_space<vmem>>, vector<16x16x128xbf16>
    %53 = vector.shape_cast %52 : vector<16x16x128xbf16> to vector<256x128xbf16>
    %c5 = arith.constant 5 : index
    %c0_61 = arith.constant 0 : index
    %c0_62 = arith.constant 0 : index
    %54 = vector.load %arg4[%c5, %c0_61, %c0_62] : memref<9x128x128xbf16, #tpu.memory_space<vmem>>, vector<1x128x128xbf16>
    %55 = vector.shape_cast %54 : vector<1x128x128xbf16> to vector<128x128xbf16>
    %cst_63 = arith.constant dense<0.000000e+00> : vector<256x128xf32>
    %56 = tpu.matmul %53, %55, %cst_63 {dimension_numbers = #tpu.dot_dimension_numbers<[1], [0], [0], [1], [0, 0, 1, 1], [], []>} : vector<256x128xbf16>, vector<128x128xbf16>, vector<256x128xf32> -> vector<256x128xf32>
    %57 = arith.addf %51, %56 : vector<256x128xf32>
    %c2_64 = arith.constant 2 : index
    %c0_65 = arith.constant 0 : index
    %c0_66 = arith.constant 0 : index
    %58 = vector.load %arg7[%c2_64, %c0_65, %c0_66] : memref<18x18x128xbf16, #tpu.memory_space<vmem>>, vector<16x16x128xbf16>
    %59 = vector.shape_cast %58 : vector<16x16x128xbf16> to vector<256x128xbf16>
    %c6 = arith.constant 6 : index
    %c0_67 = arith.constant 0 : index
    %c0_68 = arith.constant 0 : index
    %60 = vector.load %arg4[%c6, %c0_67, %c0_68] : memref<9x128x128xbf16, #tpu.memory_space<vmem>>, vector<1x128x128xbf16>
    %61 = vector.shape_cast %60 : vector<1x128x128xbf16> to vector<128x128xbf16>
    %cst_69 = arith.constant dense<0.000000e+00> : vector<256x128xf32>
    %62 = tpu.matmul %59, %61, %cst_69 {dimension_numbers = #tpu.dot_dimension_numbers<[1], [0], [0], [1], [0, 0, 1, 1], [], []>} : vector<256x128xbf16>, vector<128x128xbf16>, vector<256x128xf32> -> vector<256x128xf32>
    %63 = arith.addf %57, %62 : vector<256x128xf32>
    %c2_70 = arith.constant 2 : index
    %c1_71 = arith.constant 1 : index
    %c0_72 = arith.constant 0 : index
    %64 = vector.load %arg7[%c2_70, %c1_71, %c0_72] : memref<18x18x128xbf16, #tpu.memory_space<vmem>>, vector<16x16x128xbf16>
    %65 = vector.shape_cast %64 : vector<16x16x128xbf16> to vector<256x128xbf16>
    %c7 = arith.constant 7 : index
    %c0_73 = arith.constant 0 : index
    %c0_74 = arith.constant 0 : index
    %66 = vector.load %arg4[%c7, %c0_73, %c0_74] : memref<9x128x128xbf16, #tpu.memory_space<vmem>>, vector<1x128x128xbf16>
    %67 = vector.shape_cast %66 : vector<1x128x128xbf16> to vector<128x128xbf16>
    %cst_75 = arith.constant dense<0.000000e+00> : vector<256x128xf32>
    %68 = tpu.matmul %65, %67, %cst_75 {dimension_numbers = #tpu.dot_dimension_numbers<[1], [0], [0], [1], [0, 0, 1, 1], [], []>} : vector<256x128xbf16>, vector<128x128xbf16>, vector<256x128xf32> -> vector<256x128xf32>
    %69 = arith.addf %63, %68 : vector<256x128xf32>
    %c2_76 = arith.constant 2 : index
    %c2_77 = arith.constant 2 : index
    %c0_78 = arith.constant 0 : index
    %70 = vector.load %arg7[%c2_76, %c2_77, %c0_78] : memref<18x18x128xbf16, #tpu.memory_space<vmem>>, vector<16x16x128xbf16>
    %71 = vector.shape_cast %70 : vector<16x16x128xbf16> to vector<256x128xbf16>
    %c8 = arith.constant 8 : index
    %c0_79 = arith.constant 0 : index
    %c0_80 = arith.constant 0 : index
    %72 = vector.load %arg4[%c8, %c0_79, %c0_80] : memref<9x128x128xbf16, #tpu.memory_space<vmem>>, vector<1x128x128xbf16>
    %73 = vector.shape_cast %72 : vector<1x128x128xbf16> to vector<128x128xbf16>
    %cst_81 = arith.constant dense<0.000000e+00> : vector<256x128xf32>
    %74 = tpu.matmul %71, %73, %cst_81 {dimension_numbers = #tpu.dot_dimension_numbers<[1], [0], [0], [1], [0, 0, 1, 1], [], []>} : vector<256x128xbf16>, vector<128x128xbf16>, vector<256x128xf32> -> vector<256x128xf32>
    %75 = arith.addf %69, %74 : vector<256x128xf32>
    %c0_82 = arith.constant 0 : index
    %c0_83 = arith.constant 0 : index
    %76 = vector.load %arg5[%c0_82, %c0_83] : memref<1x128xf32, #tpu.memory_space<vmem>>, vector<1x128xf32>
    %77 = vector.broadcast %76 : vector<1x128xf32> to vector<256x128xf32>
    %78 = arith.addf %75, %77 : vector<256x128xf32>
    %cst_84 = arith.constant 0.000000e+00 : f32
    %79 = vector.broadcast %cst_84 : f32 to vector<256x128xf32>
    %80 = arith.maximumf %78, %79 : vector<256x128xf32>
    %81 = vector.shape_cast %80 : vector<256x128xf32> to vector<16x16x128xf32>
    %82 = arith.truncf %81 : vector<16x16x128xf32> to vector<16x16x128xbf16>
    %c0_85 = arith.constant 0 : index
    %c0_86 = arith.constant 0 : index
    %c0_87 = arith.constant 0 : index
    %c0_88 = arith.constant 0 : index
    %83 = vector.load %arg6[%c0_85, %c0_86, %c0_87, %c0_88] : memref<1x16x16x128xbf16, #tpu.memory_space<vmem>>, vector<1x16x16x128xbf16>
    %84 = vector.shape_cast %83 : vector<1x16x16x128xbf16> to vector<16x16x128xbf16>
    %85 = vector.shape_cast %82 : vector<16x16x128xbf16> to vector<1x16x16x128xbf16>
    tpu.vector_store %arg6[%c0_85, %c0_86, %c0_87, %c0_88], %85 {strides = array<i32>} : memref<1x16x16x128xbf16, #tpu.memory_space<vmem>>, vector<1x16x16x128xbf16>,
    return
  }
  func.func @transform_0(%arg0: i32) -> (i32, i32, i32, i32) {
    %c0_i32 = arith.constant 0 : i32
    %c0_i32_0 = arith.constant 0 : i32
    %c0_i32_1 = arith.constant 0 : i32
    %c0_i32_2 = arith.constant 0 : i32
    return %arg0, %c0_i32, %c0_i32_0, %c0_i32_1 : i32, i32, i32, i32
  }
  func.func @transform_1(%arg0: i32) -> (i32, i32) {
    %c0_i32 = arith.constant 0 : i32
    %c0_i32_0 = arith.constant 0 : i32
    %c0_i32_1 = arith.constant 0 : i32
    return %c0_i32, %c0_i32_0 : i32, i32
  }
  func.func @transform_2(%arg0: i32) -> (i32, i32) {
    %c0_i32 = arith.constant 0 : i32
    %c0_i32_0 = arith.constant 0 : i32
    %c0_i32_1 = arith.constant 0 : i32
    return %c0_i32, %c0_i32_0 : i32, i32
  }
  func.func @transform_3(%arg0: i32) -> (i32, i32, i32) {
    %c0_i32 = arith.constant 0 : i32
    %c0_i32_0 = arith.constant 0 : i32
    %c0_i32_1 = arith.constant 0 : i32
    %c0_i32_2 = arith.constant 0 : i32
    return %c0_i32, %c0_i32_0, %c0_i32_1 : i32, i32, i32
  }
  func.func @transform_4(%arg0: i32) -> (i32, i32) {
    %c0_i32 = arith.constant 0 : i32
    %c0_i32_0 = arith.constant 0 : i32
    %c0_i32_1 = arith.constant 0 : i32
    return %c0_i32, %c0_i32_0 : i32, i32
  }
  func.func @transform_5(%arg0: i32) -> (i32, i32, i32, i32) {
    %c0_i32 = arith.constant 0 : i32
    %c0_i32_0 = arith.constant 0 : i32
    %c0_i32_1 = arith.constant 0 : i32
    %c0_i32_2 = arith.constant 0 : i32
    return %arg0, %c0_i32, %c0_i32_0, %c0_i32_1 : i32, i32, i32, i32
  }
}

</mosaic_0001>

<bundles_post_ra>
// kernel: tpu_custom_call.1
= control target key start
LH: loop header
LB: loop body
LE: loop exit
PB: predicated region body
PF: predicated region fallthrough
CT: control target
= control target key end

     0   :  { %10 = vsyncpa [#allocation4], 0  ;;  %s10322_s0 = inlined_call_operand.hbm [shape: bf16[2,16,16,128], index: 0, kind: input, shape index: {}]   ;;  %s10323_s1 = inlined_call_operand.hbm [shape: bf16[128,128], index: 1, kind: input, shape index: {}]   ;;  %s10324_s2 = inlined_call_operand.vmem [shape: f32[1,128], index: 2, kind: input, shape index: {}]   ;;  %s10325_s3 = inlined_call_operand.hbm [shape: bf16[9,128,128], index: 3, kind: input, shape index: {}]   ;;  %s10326_s4 = inlined_call_operand.vmem [shape: f32[1,128], index: 4, kind: input, shape index: {}]   ;;  %s10327_s5 = inlined_call_operand.hbm [shape: bf16[2,16,16,128], index: 5, kind: output, shape index: {}]  }
   0x1   :  { %12 = vsyncpa [#allocation4 + $0x1], 0 }
   0x2   :  { %13 = vsyncpa [#allocation7], 0 }
   0x3   :  { %14 = vsyncpa [#allocation5], 0 }
   0x4   :  { %16 = vsyncpa [#allocation5 + $0x1], 0  ;;  %s8444_s18 = smov 0   ;;  %s8446_s19 = smov 0  }
   0x5   :  { %s8448_s20 = smov 0   ;;  %s8450_s21 = smov 0  }
   0x6 LB: > { %s8465_s22 = sadd.s32 4294967295, %s8403_s21   ;;  %s6463_s23 = sadd.s32 4294967294, %s8403_s21   ;;  %s8403_s21 = sphi %s8450_s21, %s10454_s21   ;;  %s8399_s20 = sphi %s8448_s20, %s10453_s20   ;;  %s8395_s19 = sphi %s8446_s19, %s10452_s19   ;;  %s8391_s18 = sphi %s8444_s18, %s10451_s18  }
   0x7   : > { %p42_p0 = scmp.ne.s32.totalorder %s8395_s19, %s8391_s18  ;;  %p10328_p1 = scmp.eq.s32.totalorder %s8465_s22, 0 }
   0x8   : > { %p156_p3 = scmp.eq.s32.totalorder %s6463_s23, 1  ;;  %p6464_p5 = scmp.ge.s32.totalorder %s8403_s21, 1 }
   0x9   : > { %p8474_p4 = por %p10328_p1, %p42_p0  ;;  %p163_p7 = scmp.lt.s32.totalorder %s8403_s21, 3 }
   0xa   : > { %p8479_p6 = por %p156_p3, %p42_p0  ;;  %s8405_s27 = smov [#allocation6]  }
   0xb   : > { %s10356_s24 = scalar_select %p8474_p4, 1, 0 }
   0xc   : > { %s10357_s25 = scalar_select %p8479_p6, 1, 0 }
   0xd   : > { %p8484_p8 = pnand %p6464_p5, %p163_p7  ;;  %s175_s28 = sshll.u32 %s8405_s27, 4  ;;  %s8488_s28 = int_to_ptr.vmem [resolvable:$true] %s175_s28 }
   0xe   : > { %s8406_s30 = smov [#allocation8]   ;;  %s8247_s9 = scalar_lea.hbm %s10323_s1, 1024 }
   0xf   : > { %p7984_p9 = pneg %p8484_p8  ;;  %s191_s6 = sshll.u32 %s8406_s30, 4  ;;  %s8499_s6 = int_to_ptr.vmem [resolvable:$true] %s191_s6 }
  0x10   : > { %p8248_p12 = scmp.ne.s32.totalorder %s10323_s1, %s8247_s9  ;;  %p8254_p5 = scmp.lt.u32.totalorder %s8247_s9, %s10323_s1 }
  0x11   : > { %p8495_p11 = pnand %p7984_p9, %p10328_p1 }
  0x13   : > { %p8249_p13 = pneg %p8495_p11 }
  0x15   : > { %p8250_p0 = pnand %p8249_p13, %p8248_p12 }
  0x17   : > { %p8251_p3 = pneg %p8250_p0 }
  0x19   : > { %p8256_p7 = pnand %p8254_p5, %p8251_p3 }
  0x1b   : > { %8259 = shalt.err (!%p8256_p7)
}
  0x1c   : > { %s8260_s14 = scalar_lea.vmem %s8488_s28, 1024  ;;  %p8268_p2 = scmp.lt.s32.totalorder %s8488_s28, %s8488_s28 }
  0x1d   : > { %p8261_p9 = scmp.ne.s32.totalorder %s8488_s28, %s8260_s14  ;;  %p8269_p12 = scmp.lt.s32.totalorder %s8260_s14, %s8260_s14 }
  0x1f   : > { %p8263_p10 = pnand %p8261_p9, %p8249_p13  ;;  %p8270_p0 = por %p8269_p12, %p8268_p2 }
  0x21   : > { %p8264_p1 = pneg %p8263_p10 }
  0x23   : > { %p8271_p6 = pnand %p8270_p0, %p8264_p1 }
  0x25   : > { %8274 = shalt.err (!%p8271_p6)
}
  0x26   : > { %s8407_s15 = smov 64   ;;  %s8408_s16 = smov 4  }
  0x27   : > { %7987 = dma.hbm_to_vmem [thread:$0]  (!%p8495_p11), %s10323_s1, 1024, %s8488_s28, [#allocation7], %s8407_s15, %s8407_s15, %s8408_s16  }
  0x28   : > { %s8275_s7 = scalar_lea.hbm %s10325_s3, 9216 }
  0x29   : > { %p8276_p1 = scmp.ne.s32.totalorder %s10325_s3, %s8275_s7  ;;  %p8282_p10 = scmp.lt.u32.totalorder %s8275_s7, %s10325_s3 }
  0x2b   : > { %p8278_p2 = pnand %p8276_p1, %p8249_p13 }
  0x2d   : > { %p8279_p6 = pneg %p8278_p2 }
  0x2f   : > { %p8284_p3 = pnand %p8282_p10, %p8279_p6 }
  0x31   : > { %8287 = shalt.err (!%p8284_p3)
}
  0x32   : > { %s8288_s28 = scalar_lea.vmem %s8499_s6, 9216  ;;  %p8296_p12 = scmp.lt.s32.totalorder %s8499_s6, %s8499_s6 }
  0x33   : > { %p8289_p5 = scmp.ne.s32.totalorder %s8499_s6, %s8288_s28  ;;  %p8297_p0 = scmp.lt.s32.totalorder %s8288_s28, %s8288_s28 }
  0x35   : > { %p8291_p7 = pnand %p8289_p5, %p8249_p13  ;;  %p8298_p1 = por %p8297_p0, %p8296_p12 }
  0x37   : > { %p8292_p9 = pneg %p8291_p7 }
  0x39   : > { %p8299_p2 = pnand %p8298_p1, %p8292_p9 }
  0x3b   : > { %8302 = shalt.err (!%p8299_p2)
}
  0x3c   : > { %7990 = dma.hbm_to_vmem [thread:$0]  (!%p8495_p11), %s10325_s3, 9216, %s8499_s6, [#allocation7], %s8407_s15, %s8407_s15, %s8408_s16  }
  0x3d   : > { %s8560_s29 = sadd.s32 1, %s8403_s21   ;;  %s29_s14 = sadd.s32 1, %s8399_s20 }
  0x3e   : > { %s26_s17 = ssub.s32 %s8403_s21, %s8560_s29  ;;  %p36_p13 = scmp.ne.s32.totalorder %s8399_s20, %s8395_s19 }
  0x3f   : > { %p27_p6 = scmp.eq.s32.totalorder %s26_s17, 0  ;;  %p37_p10 = scmp.eq.s32.totalorder %s8403_s21, 0 }
  0x40   : > { %p10360_p3 = scmp.eq.s32.totalorder %s8465_s22, 1  ;;  %p8001_p7 = scmp.lt.s32.totalorder %s8403_s21, 2 }
  0x41   : > { %s8576_s27 = scalar_select %p27_p6, %s8399_s20, %s29_s14  }
  0x42   : > { %p8570_p5 = por %p10360_p3, %p36_p13  ;;  %p38_p9 = por %p37_p10, %p36_p13 }
  0x43   : > { %s208_s30 = sand.u32 1, %s8399_s20   ;;  %s6835_s6 = sshll.u32 %s8403_s21, 11 }
  0x44   : > { %s10361_s23 = scalar_select %p8570_p5, 1, 0 }
  0x45   : > { %s6468_s7 = sshll.u32 %s208_s30, 7  ;;  %s8583_s10 = scalar_lea.hbm %s10322_s0, %s6835_s6 }
  0x46   : > { %s212_s11 = scalar_lea.vmem [#allocation3], %s6468_s7  ;;  %p8587_p11 = pnand %p8001_p7, %p38_p9 }
  0x47   : > { %s219_s28 = sshll.u32 %s212_s11, 4  ;;  %s8591_s13 = scalar_lea.sflag [#allocation4], %s208_s30  ;;  %s8585_s28 = int_to_ptr.vmem [resolvable:$true] %s219_s28 }
  0x48   : > { %s8303_s14 = scalar_lea.hbm %s8583_s10, 2048  ;;  %p8305_p0 = pneg %p8587_p11 }
  0x49   : > { %p8304_p12 = scmp.ne.s32.totalorder %s8583_s10, %s8303_s14  ;;  %s8308_s6 = scalar_lea.hbm %s10322_s0, 4096 }
  0x4a   : > { %p8309_p13 = scmp.lt.u32.totalorder %s8583_s10, %s10322_s0  ;;  %p8310_p6 = scmp.lt.u32.totalorder %s8308_s6, %s8303_s14 }
  0x4b   : > { %p8306_p1 = pnand %p8305_p0, %p8304_p12  ;;  %p8312_p3 = scmp.lt.u32.totalorder %s8303_s14, %s8583_s10 }
  0x4c   : > { %p8311_p10 = por %p8310_p6, %p8309_p13 }
  0x4d   : > { %p8307_p2 = pneg %p8306_p1 }
  0x4e   : > { %p8313_p7 = por %p8312_p3, %p8311_p10 }
  0x50   : > { %p8314_p9 = pnand %p8313_p7, %p8307_p2 }
  0x52   : > { %8317 = shalt.err (!%p8314_p9)
}
  0x53   : > { %s8318_s30 = scalar_lea.vmem %s8585_s28, 2048  ;;  %s8409_s11 = smov [#allocation3]  }
  0x54   : > { %p8319_p12 = scmp.ne.s32.totalorder %s8585_s28, %s8318_s30  ;;  %s8323_s17 = sshll.u32 %s8409_s11, 4  ;;  %s8324_s17 = int_to_ptr.vmem [resolvable:$false] %s8323_s17 }
  0x55   : > { %s8325_s7 = scalar_lea.vmem %s8324_s17, 4096  ;;  %p8326_p4 = scmp.lt.s32.totalorder %s8585_s28, %s8324_s17 }
  0x56   : > { %p8321_p1 = pnand %p8319_p12, %p8305_p0  ;;  %p8327_p13 = scmp.lt.s32.totalorder %s8325_s7, %s8318_s30 }
  0x58   : > { %p8322_p5 = pneg %p8321_p1  ;;  %p8328_p6 = por %p8327_p13, %p8326_p4 }
  0x5a   : > { %p8329_p10 = pnand %p8328_p6, %p8322_p5 }
  0x5c   : > { %8332 = shalt.err (!%p8329_p10)
}
  0x5d   : > { %7994 = dma.hbm_to_vmem [thread:$0]  (!%p8587_p11), %s8583_s10, 2048, %s8585_s28, %s8591_s13, %s8407_s15, %s8407_s15, %s8408_s16  }
  0x5e   : > { %231 = sbr.rel (%p8484_p8) target bundleno = 1068 (0x42c), region = 40 }
  0x65   : > { %s8625_s14 = sand.u32 1, %s8395_s19   ;;  %p10363_p4 = scmp.ne.s32.totalorder %s10356_s24, 0 }
  0x66   : > { %s6472_s6 = sshll.u32 %s8625_s14, 7  ;;  %s234_s8 = scalar_lea.sflag [#allocation4], %s8625_s14 }
  0x67   : > { %s8631_s12 = scalar_lea.vmem [#allocation3], %s6472_s6 }
  0x68   : > { %8378 = dma.done.wait (%p10363_p4), %s234_s8, 2048  }
  0x69   : > { %8380 = vsyncadd (%p10363_p4), %s234_s8, 4294965248  ;;  %p10364_p5 = scmp.eq.s32.totalorder %s8465_s22, 0 }
  0x6b   : > { %8382 = dma.done.wait (%p10364_p5), [#allocation7], 10240   ;;  %p10365_p8 = pmov %p10364_p5 }
  0x6c   : > { %v8044_v0 = vld [vmem:[#allocation6] sm:$0xff]   ;;  %v8045_v1 = vld [vmem:[#allocation6 + $0x8] sm:$0xff]   ;;  %v8046_v2 = vld [vmem:[#allocation6 + $0x10] sm:$0xff]   ;;  %vm672_vm0 = vcmask 1040384   ;;  %vm673_vm1 = vsmask.f32 256 }
  0x6d   : > { %8384 = vsyncadd (%p10365_p8), [#allocation7], 4294957056  ;;  %7236 = vmatprep.subr.bf16.mxu0 %v8044_v0  ;;  %v8047_v3 = vld [vmem:[#allocation6 + $0x18] sm:$0xff]   ;;  %v8052_v4 = vld [vmem:[%s8631_s12] sm:$0xff]   ;;  %v10366_v25 = vmov 0  ;;  %v10369_v29 = vmov 0 }
  0x6e   : > { %7237 = vmatpush3.bf16.msra.mxu0 %v8044_v0  ;;  %7252 = vmatprep.mubr.bf16.mxu0 %v8052_v4  ;;  %v8048_v5 = vld [vmem:[#allocation6 + $0x20] sm:$0xff]   ;;  %v8049_v6 = vld [vmem:[#allocation6 + $0x28] sm:$0xff]   ;;  %v8050_v7 = vld [vmem:[#allocation6 + $0x30] sm:$0xff]   ;;  %vm729_vm3 = vsmask.f32 7938  ;;  %v8410_v44 = vmov 0  }
  0x6f   : > { %7238 = vmatprep.subr.bf16.mxu0 %v8045_v1  ;;  %v8051_v8 = vld [vmem:[#allocation6 + $0x38] sm:$0xff]   ;;  %v8053_v9 = vld [vmem:[%s8631_s12 + $0x8] sm:$0xff]   ;;  %v8054_v10 = vld [vmem:[%s8631_s12 + $0x10] sm:$0xff]   ;;  %665 = vst [vmem:[#allocation2] sm:$0xf] %v8410_v44  ;;  %vm1204_vm8 = vcmask 1043456  }
  0x70   : > { %v8055_v11 = vld [vmem:[%s8631_s12 + $0x18] sm:$0xff]   ;;  %v8056_v12 = vld [vmem:[%s8631_s12 + $0x20] sm:$0xff]   ;;  %v8057_v13 = vld [vmem:[%s8631_s12 + $0x28] sm:$0xff]   ;;  %666 = vst [vmem:[#allocation2 + $0x4] sm:$0xf] %v8410_v44  ;;  %vm2412_vm12 = vcmask 1042432  }
  0x71   : > { %v8058_v14 = vld [vmem:[%s8631_s12 + $0x30] sm:$0xff]   ;;  %v8059_v15 = vld [vmem:[%s8631_s12 + $0x38] sm:$0xff]   ;;  %v8060_v16 = vld [vmem:[%s8631_s12 + $0x40] sm:$0xff]   ;;  %667 = vst [vmem:[#allocation2 + $0x8] sm:$0x1] %v8410_v44  ;;  %vm2413_vm13 = vcmask 1046532  }
  0x72   : > { %7239 = vmatpush3.bf16.msra.mxu0 %v8045_v1  ;;  %v8061_v17 = vld [vmem:[%s8631_s12 + $0x48] sm:$0xff]   ;;  %v8062_v18 = vld [vmem:[%s8631_s12 + $0x50] sm:$0xff]   ;;  %v8063_v19 = vld [vmem:[%s8631_s12 + $0x58] sm:$0xff]   ;;  %669 = vst [vmem:[#allocation2 + $0xcc] sm:$0xf] %v8410_v44  ;;  %s10201_s13 = scalar_lea.vmem [#allocation9], %s6472_s6 }
  0x73   : > { %7240 = vmatprep.subr.bf16.mxu0 %v8046_v2  ;;  %v8064_v20 = vld [vmem:[%s8631_s12 + $0x60] sm:$0xff]   ;;  %v8065_v21 = vld [vmem:[%s8631_s12 + $0x68] sm:$0xff]   ;;  %v8066_v22 = vld [vmem:[%s8631_s12 + $0x70] sm:$0xff]   ;;  %670 = vst [vmem:[#allocation2 + $0xd0] sm:$0xf] %v8410_v44  ;;  %s6900_s9 = sshll.u32 %s8465_s22, 11 }
  0x74   : > { %v8067_v23 = vld [vmem:[%s8631_s12 + $0x78] sm:$0xff]   ;;  %v8068_v24 = vld [vmem:[#allocation8 + $0x40] sm:$0xff]   ;;  %vm8658_vm2 = vmand %vm672_vm0, %vm673_vm1  ;;  %671 = vst [vmem:[#allocation2 + $0xd4] sm:$0x1] %v8410_v44  ;;  %vm1382_vm5 = vsmask.f32 3328  ;;  %s10274_s7 = scalar_lea.hbm %s10327_s5, %s6900_s9 }
  0x75   : > { %v10367_v25 = vsel %vm8658_vm2, 4294967295, %v10366_v25  ;;  %v681_v26 = vld [vmem:[#allocation2 + $0x18] sm:$0x1]  ;;  %vm8665_vm4 = vmand %vm672_vm0, %vm729_vm3  ;;  %v678_v30 = vld [vmem:[#allocation2 + $0xc] sm:$0x1]  ;;  %s6371_s30 = sshll.u32 %s10201_s13, 4  ;;  %s10276_s30 = int_to_ptr.vmem [resolvable:$true] %s6371_s30 }
  0x76   : > { %7241 = vmatpush3.bf16.msra.mxu0 %v8046_v2  ;;  %10368 = vst [vmem:[#allocation13_spill] sm:$0xff] %v10367_v25  ;;  %v8069_v27 = vld [vmem:[#allocation8 + $0x100] sm:$0xff]   ;;  %v682_v28 = vsel %vm8658_vm2, 0, %v681_v26  ;;  %v10370_v29 = vsel %vm8665_vm4, 4294967295, %v10369_v29  ;;  %v679_v31 = vsel %vm8658_vm2, 0, %v678_v30  ;;  %v8070_v35 = vld [vmem:[#allocation8 + $0x48] sm:$0xff]   ;;  %vm8757_vm10 = vmand %vm1204_vm8, %vm729_vm3 }
  0x77   : > { %7242 = vmatprep.subr.bf16.mxu0 %v8047_v3  ;;  %10371 = vst [vmem:[#allocation14_spill] sm:$0xff] %v10370_v29  ;;  %683 = vst [vmem:[#allocation2 + $0x18] sm:$0x1] %v682_v28  ;;  %v737_v32 = vld [vmem:[#allocation2 + $0x20] sm:$0x1]  ;;  %7476 = vmatprep.subr.bf16.mxu1 %v8069_v27  ;;  %v8072_v42 = vld [vmem:[#allocation8 + $0x50] sm:$0xff]  }
  0x78   : > { %680 = vst [vmem:[#allocation2 + $0xc] sm:$0x1] %v679_v31  ;;  %v738_v33 = vsel %vm8665_vm4, 0, %v737_v32  ;;  %v734_v34 = vld [vmem:[#allocation2 + $0x14] sm:$0x1]  ;;  %7477 = vmatpush3.bf16.msra.mxu1 %v8069_v27  ;;  %v8071_v37 = vld [vmem:[#allocation8 + $0x108] sm:$0xff]   ;;  %vm9221_vm14 = vmor %vm2412_vm12, %vm2413_vm13 }
  0x79   : > { %739 = vst [vmem:[#allocation2 + $0x20] sm:$0x1] %v738_v33  ;;  %v735_v36 = vsel %vm8665_vm4, 0, %v734_v34  ;;  %7478 = vmatprep.subr.bf16.mxu1 %v8071_v37  ;;  %v687_v38 = vld [vmem:[#allocation2 + $0x30] sm:$0x1]  ;;  %v8073_v43 = vld [vmem:[#allocation8 + $0x110] sm:$0xff]  }
  0x7a   : > { %7243 = vmatpush3.bf16.msra.mxu0 %v8047_v3  ;;  %736 = vst [vmem:[#allocation2 + $0x14] sm:$0x1] %v735_v36  ;;  %v688_v39 = vsel %vm8658_vm2, 0, %v687_v38  ;;  %v684_v40 = vld [vmem:[#allocation2 + $0x24] sm:$0x1]  ;;  %v8074_v48 = vld [vmem:[#allocation8 + $0x58] sm:$0xff]  }
  0x7b   : > { %7244 = vmatprep.subr.bf16.mxu0 %v8048_v5  ;;  %689 = vst [vmem:[#allocation2 + $0x30] sm:$0x1] %v688_v39  ;;  %v685_v41 = vsel %vm8658_vm2, 0, %v684_v40  ;;  %v743_v45 = vld [vmem:[#allocation2 + $0x38] sm:$0x1]  ;;  %v8075_v50 = vld [vmem:[#allocation8 + $0x118] sm:$0xff]  }
  0x7c   : > { %7479 = vmatpush3.bf16.msra.mxu1 %v8071_v37  ;;  %686 = vst [vmem:[#allocation2 + $0x24] sm:$0x1] %v685_v41  ;;  %v744_v46 = vsel %vm8665_vm4, 0, %v743_v45  ;;  %v740_v47 = vld [vmem:[#allocation2 + $0x2c] sm:$0x1]  ;;  %v8076_v52 = vld [vmem:[#allocation8 + $0x60] sm:$0xff]  }
  0x7d   : > { %7480 = vmatprep.subr.bf16.mxu1 %v8073_v43  ;;  %745 = vst [vmem:[#allocation2 + $0x38] sm:$0x1] %v744_v46  ;;  %v741_v49 = vsel %vm8665_vm4, 0, %v740_v47  ;;  %v693_v51 = vld [vmem:[#allocation2 + $0x48] sm:$0x1]  ;;  %v8077_v56 = vld [vmem:[#allocation8 + $0x120] sm:$0xff]  }
  0x7e   : > { %7245 = vmatpush3.bf16.msra.mxu0 %v8048_v5  ;;  %742 = vst [vmem:[#allocation2 + $0x2c] sm:$0x1] %v741_v49  ;;  %v675_v53 = vld [vmem:[#allocation2] sm:$0x1]  ;;  %v694_v54 = vsel %vm8658_vm2, 0, %v693_v51  ;;  %v8080_v3 = vld [vmem:[#allocation8 + $0x70] sm:$0xff]  }
  0x7f   : > { %7246 = vmatprep.subr.bf16.mxu0 %v8049_v6  ;;  %v690_v55 = vld [vmem:[#allocation2 + $0x3c] sm:$0x1]  ;;  %v676_v57 = vsel %vm8658_vm2, 0, %v675_v53  ;;  %695 = vst [vmem:[#allocation2 + $0x48] sm:$0x1] %v694_v54  ;;  %v8078_v62 = vld [vmem:[#allocation8 + $0x68] sm:$0xff]  }
  0x80   : > { %7481 = vmatpush3.bf16.msra.mxu1 %v8073_v43  ;;  %v691_v58 = vsel %vm8658_vm2, 0, %v690_v55  ;;  %v749_v59 = vld [vmem:[#allocation2 + $0x50] sm:$0x1]  ;;  %677 = vst [vmem:[#allocation2] sm:$0x1] %v676_v57  ;;  %v8079_v0 = vld [vmem:[#allocation8 + $0x128] sm:$0xff]  }
  0x81   : > { %7482 = vmatprep.subr.bf16.mxu1 %v8075_v50  ;;  %692 = vst [vmem:[#allocation2 + $0x3c] sm:$0x1] %v691_v58  ;;  %v750_v60 = vsel %vm8665_vm4, 0, %v749_v59  ;;  %v746_v61 = vld [vmem:[#allocation2 + $0x44] sm:$0x1]  ;;  %v8081_v5 = vld [vmem:[#allocation8 + $0x130] sm:$0xff]  }
  0x82   : > { %7247 = vmatpush3.bf16.msra.mxu0 %v8049_v6  ;;  %751 = vst [vmem:[#allocation2 + $0x50] sm:$0x1] %v750_v60  ;;  %v747_v63 = vsel %vm8665_vm4, 0, %v746_v61  ;;  %v731_v1 = vld [vmem:[#allocation2 + $0x8] sm:$0x1]  ;;  %v10372_v39 = vmov 0 }
  0x83   : > { %7248 = vmatprep.subr.bf16.mxu0 %v8050_v7  ;;  %748 = vst [vmem:[#allocation2 + $0x44] sm:$0x1] %v747_v63  ;;  %v732_v2 = vsel %vm8665_vm4, 0, %v731_v1  ;;  %v699_v4 = vld [vmem:[#allocation2 + $0x60] sm:$0x1]  ;;  %v8720_v46 = vld [vmem:[#allocation8 + $0x140] sm:$0xff]  }
  0x84   : > { %7483 = vmatpush3.bf16.msra.mxu1 %v8075_v50  ;;  %733 = vst [vmem:[#allocation2 + $0x8] sm:$0x1] %v732_v2  ;;  %v700_v6 = vsel %vm8658_vm2, 0, %v699_v4  ;;  %v702_v31 = vld [vmem:[#allocation2 + $0x6c] sm:$0x1]  ;;  %s6358_s22 = scalar_lea.sflag [#allocation5], %s8625_s14 }
  0x85   : > { %7484 = vmatprep.subr.bf16.mxu1 %v8077_v56  ;;  %701 = vst [vmem:[#allocation2 + $0x60] sm:$0x1] %v700_v6  ;;  %vm1383_vm6 = vsmask.f32 7440  ;;  %v703_v32 = vsel %vm8658_vm2, 0, %v702_v31  ;;  %s8333_s6 = scalar_lea.vmem %s10276_s30, 2048 }
  0x86   : > { %7249 = vmatpush3.bf16.msra.mxu0 %v8050_v7  ;;  %v696_v7 = vld [vmem:[#allocation2 + $0x54] sm:$0x1]  ;;  %704 = vst [vmem:[#allocation2 + $0x6c] sm:$0x1] %v703_v32  ;;  %v761_v38 = vld [vmem:[#allocation2 + $0x80] sm:$0x1]  ;;  %vm8708_vm7 = vmor %vm1382_vm5, %vm1383_vm6  ;;  %p8334_p11 = scmp.ne.s32.totalorder %s10276_s30, %s8333_s6 }
  0x87   : > { %7250 = vmatprep.subr.bf16.mxu0 %v8051_v8  ;;  %v10373_v39 = vsel %vm8708_vm7, 4294967295, %v10372_v39  ;;  %v762_v40 = vsel %vm8665_vm4, 0, %v761_v38  ;;  %v758_v43 = vld [vmem:[#allocation2 + $0x74] sm:$0x1]  ;;  %v711_v47 = vld [vmem:[#allocation2 + $0x90] sm:$0x1] }
  0x88   : > { %7485 = vmatpush3.bf16.msra.mxu1 %v8077_v56  ;;  %10374 = vst [vmem:[#allocation15_spill] sm:$0xff] %v10373_v39  ;;  %763 = vst [vmem:[#allocation2 + $0x80] sm:$0x1] %v762_v40  ;;  %v759_v45 = vsel %vm8665_vm4, 0, %v758_v43  ;;  %v708_v49 = vld [vmem:[#allocation2 + $0x84] sm:$0x1] }
  0x89   : > { %7486 = vmatprep.subr.bf16.mxu1 %v8079_v0  ;;  %760 = vst [vmem:[#allocation2 + $0x74] sm:$0x1] %v759_v45  ;;  %v767_v50 = vld [vmem:[#allocation2 + $0x98] sm:$0x1]  ;;  %v709_v51 = vsel %vm8658_vm2, 0, %v708_v49  ;;  %p10448_p0 = scmp.ne.s32.totalorder %s10361_s23, 0 }
  0x8a   : > { %7251 = vmatpush3.bf16.msra.mxu0 %v8051_v8  ;;  %v697_v8 = vsel %vm8658_vm2, 0, %v696_v7  ;;  %v764_v53 = vld [vmem:[#allocation2 + $0x8c] sm:$0x1]  ;;  %710 = vst [vmem:[#allocation2 + $0x84] sm:$0x1] %v709_v51  ;;  %s8411_s8 = smov [#allocation9]  }
  0x8b   : > { %7284 = vmatprep.subr.bf16.mxu0 %v8068_v24  ;;  %698 = vst [vmem:[#allocation2 + $0x54] sm:$0x1] %v697_v8  ;;  %v765_v54 = vsel %vm8665_vm4, 0, %v764_v53  ;;  %v717_v55 = vld [vmem:[#allocation2 + $0xa8] sm:$0x1]  ;;  %p8335_p2 = pnand %p8334_p11, %p10448_p0  ;;  %s8337_s12 = sshll.u32 %s8411_s8, 4  ;;  %s8338_s12 = int_to_ptr.vmem [resolvable:$false] %s8337_s12 }
  0x8c   : > { %7487 = vmatpush3.bf16.msra.mxu1 %v8079_v0  ;;  %766 = vst [vmem:[#allocation2 + $0x8c] sm:$0x1] %v765_v54  ;;  %v718_v56 = vsel %vm8658_vm2, 0, %v717_v55  ;;  %v714_v57 = vld [vmem:[#allocation2 + $0x9c] sm:$0x1]  ;;  %s8339_s24 = scalar_lea.vmem %s8338_s12, 4096  ;;  %p8340_p7 = scmp.lt.s32.totalorder %s10276_s30, %s8338_s12 }
  0x8d   : > { %7253 = vmatmul.mubr.bf16.vlgmr.msra.gmra.mrb[0].mxu0 %v8053_v9  ;;  %v755_v9 = vld [vmem:[#allocation2 + $0x68] sm:$0x1]  ;;  %7488 = vmatprep.subr.bf16.mxu1 %v8081_v5  ;;  %719 = vst [vmem:[#allocation2 + $0xa8] sm:$0x1] %v718_v56  ;;  %v715_v58 = vsel %vm8658_vm2, 0, %v714_v57  ;;  %p8336_p3 = pneg %p8335_p2  ;;  %p8341_p9 = scmp.lt.s32.totalorder %s8339_s24, %s8333_s6 }
  0x8e   : > { %7256 = vmatprep.mubr.bf16.mxu0 %v8054_v10  ;;  %7285 = vmatpush3.bf16.msra.mxu0 %v8068_v24  ;;  %v756_v10 = vsel %vm8665_vm4, 0, %v755_v9  ;;  %v773_v59 = vld [vmem:[#allocation2 + $0xb0] sm:$0x1]  ;;  %716 = vst [vmem:[#allocation2 + $0x9c] sm:$0x1] %v715_v58 }
  0x8f   : > { %7286 = vmatprep.subr.bf16.mxu0 %v8070_v35  ;;  %757 = vst [vmem:[#allocation2 + $0x68] sm:$0x1] %v756_v10  ;;  %v774_v60 = vsel %vm8665_vm4, 0, %v773_v59  ;;  %v770_v61 = vld [vmem:[#allocation2 + $0xa4] sm:$0x1]  ;;  %p8342_p12 = por %p8341_p9, %p8340_p7 }
  0x90   : > { %7489 = vmatpush3.bf16.msra.mxu1 %v8081_v5  ;;  %775 = vst [vmem:[#allocation2 + $0xb0] sm:$0x1] %v774_v60  ;;  %v8742_v63 = vld [vmem:[%s10324_s2] ss:$0 sm:$0xff]  ;;  %vm881_vm9 = vsmask.f32 4368 }
  0x91   : > { %v723_v5 = vld [vmem:[#allocation2 + $0xc0] sm:$0x1]  ;;  %vm8764_vm11 = vmor %vm673_vm1, %vm881_vm9  ;;  %v1210_v58 = vld [vmem:[#allocation2 + $0x14] sm:$0x1]  ;;  %p8343_p1 = pnand %p8342_p12, %p8336_p3 }
  0x92   : > { %7287 = vmatpush3.bf16.msra.mxu0 %v8070_v35  ;;  %v724_v9 = vsel %vm8658_vm2, 0, %v723_v5 }
  0x93   : > { %7288 = vmatprep.subr.bf16.mxu0 %v8072_v42  ;;  %725 = vst [vmem:[#allocation2 + $0xc0] sm:$0x1] %v724_v9 }
  0x95   : > { %7257 = vmatmul.mubr.bf16.gmra.mrb[4].mxu0 %v8055_v11  ;;  %v752_v11 = vld [vmem:[#allocation2 + $0x5c] sm:$0x1] }
  0x96   : > { %7260 = vmatprep.mubr.bf16.mxu0 %v8056_v12  ;;  %7289 = vmatpush3.bf16.msra.mxu0 %v8072_v42  ;;  %v8082_v12 = vld [vmem:[#allocation8 + $0x78] sm:$0xff]  }
  0x97   : > { %7290 = vmatprep.subr.bf16.mxu0 %v8074_v48 }
  0x9a   : > { %7291 = vmatpush3.bf16.msra.mxu0 %v8074_v48  ;;  %v712_v48 = vsel %vm8658_vm2, 0, %v711_v47 }
  0x9b   : > { %7292 = vmatprep.subr.bf16.mxu0 %v8076_v52  ;;  %713 = vst [vmem:[#allocation2 + $0x90] sm:$0x1] %v712_v48 }
  0x9d   : > { %7261 = vmatmul.mubr.bf16.gmra.mrb[8].mxu0 %v8057_v13  ;;  %v1318_v13 = vld [vmem:[#allocation2] sm:$0xf] }
  0x9e   : > { %7264 = vmatprep.mubr.bf16.mxu0 %v8058_v14  ;;  %7293 = vmatpush3.bf16.msra.mxu0 %v8076_v52  ;;  %v753_v14 = vsel %vm8665_vm4, 0, %v752_v11  ;;  %v768_v52 = vsel %vm8665_vm4, 0, %v767_v50 }
  0x9f   : > { %7294 = vmatprep.subr.bf16.mxu0 %v8078_v62  ;;  %754 = vst [vmem:[#allocation2 + $0x5c] sm:$0x1] %v753_v14  ;;  %769 = vst [vmem:[#allocation2 + $0x98] sm:$0x1] %v768_v52  ;;  %v1217_v52 = vld [vmem:[#allocation2 + $0x20] sm:$0x1] }
  0xa2   : > { %7295 = vmatpush3.bf16.msra.mxu0 %v8078_v62  ;;  %v771_v62 = vsel %vm8665_vm4, 0, %v770_v61 }
  0xa3   : > { %7296 = vmatprep.subr.bf16.mxu0 %v8080_v3  ;;  %772 = vst [vmem:[#allocation2 + $0xa4] sm:$0x1] %v771_v62 }
  0xa5   : > { %7265 = vmatmul.mubr.bf16.gmra.mrb[12].mxu0 %v8059_v15  ;;  %v8083_v15 = vld [vmem:[#allocation8 + $0x138] sm:$0xff]  }
  0xa6   : > { %7268 = vmatprep.mubr.bf16.mxu0 %v8060_v16  ;;  %7297 = vmatpush3.bf16.msra.mxu0 %v8080_v3  ;;  %v1319_v16 = vld [vmem:[#allocation2 + $0x4] sm:$0xf] }
  0xa7   : > { %7298 = vmatprep.subr.bf16.mxu0 %v8082_v12  ;;  %7490 = vmatprep.subr.bf16.mxu1 %v8083_v15 }
  0xa8   : > { %7491 = vmatpush3.bf16.msra.mxu1 %v8083_v15 }
  0xa9   : > { %7524 = vmatprep.subr.bf16.mxu1 %v8720_v46 }
  0xaa   : > { %7299 = vmatpush3.bf16.msra.mxu0 %v8082_v12 }
  0xad   : > { %7269 = vmatmul.mubr.bf16.gmra.mrb[16].mxu0 %v8061_v17  ;;  %v1366_v17 = vld [vmem:[#allocation2 + $0x8] sm:$0x1] }
  0xae   : > { %7272 = vmatprep.mubr.bf16.mxu0 %v8062_v18  ;;  %v1386_v18 = vshrl.u32 %v1318_v13, 16 }
  0xb0   : > { %v1388_v24 = vrot.slane %v1386_v18, 4 }
  0xb5   : > { %7273 = vmatmul.mubr.bf16.gmra.mrb[20].mxu0 %v8063_v19  ;;  %v1389_v19 = vshll.u32 %v1318_v13, 16 }
  0xb6   : > { %7276 = vmatprep.mubr.bf16.mxu0 %v8064_v20  ;;  %v1395_v20 = vshll.u32 %v1319_v16, 16 }
  0xb7   : > { %v1391_v26 = vrot.slane %v1389_v19, 5 }
  0xb8   : > { %v1397_v27 = vrot.slane %v1395_v20, 5 }
  0xb9   : > { %v1392_v33 = vor.u32 %v1391_v26, %v1388_v24 }
  0xbb   : > { %v1393_v36 = vrot.slane %v1392_v33, 4 }
  0xbd   : > { %7277 = vmatmul.mubr.bf16.gmra.mrb[24].mxu0 %v8065_v21  ;;  %v1399_v21 = vshrl.u32 %v1319_v16, 16  ;;  %v1398_v41 = vsel %vm8708_vm7, %v1393_v36, %v1397_v27  ;;  %v720_v16 = vld [vmem:[#allocation2 + $0xb4] sm:$0x1] }
  0xbe   : > { %7280 = vmatprep.mubr.bf16.mxu0 %v8066_v22  ;;  %v1405_v22 = vshll.u32 %v1366_v17, 16  ;;  %v721_v20 = vsel %vm8658_vm2, 0, %v720_v16 }
  0xbf   : > { %v1401_v28 = vrot.slane %v1399_v21, 4  ;;  %v779_v21 = vld [vmem:[#allocation2 + $0xc8] sm:$0x1]  ;;  %722 = vst [vmem:[#allocation2 + $0xb4] sm:$0x1] %v721_v20 }
  0xc0   : > { %v1407_v35 = vrot.slane %v1405_v22, 5 }
  0xc1   : > { %v1402_v34 = vor.u32 %v1401_v28, %v1397_v27  ;;  %v780_v27 = vsel %vm8665_vm4, 0, %v779_v21 }
  0xc2   : > { %781 = vst [vmem:[#allocation2 + $0xc8] sm:$0x1] %v780_v27 }
  0xc3   : > { %v1403_v37 = vrot.slane %v1402_v34, 4 }
  0xc5   : > { %7281 = vmatmul.mubr.bf16.gmra.mrb[28].mxu0 %v8067_v23  ;;  %v705_v23 = vld [vmem:[#allocation2 + $0x78] sm:$0x1]  ;;  %v1408_v42 = vsel %vm8708_vm7, %v1403_v37, %v1407_v35 }
  0xc6   : > { %v706_v30 = vsel %vm8658_vm2, 0, %v705_v23  ;;  %v6533_v44 = vcombine.low %v1398_v41, %v1408_v42  ;;  %v1213_v35 = vld [vmem:[#allocation2 + $0x18] sm:$0xf] }
  0xc7   : > { %707 = vst [vmem:[#allocation2 + $0x78] sm:$0x1] %v706_v30 }
  0xc8   : > { %7300 = vmatprep.mubr.bf16.mxu0 %v6533_v44  ;;  %v1206_v44 = vld [vmem:[#allocation2 + $0xc] sm:$0xf] }
 0x160   : > { %v7254_v0 = vpop.f32.mrb[0].mxu0 }
 0x161   : > { %v515_v1 = vadd.f32 %v7254_v0, %v8742_v63  ;;  %v506_v2 = vpop.f32.mrb[1].mxu0 }
 0x162   : > { %v507_v3 = vadd.f32 %v8742_v63, %v506_v2  ;;  %v7255_v4 = vpop.f32.mrb[2].mxu0 }
 0x163   : > { %v635_v6 = vmax.f32 %v515_v1, 0.0  ;;  %v518_v7 = vadd.f32 %v7255_v4, %v8742_v63  ;;  %v509_v8 = vpop.f32.mrb[3].mxu0  ;;  %v776_v4 = vld [vmem:[#allocation2 + $0xbc] sm:$0x1] }
 0x164   : > { %v633_v10 = vmax.f32 %v507_v3, 0.0  ;;  %v510_v11 = vadd.f32 %v8742_v63, %v509_v8  ;;  %v777_v20 = vsel %vm8665_vm4, 0, %v776_v4 }
 0x165   : > { %v6838_v12 = vpack.c.bf16 %v635_v6, %v635_v6  ;;  %v636_v13 = vmax.f32 %v518_v7, 0.0  ;;  %778 = vst [vmem:[#allocation2 + $0xbc] sm:$0x1] %v777_v20 }
 0x166   : > { %v6836_v14 = vpack.c.bf16 %v633_v10, %v633_v10  ;;  %v634_v15 = vmax.f32 %v510_v11, 0.0 }
 0x167   : > { %v901_v17 = vshrl.u32 %v6838_v12, 16  ;;  %v904_v18 = vshll.u32 %v6838_v12, 16  ;;  %v6839_v19 = vpack.c.bf16 %v636_v13, %v636_v13 }
 0x168   : > { %v884_v22 = vshrl.u32 %v6836_v14, 16  ;;  %v887_v23 = vshll.u32 %v6836_v14, 16  ;;  %v6837_v24 = vpack.c.bf16 %v634_v15, %v634_v15  ;;  %v7258_v26 = vpop.f32.mrb[4].mxu0  ;;  %v1227_v15 = vld [vmem:[#allocation2 + $0x30] sm:$0xf] }
 0x169   : > { %v903_v28 = vrot.slane %v901_v17, 7  ;;  %v909_v30 = vshrl.u32 %v6839_v19, 16  ;;  %v912_v31 = vshll.u32 %v6839_v19, 16  ;;  %v531_v32 = vadd.f32 %v7258_v26, %v8742_v63  ;;  %v522_v33 = vpop.f32.mrb[5].mxu0 }
 0x16a   : > { %v886_v36 = vrot.slane %v884_v22, 7  ;;  %v892_v37 = vshrl.u32 %v6837_v24, 16  ;;  %v895_v38 = vshll.u32 %v6837_v24, 16  ;;  %v523_v40 = vadd.f32 %v8742_v63, %v522_v33  ;;  %v7259_v41 = vpop.f32.mrb[6].mxu0 }
 0x16b   : > { %v906_v42 = vor.u32 %v904_v18, %v903_v28  ;;  %v907_v43 = vrot.slane %v903_v28, 4  ;;  %v911_v45 = vrot.slane %v909_v30, 7  ;;  %v639_v47 = vmax.f32 %v531_v32, 0.0  ;;  %v525_v48 = vpop.f32.mrb[7].mxu0 }
 0x16c   : > { %v889_v49 = vor.u32 %v887_v23, %v886_v36  ;;  %v890_v50 = vrot.slane %v886_v36, 4  ;;  %v894_v53 = vrot.slane %v892_v37, 7  ;;  %v637_v54 = vmax.f32 %v523_v40, 0.0  ;;  %v1220_v23 = vld [vmem:[#allocation2 + $0x24] sm:$0xf] }
 0x16d   : > { %v1214_v55 = vsel %vm8757_vm10, %v906_v42, %v1213_v35  ;;  %v914_v56 = vor.u32 %v912_v31, %v911_v45  ;;  %v916_v57 = vrot.slane %v911_v45, 4  ;;  %v6842_v59 = vpack.c.bf16 %v639_v47, %v639_v47 }
 0x16e   : > { %1215 = vst [vmem:[#allocation2 + $0x18] sm:$0xf] %v1214_v55  ;;  %v1207_v60 = vsel %vm8757_vm10, %v889_v49, %v1206_v44  ;;  %v897_v61 = vor.u32 %v895_v38, %v894_v53  ;;  %v899_v62 = vrot.slane %v894_v53, 4  ;;  %v6840_v0 = vpack.c.bf16 %v637_v54, %v637_v54  ;;  %v1224_v49 = vld [vmem:[#allocation2 + $0x2c] sm:$0x1] }
 0x16f   : > { %1208 = vst [vmem:[#allocation2 + $0xc] sm:$0xf] %v1207_v60  ;;  %v915_v1 = vsel %vm8764_vm11, %v907_v43, %v914_v56  ;;  %v1218_v2 = vsel %vm8658_vm2, %v916_v57, %v1217_v52  ;;  %v935_v3 = vshrl.u32 %v6842_v59, 16  ;;  %v938_v7 = vshll.u32 %v6842_v59, 16 }
 0x170   : > { %1216 = vst [vmem:[#allocation2 + $0x1c] sm:$0xf] %v915_v1  ;;  %1219 = vst [vmem:[#allocation2 + $0x20] sm:$0x1] %v1218_v2  ;;  %v898_v5 = vsel %vm8764_vm11, %v890_v50, %v897_v61  ;;  %v1211_v6 = vsel %vm8658_vm2, %v899_v62, %v1210_v58  ;;  %v918_v8 = vshrl.u32 %v6840_v0, 16  ;;  %v7262_v9 = vpop.f32.mrb[8].mxu0  ;;  %v534_v11 = vadd.f32 %v7259_v41, %v8742_v63 }
 0x171   : > { %1209 = vst [vmem:[#allocation2 + $0x10] sm:$0xf] %v898_v5  ;;  %1212 = vst [vmem:[#allocation2 + $0x14] sm:$0x1] %v1211_v6  ;;  %v8780_v10 = vrot.slane %v935_v3, 7  ;;  %v526_v12 = vadd.f32 %v8742_v63, %v525_v48  ;;  %v547_v13 = vadd.f32 %v7262_v9, %v8742_v63  ;;  %v538_v14 = vpop.f32.mrb[9].mxu0 }
 0x172   : > { %v920_v16 = vrot.slane %v918_v8, 7  ;;  %v921_v17 = vshll.u32 %v6840_v0, 16  ;;  %v539_v18 = vadd.f32 %v8742_v63, %v538_v14  ;;  %v7263_v19 = vpop.f32.mrb[10].mxu0  ;;  %v640_v24 = vmax.f32 %v534_v11, 0.0  ;;  %v1231_v48 = vld [vmem:[#allocation2 + $0x38] sm:$0x1] }
 0x173   : > { %v940_v21 = vor.u32 %v938_v7, %v8780_v10  ;;  %v941_v22 = vrot.slane %v8780_v10, 4  ;;  %v638_v26 = vmax.f32 %v526_v12, 0.0  ;;  %v541_v27 = vpop.f32.mrb[11].mxu0  ;;  %v643_v31 = vmax.f32 %v547_v13, 0.0  ;;  %v1241_v62 = vld [vmem:[#allocation2 + $0x48] sm:$0xf] }
 0x174   : > { %v923_v28 = vor.u32 %v921_v17, %v920_v16  ;;  %v924_v30 = vrot.slane %v920_v16, 4  ;;  %v641_v32 = vmax.f32 %v539_v18, 0.0  ;;  %v6843_v35 = vpack.c.bf16 %v640_v24, %v640_v24  ;;  %v1234_v8 = vld [vmem:[#allocation2 + $0x3c] sm:$0xf] }
 0x175   : > { %v1228_v33 = vsel %vm8757_vm10, %v940_v21, %v1227_v15  ;;  %v6841_v36 = vpack.c.bf16 %v638_v26, %v638_v26  ;;  %v550_v37 = vadd.f32 %v7263_v19, %v8742_v63  ;;  %v6846_v40 = vpack.c.bf16 %v643_v31, %v643_v31 }
 0x176   : > { %1229 = vst [vmem:[#allocation2 + $0x30] sm:$0xf] %v1228_v33  ;;  %v1221_v38 = vsel %vm8757_vm10, %v923_v28, %v1220_v23  ;;  %v6844_v41 = vpack.c.bf16 %v641_v32, %v641_v32  ;;  %v542_v42 = vadd.f32 %v8742_v63, %v541_v27  ;;  %v943_v43 = vshrl.u32 %v6843_v35, 16  ;;  %v1245_v33 = vld [vmem:[#allocation2 + $0x50] sm:$0x1] }
 0x177   : > { %1222 = vst [vmem:[#allocation2 + $0x24] sm:$0xf] %v1221_v38  ;;  %v946_v44 = vshll.u32 %v6843_v35, 16  ;;  %v926_v45 = vshrl.u32 %v6841_v36, 16  ;;  %v929_v47 = vshll.u32 %v6841_v36, 16  ;;  %v969_v50 = vshrl.u32 %v6846_v40, 16 }
 0x178   : > { %v972_v52 = vshll.u32 %v6846_v40, 16  ;;  %v952_v53 = vshrl.u32 %v6844_v41, 16  ;;  %v955_v54 = vshll.u32 %v6844_v41, 16  ;;  %v7266_v55 = vpop.f32.mrb[12].mxu0  ;;  %v945_v56 = vrot.slane %v943_v43, 7 }
 0x179   : > { %v928_v57 = vrot.slane %v926_v45, 7  ;;  %v644_v58 = vmax.f32 %v550_v37, 0.0  ;;  %v642_v59 = vmax.f32 %v542_v42, 0.0  ;;  %v554_v60 = vpop.f32.mrb[13].mxu0  ;;  %v8796_v61 = vrot.slane %v969_v50, 7 }
 0x17a   : > { %v8798_v0 = vrot.slane %v952_v53, 7  ;;  %v563_v1 = vadd.f32 %v7266_v55, %v8742_v63  ;;  %v555_v2 = vadd.f32 %v8742_v63, %v554_v60  ;;  %v7267_v3 = vpop.f32.mrb[14].mxu0  ;;  %v948_v4 = vor.u32 %v946_v44, %v945_v56  ;;  %v1238_v35 = vld [vmem:[#allocation2 + $0x44] sm:$0x1] }
 0x17b   : > { %v950_v5 = vrot.slane %v945_v56, 4  ;;  %v931_v6 = vor.u32 %v929_v47, %v928_v57  ;;  %v933_v7 = vrot.slane %v928_v57, 4  ;;  %v557_v9 = vpop.f32.mrb[15].mxu0  ;;  %v974_v10 = vor.u32 %v972_v52, %v8796_v61 }
 0x17c   : > { %v975_v11 = vrot.slane %v8796_v61, 4  ;;  %v957_v12 = vor.u32 %v955_v54, %v8798_v0  ;;  %v958_v13 = vrot.slane %v8798_v0, 4  ;;  %v949_v14 = vsel %vm8764_vm11, %v941_v22, %v948_v4  ;;  %v1255_v4 = vld [vmem:[#allocation2 + $0x60] sm:$0xf] }
 0x17d   : > { %v1232_v15 = vsel %vm8658_vm2, %v950_v5, %v1231_v48  ;;  %v932_v16 = vsel %vm8764_vm11, %v924_v30, %v931_v6  ;;  %v1225_v17 = vsel %vm8658_vm2, %v933_v7, %v1224_v49  ;;  %1230 = vst [vmem:[#allocation2 + $0x34] sm:$0xf] %v949_v14  ;;  %v1242_v18 = vsel %vm8757_vm10, %v974_v10, %v1241_v62  ;;  %v8822_v48 = vld [vmem:[#allocation8] sm:$0xff]   ;;  %v1248_v5 = vld [vmem:[#allocation2 + $0x54] sm:$0xf] }
 0x17e   : > { %1233 = vst [vmem:[#allocation2 + $0x38] sm:$0x1] %v1232_v15  ;;  %1223 = vst [vmem:[#allocation2 + $0x28] sm:$0xf] %v932_v16  ;;  %v1235_v19 = vsel %vm8757_vm10, %v957_v12, %v1234_v8  ;;  %v6847_v20 = vpack.c.bf16 %v644_v58, %v644_v58  ;;  %v6845_v21 = vpack.c.bf16 %v642_v59, %v642_v59  ;;  %v647_v22 = vmax.f32 %v563_v1, 0.0 }
 0x17f   : > { %1226 = vst [vmem:[#allocation2 + $0x2c] sm:$0x1] %v1225_v17  ;;  %1243 = vst [vmem:[#allocation2 + $0x48] sm:$0xf] %v1242_v18  ;;  %v645_v23 = vmax.f32 %v555_v2, 0.0  ;;  %v566_v24 = vadd.f32 %v7267_v3, %v8742_v63  ;;  %v558_v26 = vadd.f32 %v8742_v63, %v557_v9  ;;  %7332 = vmatprep.subr.bf16.mxu0 %v8822_v48 }
 0x180   : > { %1236 = vst [vmem:[#allocation2 + $0x3c] sm:$0xf] %v1235_v19  ;;  %v977_v27 = vshrl.u32 %v6847_v20, 16  ;;  %v980_v28 = vshll.u32 %v6847_v20, 16  ;;  %v960_v30 = vshrl.u32 %v6845_v21, 16  ;;  %v963_v31 = vshll.u32 %v6845_v21, 16 }
 0x181   : > { %v7270_v32 = vpop.f32.mrb[16].mxu0  ;;  %v6850_v36 = vpack.c.bf16 %v647_v22, %v647_v22  ;;  %v6848_v37 = vpack.c.bf16 %v645_v23, %v645_v23  ;;  %v648_v38 = vmax.f32 %v566_v24, 0.0  ;;  %v646_v40 = vmax.f32 %v558_v26, 0.0  ;;  %v1320_v10 = vld [vmem:[#allocation2 + $0xc] sm:$0xf] }
 0x182   : > { %v570_v41 = vpop.f32.mrb[17].mxu0  ;;  %v979_v42 = vrot.slane %v977_v27, 7  ;;  %v962_v43 = vrot.slane %v960_v30, 7  ;;  %v579_v44 = vadd.f32 %v7270_v32, %v8742_v63  ;;  %v1259_v22 = vld [vmem:[#allocation2 + $0x68] sm:$0x1]  ;;  %v1410_v32 = vshrl.u32 %v1320_v10, 16 }
 0x183   : > { %v571_v45 = vadd.f32 %v8742_v63, %v570_v41  ;;  %v7271_v47 = vpop.f32.mrb[18].mxu0  ;;  %v1003_v49 = vshrl.u32 %v6850_v36, 16  ;;  %v1006_v50 = vshll.u32 %v6850_v36, 16  ;;  %v986_v52 = vshrl.u32 %v6848_v37, 16  ;;  %v1321_v41 = vld [vmem:[#allocation2 + $0x10] sm:$0xf] }
 0x184   : > { %v989_v53 = vshll.u32 %v6848_v37, 16  ;;  %v573_v54 = vpop.f32.mrb[19].mxu0  ;;  %v982_v55 = vor.u32 %v980_v28, %v979_v42  ;;  %v984_v56 = vrot.slane %v979_v42, 4  ;;  %v965_v57 = vor.u32 %v963_v31, %v962_v43  ;;  %v1252_v28 = vld [vmem:[#allocation2 + $0x5c] sm:$0x1] }
 0x185   : > { %v967_v58 = vrot.slane %v962_v43, 4  ;;  %v1005_v59 = vrot.slane %v1003_v49, 7  ;;  %v988_v60 = vrot.slane %v986_v52, 7  ;;  %v6851_v61 = vpack.c.bf16 %v648_v38, %v648_v38  ;;  %v8208_v39 = vld [vmem:[#allocation2 + $0x38] sm:$0x1] }
 0x186   : > { %v6849_v62 = vpack.c.bf16 %v646_v40, %v646_v40  ;;  %v983_v0 = vsel %vm8764_vm11, %v975_v11, %v982_v55  ;;  %v1246_v1 = vsel %vm8658_vm2, %v984_v56, %v1245_v33  ;;  %v966_v2 = vsel %vm8764_vm11, %v958_v13, %v965_v57 }
 0x187   : > { %v1239_v3 = vsel %vm8658_vm2, %v967_v58, %v1238_v35  ;;  %1244 = vst [vmem:[#allocation2 + $0x4c] sm:$0xf] %v983_v0  ;;  %1247 = vst [vmem:[#allocation2 + $0x50] sm:$0x1] %v1246_v1  ;;  %v1008_v6 = vor.u32 %v1006_v50, %v1005_v59  ;;  %v1009_v7 = vrot.slane %v1005_v59, 4  ;;  %v991_v8 = vor.u32 %v989_v53, %v988_v60 }
 0x188   : > { %1237 = vst [vmem:[#allocation2 + $0x40] sm:$0xf] %v966_v2  ;;  %1240 = vst [vmem:[#allocation2 + $0x44] sm:$0x1] %v1239_v3  ;;  %v992_v9 = vrot.slane %v988_v60, 4  ;;  %v1011_v11 = vshrl.u32 %v6851_v61, 16  ;;  %v582_v24 = vadd.f32 %v7271_v47, %v8742_v63  ;;  %v574_v26 = vadd.f32 %v8742_v63, %v573_v54 }
 0x189   : > { %v1014_v12 = vshll.u32 %v6851_v61, 16  ;;  %v994_v14 = vshrl.u32 %v6849_v62, 16  ;;  %v997_v15 = vshll.u32 %v6849_v62, 16  ;;  %v8833_v16 = vpop.f32.mrb[20].mxu0  ;;  %v1256_v13 = vsel %vm8757_vm10, %v1008_v6, %v1255_v4  ;;  %v1269_v53 = vld [vmem:[#allocation2 + $0x78] sm:$0xf] }
 0x18a   : > { %v1249_v17 = vsel %vm8757_vm10, %v991_v8, %v1248_v5  ;;  %v651_v18 = vmax.f32 %v579_v44, 0.0  ;;  %v649_v19 = vmax.f32 %v571_v45, 0.0  ;;  %v8839_v20 = vpop.f32.mrb[21].mxu0  ;;  %1257 = vst [vmem:[#allocation2 + $0x60] sm:$0xf] %v1256_v13  ;;  %v1013_v21 = vrot.slane %v1011_v11, 7 }
 0x18b   : > { %1250 = vst [vmem:[#allocation2 + $0x54] sm:$0xf] %v1249_v17  ;;  %v996_v23 = vrot.slane %v994_v14, 7  ;;  %v8843_v27 = vpop.f32.mrb[22].mxu0  ;;  %v1413_v33 = vshll.u32 %v1320_v10, 16  ;;  %v652_v57 = vmax.f32 %v582_v24, 0.0 }
 0x18c   : > { %v6854_v30 = vpack.c.bf16 %v651_v18, %v651_v18  ;;  %v6852_v31 = vpack.c.bf16 %v649_v19, %v649_v19  ;;  %v8845_v35 = vpop.f32.mrb[23].mxu0  ;;  %v1016_v36 = vor.u32 %v1014_v12, %v1013_v21  ;;  %v1018_v37 = vrot.slane %v1013_v21, 4  ;;  %v1262_v54 = vld [vmem:[#allocation2 + $0x6c] sm:$0xf]  ;;  %v1367_v59 = vld [vmem:[#allocation2 + $0x14] sm:$0x1] }
 0x18d   : > { %v999_v38 = vor.u32 %v997_v15, %v996_v23  ;;  %v1001_v40 = vrot.slane %v996_v23, 4  ;;  %v650_v58 = vmax.f32 %v574_v26, 0.0  ;;  %v1412_v60 = vrot.slane %v1410_v32, 4  ;;  %v3235_v11 = vld [vmem:[#allocation2 + $0xc] sm:$0xf] }
 0x18e   : > { %v1037_v42 = vshrl.u32 %v6854_v30, 16  ;;  %v1040_v43 = vshll.u32 %v6854_v30, 16  ;;  %v1020_v44 = vshrl.u32 %v6852_v31, 16  ;;  %v1023_v45 = vshll.u32 %v6852_v31, 16  ;;  %v3236_v18 = vld [vmem:[#allocation2 + $0x10] sm:$0xf] }
 0x18f   : > { %v1017_v47 = vsel %vm8764_vm11, %v1009_v7, %v1016_v36  ;;  %v1260_v49 = vsel %vm8658_vm2, %v1018_v37, %v1259_v22  ;;  %v1000_v50 = vsel %vm8764_vm11, %v992_v9, %v999_v38  ;;  %v1253_v52 = vsel %vm8658_vm2, %v1001_v40, %v1252_v28  ;;  %v1273_v26 = vld [vmem:[#allocation2 + $0x80] sm:$0x1]  ;;  %v1266_v37 = vld [vmem:[#allocation2 + $0x74] sm:$0x1] }
 0x190   : > { %1258 = vst [vmem:[#allocation2 + $0x64] sm:$0xf] %v1017_v47  ;;  %1261 = vst [vmem:[#allocation2 + $0x68] sm:$0x1] %v1260_v49  ;;  %v1039_v55 = vrot.slane %v1037_v42, 7  ;;  %v8855_v56 = vrot.slane %v1020_v44, 7  ;;  %v6855_v7 = vpack.c.bf16 %v652_v57, %v652_v57  ;;  %v6853_v8 = vpack.c.bf16 %v650_v58, %v650_v58 }
 0x191   : > { %1251 = vst [vmem:[#allocation2 + $0x58] sm:$0xf] %v1000_v50  ;;  %1254 = vst [vmem:[#allocation2 + $0x5c] sm:$0x1] %v1253_v52  ;;  %v1415_v61 = vrot.slane %v1413_v33, 5  ;;  %v1419_v62 = vshll.u32 %v1321_v41, 16 }
 0x192   : > { %v1423_v0 = vshrl.u32 %v1321_v41, 16  ;;  %v8857_v1 = vpop.f32.mrb[24].mxu0  ;;  %v1042_v2 = vor.u32 %v1040_v43, %v1039_v55  ;;  %v1043_v3 = vrot.slane %v1039_v55, 4  ;;  %v1025_v4 = vor.u32 %v1023_v45, %v8855_v56  ;;  %v1322_v45 = vld [vmem:[#allocation2 + $0x18] sm:$0xf] }
 0x193   : > { %v1026_v5 = vrot.slane %v8855_v56, 4  ;;  %v8861_v6 = vpop.f32.mrb[25].mxu0  ;;  %v1416_v9 = vor.u32 %v1415_v61, %v1412_v60  ;;  %v1421_v10 = vrot.slane %v1419_v62, 5  ;;  %v1429_v17 = vshll.u32 %v1367_v59, 16  ;;  %v1323_v59 = vld [vmem:[#allocation2 + $0x1c] sm:$0xf] }
 0x194   : > { %v8863_v12 = vpop.f32.mrb[26].mxu0  ;;  %v1270_v14 = vsel %vm8757_vm10, %v1042_v2, %v1269_v53  ;;  %v1263_v15 = vsel %vm8757_vm10, %v1025_v4, %v1262_v54  ;;  %v1425_v13 = vrot.slane %v1423_v0, 4  ;;  %v1045_v21 = vshrl.u32 %v6855_v7, 16  ;;  %v3237_v53 = vld [vmem:[#allocation2 + $0x14] sm:$0x1] }
 0x195   : > { %v8869_v19 = vpop.f32.mrb[27].mxu0  ;;  %1271 = vst [vmem:[#allocation2 + $0x78] sm:$0xf] %v1270_v14  ;;  %1264 = vst [vmem:[#allocation2 + $0x6c] sm:$0xf] %v1263_v15  ;;  %v1048_v22 = vshll.u32 %v6855_v7, 16 }
 0x196   : > { %v1028_v23 = vshrl.u32 %v6853_v8, 16  ;;  %v1031_v24 = vshll.u32 %v6853_v8, 16  ;;  %v1417_v28 = vrot.slane %v1416_v9, 4  ;;  %v1426_v30 = vor.u32 %v1425_v13, %v1421_v10  ;;  %v8090_v14 = vld [vmem:[#allocation8 + $0x8] sm:$0xff]  }
 0x197   : > { %v1431_v31 = vrot.slane %v1429_v17, 5  ;;  %v3284_v32 = vshrl.u32 %v3235_v11, 16  ;;  %v1047_v33 = vrot.slane %v1045_v21, 7  ;;  %v3287_v38 = vshll.u32 %v3235_v11, 16  ;;  %v3238_v17 = vld [vmem:[#allocation2 + $0x18] sm:$0xf] }
 0x198   : > { %v1030_v36 = vrot.slane %v1028_v23, 7  ;;  %v3293_v40 = vshll.u32 %v3236_v18, 16  ;;  %v1422_v41 = vsel %vm8708_vm7, %v1417_v28, %v1421_v10  ;;  %v1427_v42 = vrot.slane %v1426_v30, 4  ;;  %v8873_v54 = vpop.f32.mrb[28].mxu0  ;;  %v9260_v25 = vld [vmem:[#allocation2 + $0x40] sm:$0xf] }
 0x199   : > { %v3286_v43 = vrot.slane %v3284_v32, 4  ;;  %v3297_v44 = vshrl.u32 %v3236_v18, 16  ;;  %v1050_v47 = vor.u32 %v1048_v22, %v1047_v33  ;;  %v1052_v49 = vrot.slane %v1047_v33, 4  ;;  %v8877_v60 = vpop.f32.mrb[29].mxu0  ;;  %10385 = vst [vmem:[#allocation20_spill] sm:$0xff] %v9260_v25 }
 0x19a   : > { %v1033_v50 = vor.u32 %v1031_v24, %v1030_v36  ;;  %v1035_v52 = vrot.slane %v1030_v36, 4  ;;  %v1432_v55 = vsel %vm8708_vm7, %v1427_v42, %v1431_v31  ;;  %v3289_v56 = vrot.slane %v3287_v38, 5  ;;  %v8887_v4 = vpop.f32.mrb[30].mxu0  ;;  %v3239_v31 = vld [vmem:[#allocation2 + $0x1c] sm:$0xf] }
 0x19b   : > { %v3295_v57 = vrot.slane %v3293_v40, 5  ;;  %v3299_v58 = vrot.slane %v3297_v44, 4  ;;  %v1051_v61 = vsel %vm8764_vm11, %v1043_v3, %v1050_v47  ;;  %v1274_v62 = vsel %vm8658_vm2, %v1052_v49, %v1273_v26  ;;  %v1368_v3 = vld [vmem:[#allocation2 + $0x20] sm:$0x1]  ;;  %v8889_v11 = vpop.f32.mrb[31].mxu0  ;;  %v8091_v40 = vld [vmem:[#allocation8 + $0x10] sm:$0xff]  }
 0x19c   : > { %v1034_v0 = vsel %vm8764_vm11, %v1026_v5, %v1033_v50  ;;  %v1267_v2 = vsel %vm8658_vm2, %v1035_v52, %v1266_v37  ;;  %1272 = vst [vmem:[#allocation2 + $0x7c] sm:$0xf] %v1051_v61  ;;  %1275 = vst [vmem:[#allocation2 + $0x80] sm:$0x1] %v1274_v62  ;;  %v6534_v7 = vcombine.low %v1422_v41, %v1432_v55  ;;  %v3303_v10 = vshll.u32 %v3237_v53, 16 }
 0x19d   : > { %1265 = vst [vmem:[#allocation2 + $0x70] sm:$0xf] %v1034_v0  ;;  %1268 = vst [vmem:[#allocation2 + $0x74] sm:$0x1] %v1267_v2  ;;  %v3290_v8 = vor.u32 %v3289_v56, %v3286_v43  ;;  %v3300_v9 = vor.u32 %v3299_v58, %v3295_v57  ;;  %v1434_v15 = vshrl.u32 %v1322_v45, 16  ;;  %v1437_v13 = vshll.u32 %v1322_v45, 16 }
 0x19e   : > { %v1443_v5 = vshll.u32 %v1323_v59, 16  ;;  %7301 = vmatmul.mubr.bf16.vlgmr.msra.gmra.mrb[32].mxu0 %v6534_v7  ;;  %v3305_v22 = vrot.slane %v3303_v10, 5  ;;  %v1447_v23 = vshrl.u32 %v1323_v59, 16  ;;  %v1453_v30 = vshll.u32 %v1368_v3, 16  ;;  %v3240_v37 = vld [vmem:[#allocation2 + $0x20] sm:$0x1] }
 0x19f   : > { %v3291_v18 = vrot.slane %v3290_v8, 4  ;;  %v3301_v21 = vrot.slane %v3300_v9, 4  ;;  %v1436_v24 = vrot.slane %v1434_v15, 4  ;;  %v1439_v26 = vrot.slane %v1437_v13, 5  ;;  %7333 = vmatpush3.bf16.msra.mxu0 %v8822_v48  ;;  %v8093_v58 = vld [vmem:[#allocation8 + $0x18] sm:$0xff]   ;;  %v8094_v13 = vld [vmem:[#allocation8 + $0x20] sm:$0xff]  }
 0x1a0   : > { %v1445_v28 = vrot.slane %v1443_v5, 5  ;;  %v1449_v36 = vrot.slane %v1447_v23, 4  ;;  %v3308_v38 = vshrl.u32 %v3238_v17, 16  ;;  %7334 = vmatprep.subr.bf16.mxu0 %v8090_v14  ;;  %v3311_v43 = vshll.u32 %v3238_v17, 16  ;;  %v1324_v0 = vld [vmem:[#allocation2 + $0x24] sm:$0xf] }
 0x1a1   : > { %v3296_v32 = vsel %vm8708_vm7, %v3291_v18, %v3295_v57  ;;  %v3306_v33 = vsel %vm8708_vm7, %v3301_v21, %v3305_v22  ;;  %v1440_v42 = vor.u32 %v1439_v26, %v1436_v24  ;;  %v3317_v47 = vshll.u32 %v3239_v31, 16  ;;  %v8910_v23 = vld [vmem:[#allocation2 + $0x28] sm:$0xf]  ;;  %v8914_v26 = vld [vmem:[#allocation2 + $0x2c] sm:$0x1] }
 0x1a2   : > { %v6645_v41 = vcombine.low %v3296_v32, %v3306_v33  ;;  %v1450_v44 = vor.u32 %v1449_v36, %v1445_v28  ;;  %v3310_v45 = vrot.slane %v3308_v38, 4  ;;  %v3321_v49 = vshrl.u32 %v3239_v31, 16  ;;  %v8085_v36 = vld [vmem:[#allocation8 + $0x148] sm:$0xff]  }
 0x1a3   : > { %v1441_v48 = vrot.slane %v1440_v42, 4  ;;  %v3313_v50 = vrot.slane %v3311_v43, 5  ;;  %v3327_v52 = vshll.u32 %v3240_v37, 16  ;;  %7335 = vmatpush3.bf16.msra.mxu0 %v8090_v14  ;;  %v1455_v55 = vrot.slane %v1453_v30, 5  ;;  %v1283_v42 = vld [vmem:[#allocation2 + $0x90] sm:$0xf] }
 0x1a4   : > { %7492 = vmatprep.mubr.bf16.mxu1 %v6645_v41  ;;  %v1451_v53 = vrot.slane %v1450_v44, 4  ;;  %v3319_v56 = vrot.slane %v3317_v47, 5  ;;  %v3323_v57 = vrot.slane %v3321_v49, 4  ;;  %7336 = vmatprep.subr.bf16.mxu0 %v8091_v40  ;;  %v595_v8 = vadd.f32 %v8833_v16, %v8742_v63  ;;  %v1276_v43 = vld [vmem:[#allocation2 + $0x84] sm:$0xf] }
 0x1a5   : > { %v1446_v59 = vsel %vm8708_vm7, %v1441_v48, %v1445_v28  ;;  %v3314_v61 = vor.u32 %v3313_v50, %v3310_v45  ;;  %v3329_v62 = vrot.slane %v3327_v52, 5  ;;  %v587_v9 = vadd.f32 %v8742_v63, %v8839_v20  ;;  %v1287_v52 = vld [vmem:[#allocation2 + $0x98] sm:$0x1] }
 0x1a6   : > { %v1456_v2 = vsel %vm8708_vm7, %v1451_v53, %v1455_v55  ;;  %v3324_v7 = vor.u32 %v3323_v57, %v3319_v56  ;;  %v598_v14 = vadd.f32 %v8843_v27, %v8742_v63  ;;  %v590_v15 = vadd.f32 %v8742_v63, %v8845_v35  ;;  %v1280_v53 = vld [vmem:[#allocation2 + $0x8c] sm:$0x1] }
 0x1a7   : > { %v6535_v10 = vcombine.low %v1446_v59, %v1456_v2  ;;  %v3315_v3 = vrot.slane %v3314_v61, 4  ;;  %7337 = vmatpush3.bf16.msra.mxu0 %v8091_v40  ;;  %v655_v17 = vmax.f32 %v595_v8, 0.0  ;;  %v653_v18 = vmax.f32 %v587_v9, 0.0  ;;  %v8086_v57 = vld [vmem:[#allocation8 + $0x150] sm:$0xff]  }
 0x1a8   : > { %v3325_v5 = vrot.slane %v3324_v7, 4  ;;  %v1458_v21 = vshrl.u32 %v1324_v0, 16  ;;  %7338 = vmatprep.subr.bf16.mxu0 %v8093_v58  ;;  %v656_v20 = vmax.f32 %v598_v14, 0.0  ;;  %v654_v22 = vmax.f32 %v590_v15, 0.0  ;;  %v3242_v9 = vld [vmem:[#allocation2 + $0x28] sm:$0xf] }
 0x1a9   : > { %7304 = vmatprep.mubr.bf16.mxu0 %v6535_v10  ;;  %v3320_v16 = vsel %vm8708_vm7, %v3315_v3, %v3319_v56  ;;  %v1461_v24 = vshll.u32 %v1324_v0, 16  ;;  %v6858_v63 = vpack.c.bf16 %v655_v17, %v655_v17  ;;  %v6856_v35 = vpack.c.bf16 %v653_v18, %v653_v18  ;;  %v3241_v0 = vld [vmem:[#allocation2 + $0x24] sm:$0xf]  ;;  %v8087_v17 = vld [vmem:[#allocation8 + $0x158] sm:$0xff]  }
 0x1aa   : > { %v3330_v27 = vsel %vm8708_vm7, %v3325_v5, %v3329_v62  ;;  %v1460_v28 = vrot.slane %v1458_v21, 4  ;;  %v6859_v31 = vpack.c.bf16 %v656_v20, %v656_v20  ;;  %v6857_v32 = vpack.c.bf16 %v654_v22, %v654_v22  ;;  %v1326_v5 = vld [vmem:[#allocation2 + $0x30] sm:$0xf]  ;;  %v8096_v18 = vld [vmem:[#allocation8 + $0x28] sm:$0xff]   ;;  %v3243_v22 = vld [vmem:[#allocation2 + $0x2c] sm:$0x1] }
 0x1ab   : > { %v6646_v30 = vcombine.low %v3320_v16, %v3330_v27  ;;  %v1463_v33 = vrot.slane %v1461_v24, 5  ;;  %7339 = vmatpush3.bf16.msra.mxu0 %v8093_v58  ;;  %v1071_v37 = vshrl.u32 %v6858_v63, 16  ;;  %v1074_v38 = vshll.u32 %v6858_v63, 16 }
 0x1ac   : > { %v1054_v40 = vshrl.u32 %v6856_v35, 16  ;;  %v1057_v41 = vshll.u32 %v6856_v35, 16  ;;  %7340 = vmatprep.subr.bf16.mxu0 %v8094_v13  ;;  %v1079_v44 = vshrl.u32 %v6859_v31, 16  ;;  %v1082_v45 = vshll.u32 %v6859_v31, 16  ;;  %v1327_v35 = vld [vmem:[#allocation2 + $0x34] sm:$0xf] }
 0x1ad   : > { %7493 = vmatmul.mubr.bf16.vlgmr.msra.gmra.mrb[0].mxu1 %v6646_v30  ;;  %v1062_v47 = vshrl.u32 %v6857_v32, 16  ;;  %v1065_v49 = vshll.u32 %v6857_v32, 16  ;;  %v1073_v48 = vrot.slane %v1071_v37, 7  ;;  %v1464_v55 = vor.u32 %v1463_v33, %v1460_v28  ;;  %v1370_v32 = vld [vmem:[#allocation2 + $0x38] sm:$0x1]  ;;  %v8097_v33 = vld [vmem:[#allocation8 + $0x30] sm:$0xff]  }
 0x1ae   : > { %7525 = vmatpush3.bf16.msra.mxu1 %v8720_v46  ;;  %v1056_v50 = vrot.slane %v1054_v40, 7  ;;  %v1467_v56 = vshll.u32 %v8910_v23, 16  ;;  %v1081_v58 = vrot.slane %v1079_v44, 7  ;;  %v1471_v61 = vshrl.u32 %v8910_v23, 16 }
 0x1af   : > { %v1064_v59 = vrot.slane %v1062_v47, 7  ;;  %v1477_v62 = vshll.u32 %v8914_v26, 16  ;;  %7526 = vmatprep.subr.bf16.mxu1 %v8085_v36  ;;  %7341 = vmatpush3.bf16.msra.mxu0 %v8094_v13  ;;  %v1076_v2 = vor.u32 %v1074_v38, %v1073_v48  ;;  %v1077_v7 = vrot.slane %v1073_v48, 4  ;;  %v8089_v47 = vld [vmem:[#allocation8 + $0x160] sm:$0xff]  }
 0x1b0   : > { %v1059_v46 = vor.u32 %v1057_v41, %v1056_v50  ;;  %v1060_v8 = vrot.slane %v1056_v50, 4  ;;  %v1084_v10 = vor.u32 %v1082_v45, %v1081_v58  ;;  %v1086_v3 = vrot.slane %v1081_v58, 4  ;;  %7342 = vmatprep.subr.bf16.mxu0 %v8096_v18  ;;  %v3244_v41 = vld [vmem:[#allocation2 + $0x30] sm:$0xf] }
 0x1b1   : > { %v1067_v14 = vor.u32 %v1065_v49, %v1064_v59  ;;  %v1069_v15 = vrot.slane %v1064_v59, 4  ;;  %v1284_v21 = vsel %vm8757_vm10, %v1076_v2, %v1283_v42  ;;  %v1465_v20 = vrot.slane %v1464_v55, 4 }
 0x1b2   : > { %v1277_v16 = vsel %vm8757_vm10, %v1059_v46, %v1276_v43  ;;  %v1469_v13 = vrot.slane %v1467_v56, 5  ;;  %7527 = vmatpush3.bf16.msra.mxu1 %v8085_v36  ;;  %1285 = vst [vmem:[#allocation2 + $0x90] sm:$0xf] %v1284_v21  ;;  %v1085_v23 = vsel %vm8764_vm11, %v1077_v7, %v1084_v10  ;;  %v1288_v24 = vsel %vm8658_vm2, %v1086_v3, %v1287_v52  ;;  %v3245_v46 = vld [vmem:[#allocation2 + $0x34] sm:$0xf] }
 0x1b3   : > { %1278 = vst [vmem:[#allocation2 + $0x84] sm:$0xf] %v1277_v16  ;;  %v1068_v27 = vsel %vm8764_vm11, %v1060_v8, %v1067_v14  ;;  %v1281_v63 = vsel %vm8658_vm2, %v1069_v15, %v1280_v53  ;;  %7528 = vmatprep.subr.bf16.mxu1 %v8086_v57  ;;  %1286 = vst [vmem:[#allocation2 + $0x94] sm:$0xf] %v1085_v23  ;;  %v1473_v28 = vrot.slane %v1471_v61, 4  ;;  %v1479_v30 = vrot.slane %v1477_v62, 5 }
 0x1b4   : > { %1289 = vst [vmem:[#allocation2 + $0x98] sm:$0x1] %v1288_v24  ;;  %1279 = vst [vmem:[#allocation2 + $0x88] sm:$0xf] %v1068_v27  ;;  %v1470_v26 = vsel %vm8708_vm7, %v1465_v20, %v1469_v13  ;;  %v3332_v31 = vshrl.u32 %v3241_v0, 16  ;;  %v3335_v36 = vshll.u32 %v3241_v0, 16  ;;  %7343 = vmatpush3.bf16.msra.mxu0 %v8096_v18 }
 0x1b5   : > { %1282 = vst [vmem:[#allocation2 + $0x8c] sm:$0x1] %v1281_v63  ;;  %v3341_v37 = vshll.u32 %v3242_v9, 16  ;;  %v3345_v38 = vshrl.u32 %v3242_v9, 16  ;;  %v3351_v40 = vshll.u32 %v3243_v22, 16  ;;  %v1474_v42 = vor.u32 %v1473_v28, %v1469_v13  ;;  %7344 = vmatprep.subr.bf16.mxu0 %v8097_v33  ;;  %v8092_v15 = vld [vmem:[#allocation8 + $0x168] sm:$0xff]  }
 0x1b6   : > { %v3334_v43 = vrot.slane %v3332_v31, 4  ;;  %v1482_v44 = vshrl.u32 %v1326_v5, 16  ;;  %v1485_v45 = vshll.u32 %v1326_v5, 16  ;;  %7529 = vmatpush3.bf16.msra.mxu1 %v8086_v57  ;;  %v3337_v49 = vrot.slane %v3335_v36, 5  ;;  %v3246_v21 = vld [vmem:[#allocation2 + $0x38] sm:$0x1] }
 0x1b7   : > { %v3343_v48 = vrot.slane %v3341_v37, 5  ;;  %v3347_v50 = vrot.slane %v3345_v38, 4  ;;  %v3353_v52 = vrot.slane %v3351_v40, 5  ;;  %7530 = vmatprep.subr.bf16.mxu1 %v8087_v17  ;;  %v1475_v53 = vrot.slane %v1474_v42, 4  ;;  %v8945_v31 = vld [vmem:[%s10324_s2] ss:$0 sm:$0xff] }
 0x1b8   : > { %v1484_v55 = vrot.slane %v1482_v44, 4  ;;  %v1487_v56 = vrot.slane %v1485_v45, 5  ;;  %v1491_v58 = vshll.u32 %v1327_v35, 16  ;;  %v3338_v59 = vor.u32 %v3337_v49, %v3334_v43  ;;  %7345 = vmatpush3.bf16.msra.mxu0 %v8097_v33  ;;  %v8095_v33 = vld [vmem:[#allocation8 + $0x170] sm:$0xff]   ;;  %v8099_v36 = vld [vmem:[#allocation8 + $0x38] sm:$0xff]  }
 0x1b9   : > { %v3348_v61 = vor.u32 %v3347_v50, %v3343_v48  ;;  %v1495_v62 = vshrl.u32 %v1327_v35, 16  ;;  %v1501_v0 = vshll.u32 %v1370_v32, 16  ;;  %v1480_v2 = vsel %vm8708_vm7, %v1475_v53, %v1479_v30  ;;  %v1328_v42 = vld [vmem:[#allocation2 + $0x3c] sm:$0xf]  ;;  %7346 = vmatprep.subr.bf16.mxu0 %v8099_v36 }
 0x1ba   : > { %v1488_v57 = vor.u32 %v1487_v56, %v1484_v55  ;;  %v1493_v7 = vrot.slane %v1491_v58, 5  ;;  %v3356_v8 = vshrl.u32 %v3244_v41, 16  ;;  %7531 = vmatpush3.bf16.msra.mxu1 %v8087_v17  ;;  %v6536_v9 = vcombine.low %v1470_v26, %v1480_v2  ;;  %v8098_v55 = vld [vmem:[#allocation8 + $0x178] sm:$0xff]  }
 0x1bb   : > { %v3339_v10 = vrot.slane %v3338_v59, 4  ;;  %v3349_v3 = vrot.slane %v3348_v61, 4  ;;  %v1497_v14 = vrot.slane %v1495_v62, 4  ;;  %7532 = vmatprep.subr.bf16.mxu1 %v8089_v47  ;;  %v1503_v18 = vrot.slane %v1501_v0, 5 }
 0x1bc   : > { %v1489_v5 = vrot.slane %v1488_v57, 4  ;;  %v3358_v16 = vrot.slane %v3356_v8, 4  ;;  %v3359_v20 = vshll.u32 %v3244_v41, 16  ;;  %7305 = vmatmul.mubr.bf16.gmra.mrb[36].mxu0 %v6536_v9  ;;  %v3365_v17 = vshll.u32 %v3245_v46, 16 }
 0x1bd   : > { %v3344_v13 = vsel %vm8708_vm7, %v3339_v10, %v3343_v48  ;;  %v3354_v22 = vsel %vm8708_vm7, %v3349_v3, %v3353_v52  ;;  %v1498_v23 = vor.u32 %v1497_v14, %v1493_v7  ;;  %v3369_v35 = vshrl.u32 %v3245_v46, 16  ;;  %7347 = vmatpush3.bf16.msra.mxu0 %v8099_v36  ;;  %v1297_v46 = vld [vmem:[#allocation2 + $0xa8] sm:$0xf] }
 0x1be   : > { %v6647_v24 = vcombine.low %v3344_v13, %v3354_v22  ;;  %v1494_v27 = vsel %vm8708_vm7, %v1489_v5, %v1493_v7  ;;  %v3361_v63 = vrot.slane %v3359_v20, 5  ;;  %7533 = vmatpush3.bf16.msra.mxu1 %v8089_v47  ;;  %v3367_v28 = vrot.slane %v3365_v17, 5  ;;  %v1301_v20 = vld [vmem:[#allocation2 + $0xb0] sm:$0x1] }
 0x1bf   : > { %v1499_v26 = vrot.slane %v1498_v23, 4  ;;  %v3375_v30 = vshll.u32 %v3246_v21, 16  ;;  %v611_v32 = vadd.f32 %v8945_v31, %v8857_v1  ;;  %7534 = vmatprep.subr.bf16.mxu1 %v8092_v15  ;;  %v3371_v38 = vrot.slane %v3369_v35, 4  ;;  %v8102_v21 = vld [vmem:[#allocation8 + $0x180] sm:$0xff]   ;;  %v1371_v23 = vld [vmem:[#allocation2 + $0x44] sm:$0x1] }
 0x1c0   : > { %7496 = vmatprep.mubr.bf16.mxu1 %v6647_v24  ;;  %v3362_v37 = vor.u32 %v3361_v63, %v3358_v16  ;;  %v603_v40 = vadd.f32 %v8945_v31, %v8861_v6  ;;  %v614_v41 = vadd.f32 %v8945_v31, %v8863_v12  ;;  %v606_v1 = vadd.f32 %v8945_v31, %v8869_v19  ;;  %v8959_v19 = vld [vmem:[#allocation2 + $0x40] sm:$0xf]  ;;  %v1294_v35 = vld [vmem:[#allocation2 + $0xa4] sm:$0x1] }
 0x1c1   : > { %v1504_v43 = vsel %vm8708_vm7, %v1499_v26, %v1503_v18  ;;  %v3377_v44 = vrot.slane %v3375_v30, 5  ;;  %v659_v45 = vmax.f32 %v611_v32, 0.0  ;;  %v3372_v48 = vor.u32 %v3371_v38, %v3367_v28 }
 0x1c2   : > { %v6537_v47 = vcombine.low %v1494_v27, %v1504_v43  ;;  %v3363_v49 = vrot.slane %v3362_v37, 4  ;;  %v657_v50 = vmax.f32 %v603_v40, 0.0  ;;  %7535 = vmatpush3.bf16.msra.mxu1 %v8092_v15  ;;  %v660_v52 = vmax.f32 %v614_v41, 0.0  ;;  %v1290_v15 = vld [vmem:[#allocation2 + $0x9c] sm:$0xf] }
 0x1c3   : > { %v6862_v6 = vpack.c.bf16 %v659_v45, %v659_v45  ;;  %v658_v53 = vmax.f32 %v606_v1, 0.0  ;;  %v1506_v12 = vshrl.u32 %v1328_v42, 16  ;;  %7536 = vmatprep.subr.bf16.mxu1 %v8095_v33  ;;  %v3373_v58 = vrot.slane %v3372_v48, 4  ;;  %v3248_v37 = vld [vmem:[#allocation2 + $0x40] sm:$0xf] }
 0x1c4   : > { %7308 = vmatprep.mubr.bf16.mxu0 %v6537_v47  ;;  %v3368_v56 = vsel %vm8708_vm7, %v3363_v49, %v3367_v28  ;;  %v6860_v59 = vpack.c.bf16 %v657_v50, %v657_v50  ;;  %v1509_v61 = vshll.u32 %v1328_v42, 16  ;;  %v6863_v2 = vpack.c.bf16 %v660_v52, %v660_v52  ;;  %v3247_v28 = vld [vmem:[#allocation2 + $0x3c] sm:$0xf]  ;;  %v3249_v43 = vld [vmem:[#allocation2 + $0x44] sm:$0x1] }
 0x1c5   : > { %v1105_v62 = vshrl.u32 %v6862_v6, 16  ;;  %v1108_v0 = vshll.u32 %v6862_v6, 16  ;;  %v6861_v57 = vpack.c.bf16 %v658_v53, %v658_v53  ;;  %v3378_v7 = vsel %vm8708_vm7, %v3373_v58, %v3377_v44  ;;  %v1330_v44 = vld [vmem:[#allocation2 + $0x48] sm:$0xf] }
 0x1c6   : > { %v1088_v8 = vshrl.u32 %v6860_v59, 16  ;;  %v1091_v9 = vshll.u32 %v6860_v59, 16  ;;  %v1508_v10 = vrot.slane %v1506_v12, 4  ;;  %7537 = vmatpush3.bf16.msra.mxu1 %v8095_v33  ;;  %v6648_v3 = vcombine.low %v3368_v56, %v3378_v7 }
 0x1c7   : > { %v1107_v14 = vrot.slane %v1105_v62, 7  ;;  %v1113_v5 = vshrl.u32 %v6863_v2, 16  ;;  %v1116_v18 = vshll.u32 %v6863_v2, 16  ;;  %7538 = vmatprep.subr.bf16.mxu1 %v8098_v55  ;;  %v1096_v13 = vshrl.u32 %v6861_v57, 16 }
 0x1c8   : > { %v1090_v16 = vrot.slane %v1088_v8, 7  ;;  %v1099_v22 = vshll.u32 %v6861_v57, 16  ;;  %v1511_v17 = vrot.slane %v1509_v61, 5  ;;  %7497 = vmatmul.mubr.bf16.gmra.mrb[4].mxu1 %v6648_v3  ;;  %v1515_v26 = vshll.u32 %v8959_v19, 16  ;;  %v1372_v3 = vld [vmem:[#allocation2 + $0x50] sm:$0x1] }
 0x1c9   : > { %v1110_v24 = vor.u32 %v1108_v0, %v1107_v14  ;;  %v1111_v27 = vrot.slane %v1107_v14, 4  ;;  %v1115_v63 = vrot.slane %v1113_v5, 7  ;;  %v1098_v33 = vrot.slane %v1096_v13, 7 }
 0x1ca   : > { %v1093_v30 = vor.u32 %v1091_v9, %v1090_v16  ;;  %v1094_v32 = vrot.slane %v1090_v16, 4  ;;  %v1512_v36 = vor.u32 %v1511_v17, %v1508_v10  ;;  %7539 = vmatpush3.bf16.msra.mxu1 %v8098_v55  ;;  %v1517_v42 = vrot.slane %v1515_v26, 5 }
 0x1cb   : > { %v1298_v38 = vsel %vm8757_vm10, %v1110_v24, %v1297_v46  ;;  %v1118_v40 = vor.u32 %v1116_v18, %v1115_v63  ;;  %v1120_v41 = vrot.slane %v1115_v63, 4  ;;  %7572 = vmatprep.subr.bf16.mxu1 %v8102_v21  ;;  %v1101_v1 = vor.u32 %v1099_v22, %v1098_v33  ;;  %v3250_v46 = vld [vmem:[#allocation2 + $0x48] sm:$0xf] }
 0x1cc   : > { %1299 = vst [vmem:[#allocation2 + $0xa8] sm:$0xf] %v1298_v38  ;;  %v1291_v45 = vsel %vm8757_vm10, %v1093_v30, %v1290_v15  ;;  %v1103_v47 = vrot.slane %v1098_v33, 4  ;;  %v1513_v49 = vrot.slane %v1512_v36, 4  ;;  %v1519_v6 = vshrl.u32 %v8959_v19, 16 }
 0x1cd   : > { %1292 = vst [vmem:[#allocation2 + $0x9c] sm:$0xf] %v1291_v45  ;;  %v1119_v48 = vsel %vm8764_vm11, %v1111_v27, %v1118_v40  ;;  %v1302_v50 = vsel %vm8658_vm2, %v1120_v41, %v1301_v20  ;;  %v1525_v52 = vshll.u32 %v1371_v23, 16  ;;  %v1102_v53 = vsel %vm8764_vm11, %v1094_v32, %v1101_v1  ;;  %v1331_v19 = vld [vmem:[#allocation2 + $0x4c] sm:$0xf] }
 0x1ce   : > { %1300 = vst [vmem:[#allocation2 + $0xac] sm:$0xf] %v1119_v48  ;;  %1303 = vst [vmem:[#allocation2 + $0xb0] sm:$0x1] %v1302_v50  ;;  %v1295_v12 = vsel %vm8658_vm2, %v1103_v47, %v1294_v35  ;;  %v1518_v55 = vsel %vm8708_vm7, %v1513_v49, %v1517_v42  ;;  %v3380_v56 = vshrl.u32 %v3247_v28, 16  ;;  %v1521_v58 = vrot.slane %v1519_v6, 4 }
 0x1cf   : > { %1293 = vst [vmem:[#allocation2 + $0xa0] sm:$0xf] %v1102_v53  ;;  %1296 = vst [vmem:[#allocation2 + $0xa4] sm:$0x1] %v1295_v12  ;;  %v1527_v59 = vrot.slane %v1525_v52, 5  ;;  %v3383_v61 = vshll.u32 %v3247_v28, 16 }
 0x1d0   : > { %v3389_v62 = vshll.u32 %v3248_v37, 16  ;;  %v3382_v0 = vrot.slane %v3380_v56, 4  ;;  %v3393_v2 = vshrl.u32 %v3248_v37, 16  ;;  %v3399_v57 = vshll.u32 %v3249_v43, 16  ;;  %v3251_v30 = vld [vmem:[#allocation2 + $0x4c] sm:$0xf] }
 0x1d1   : > { %v1530_v7 = vshrl.u32 %v1330_v44, 16  ;;  %v1522_v8 = vor.u32 %v1521_v58, %v1517_v42  ;;  %v3385_v9 = vrot.slane %v3383_v61, 5  ;;  %v1533_v14 = vshll.u32 %v1330_v44, 16  ;;  %v3252_v32 = vld [vmem:[#allocation2 + $0x50] sm:$0x1] }
 0x1d2   : > { %v3391_v10 = vrot.slane %v3389_v62, 5  ;;  %v3395_v15 = vrot.slane %v3393_v2, 4  ;;  %v3401_v5 = vrot.slane %v3399_v57, 5  ;;  %v1539_v21 = vshll.u32 %v1331_v19, 16  ;;  %v1332_v56 = vld [vmem:[#allocation2 + $0x54] sm:$0xf] }
 0x1d3   : > { %v1532_v18 = vrot.slane %v1530_v7, 4  ;;  %v1523_v16 = vrot.slane %v1522_v8, 4  ;;  %v3386_v20 = vor.u32 %v3385_v9, %v3382_v0  ;;  %v1535_v13 = vrot.slane %v1533_v14, 5 }
 0x1d4   : > { %v1543_v22 = vshrl.u32 %v1331_v19, 16  ;;  %v3396_v23 = vor.u32 %v3395_v15, %v3391_v10  ;;  %v1541_v17 = vrot.slane %v1539_v21, 5  ;;  %v1549_v24 = vshll.u32 %v1372_v3, 16 }
 0x1d5   : > { %v3404_v27 = vshrl.u32 %v3250_v46, 16  ;;  %v1528_v63 = vsel %vm8708_vm7, %v1523_v16, %v1527_v59  ;;  %v3387_v35 = vrot.slane %v3386_v20, 4  ;;  %v1536_v26 = vor.u32 %v1535_v13, %v1532_v18  ;;  %v8999_v18 = vld [vmem:[#allocation8 + $0x80] sm:$0xff]  }
 0x1d6   : > { %v1545_v28 = vrot.slane %v1543_v22, 4  ;;  %v6538_v33 = vcombine.low %v1518_v55, %v1528_v63  ;;  %v3397_v36 = vrot.slane %v3396_v23, 4  ;;  %v1551_v37 = vrot.slane %v1549_v24, 5  ;;  %v1333_v20 = vld [vmem:[#allocation2 + $0x58] sm:$0xf]  ;;  %7380 = vmatprep.subr.bf16.mxu0 %v8999_v18 }
 0x1d7   : > { %v3406_v38 = vrot.slane %v3404_v27, 4  ;;  %v3392_v40 = vsel %vm8708_vm7, %v3387_v35, %v3391_v10  ;;  %v1537_v41 = vrot.slane %v1536_v26, 4  ;;  %v3407_v43 = vshll.u32 %v3250_v46, 16  ;;  %v1311_v22 = vld [vmem:[#allocation2 + $0xc0] sm:$0xf] }
 0x1d8   : > { %v1546_v42 = vor.u32 %v1545_v28, %v1541_v17  ;;  %7309 = vmatmul.mubr.bf16.gmra.mrb[40].mxu0 %v6538_v33  ;;  %v3402_v44 = vsel %vm8708_vm7, %v3397_v36, %v3401_v5  ;;  %v3413_v45 = vshll.u32 %v3251_v30, 16  ;;  %v3417_v1 = vshrl.u32 %v3251_v30, 16  ;;  %v1304_v63 = vld [vmem:[#allocation2 + $0xb4] sm:$0xf]  ;;  %v1315_v26 = vld [vmem:[#allocation2 + $0xc8] sm:$0x1] }
 0x1d9   : > { %v3423_v47 = vshll.u32 %v3252_v32, 16  ;;  %v6649_v49 = vcombine.low %v3392_v40, %v3402_v44  ;;  %v1542_v48 = vsel %vm8708_vm7, %v1537_v41, %v1541_v17  ;;  %v3409_v6 = vrot.slane %v3407_v43, 5  ;;  %v1308_v36 = vld [vmem:[#allocation2 + $0xbc] sm:$0x1]  ;;  %v3253_v44 = vld [vmem:[#allocation2 + $0x54] sm:$0xf] }
 0x1da   : > { %v1547_v50 = vrot.slane %v1546_v42, 4  ;;  %v3415_v52 = vrot.slane %v3413_v45, 5  ;;  %v3419_v53 = vrot.slane %v3417_v1, 4  ;;  %v627_v55 = vadd.f32 %v8945_v31, %v8873_v54 }
 0x1db   : > { %v3425_v12 = vrot.slane %v3423_v47, 5  ;;  %7500 = vmatprep.mubr.bf16.mxu1 %v6649_v49  ;;  %v3410_v59 = vor.u32 %v3409_v6, %v3406_v38  ;;  %v619_v61 = vadd.f32 %v8945_v31, %v8877_v60  ;;  %v630_v62 = vadd.f32 %v8945_v31, %v8887_v4 }
 0x1dc   : > { %v1552_v58 = vsel %vm8708_vm7, %v1547_v50, %v1551_v37  ;;  %v3420_v0 = vor.u32 %v3419_v53, %v3415_v52  ;;  %v663_v2 = vmax.f32 %v627_v55, 0.0  ;;  %v622_v57 = vadd.f32 %v8945_v31, %v8889_v11  ;;  %v9004_v50 = vld [vmem:[#allocation2 + $0x58] sm:$0xf] }
 0x1dd   : > { %v6539_v19 = vcombine.low %v1542_v48, %v1552_v58  ;;  %v3411_v7 = vrot.slane %v3410_v59, 4  ;;  %v661_v54 = vmax.f32 %v619_v61, 0.0  ;;  %v664_v46 = vmax.f32 %v630_v62, 0.0  ;;  %v1373_v48 = vld [vmem:[#allocation2 + $0x5c] sm:$0x1] }
 0x1de   : > { %v1554_v8 = vshrl.u32 %v1332_v56, 16  ;;  %v3421_v9 = vrot.slane %v3420_v0, 4  ;;  %v6866_v10 = vpack.c.bf16 %v663_v2, %v663_v2  ;;  %v662_v3 = vmax.f32 %v622_v57, 0.0  ;;  %v9014_v61 = vld [vmem:[#allocation2 + $0x5c] sm:$0x1] }
 0x1df   : > { %7312 = vmatprep.mubr.bf16.mxu0 %v6539_v19  ;;  %v1557_v14 = vshll.u32 %v1332_v56, 16  ;;  %v3416_v60 = vsel %vm8708_vm7, %v3411_v7, %v3415_v52  ;;  %v6864_v15 = vpack.c.bf16 %v661_v54, %v661_v54  ;;  %v6867_v4 = vpack.c.bf16 %v664_v46, %v664_v46  ;;  %v9021_v46 = vld [vmem:[#allocation2 + $0x60] sm:$0xf] }
 0x1e0   : > { %v1556_v5 = vrot.slane %v1554_v8, 4  ;;  %v3426_v11 = vsel %vm8708_vm7, %v3421_v9, %v3425_v12  ;;  %v1139_v31 = vshrl.u32 %v6866_v10, 16  ;;  %v1142_v21 = vshll.u32 %v6866_v10, 16 }
 0x1e1   : > { %v6865_v16 = vpack.c.bf16 %v662_v3, %v662_v3  ;;  %v6650_v13 = vcombine.low %v3416_v60, %v3426_v11  ;;  %v1122_v23 = vshrl.u32 %v6864_v15, 16  ;;  %v1125_v17 = vshll.u32 %v6864_v15, 16  ;;  %v9027_v3 = vld [vmem:[#allocation2 + $0x64] sm:$0xf]  ;;  %v3256_v11 = vld [vmem:[#allocation2 + $0x60] sm:$0xf] }
 0x1e2   : > { %v1147_v24 = vshrl.u32 %v6867_v4, 16  ;;  %v1141_v27 = vrot.slane %v1139_v31, 7  ;;  %v1150_v35 = vshll.u32 %v6867_v4, 16  ;;  %v1559_v37 = vrot.slane %v1557_v14, 5  ;;  %v1374_v14 = vld [vmem:[#allocation2 + $0x68] sm:$0x1] }
 0x1e3   : > { %v1130_v28 = vshrl.u32 %v6865_v16, 16  ;;  %v1133_v30 = vshll.u32 %v6865_v16, 16  ;;  %7501 = vmatmul.mubr.bf16.gmra.mrb[8].mxu1 %v6650_v13  ;;  %v1124_v32 = vrot.slane %v1122_v23, 7  ;;  %v1563_v38 = vshll.u32 %v1333_v20, 16 }
 0x1e4   : > { %v1149_v33 = vrot.slane %v1147_v24, 7  ;;  %v1144_v40 = vor.u32 %v1142_v21, %v1141_v27  ;;  %v1145_v41 = vrot.slane %v1141_v27, 4  ;;  %v1567_v43 = vshrl.u32 %v1333_v20, 16 }
 0x1e5   : > { %v1132_v42 = vrot.slane %v1130_v28, 7  ;;  %v1127_v45 = vor.u32 %v1125_v17, %v1124_v32  ;;  %v1128_v1 = vrot.slane %v1124_v32, 4  ;;  %v1560_v12 = vor.u32 %v1559_v37, %v1556_v5 }
 0x1e6   : > { %v1152_v47 = vor.u32 %v1150_v35, %v1149_v33  ;;  %v1154_v49 = vrot.slane %v1149_v33, 4  ;;  %v1312_v6 = vsel %vm8757_vm10, %v1144_v40, %v1311_v22  ;;  %v1565_v59 = vrot.slane %v1563_v38, 5 }
 0x1e7   : > { %v1135_v52 = vor.u32 %v1133_v30, %v1132_v42  ;;  %v1137_v53 = vrot.slane %v1132_v42, 4  ;;  %1313 = vst [vmem:[#allocation2 + $0xc0] sm:$0xf] %v1312_v6  ;;  %v1305_v55 = vsel %vm8757_vm10, %v1127_v45, %v1304_v63  ;;  %v1561_v34 = vrot.slane %v1560_v12, 4 }
 0x1e8   : > { %v1153_v56 = vsel %vm8764_vm11, %v1145_v41, %v1152_v47  ;;  %v1316_v58 = vsel %vm8658_vm2, %v1154_v49, %v1315_v26  ;;  %1306 = vst [vmem:[#allocation2 + $0xb4] sm:$0xf] %v1305_v55  ;;  %v1569_v0 = vrot.slane %v1567_v43, 4  ;;  %v1573_v2 = vshll.u32 %v1373_v48, 16  ;;  %v9035_v26 = vld [vmem:[#allocation2 + $0x64] sm:$0xf] }
 0x1e9   : > { %1314 = vst [vmem:[#allocation2 + $0xc4] sm:$0xf] %v1153_v56  ;;  %1317 = vst [vmem:[#allocation2 + $0xc8] sm:$0x1] %v1316_v58  ;;  %v1136_v62 = vsel %vm8764_vm11, %v1128_v1, %v1135_v52  ;;  %v1309_v19 = vsel %vm8658_vm2, %v1137_v53, %v1308_v36  ;;  %v3428_v57 = vshrl.u32 %v3253_v44, 16  ;;  %v3431_v7 = vshll.u32 %v3253_v44, 16 }
 0x1ea   : > { %1307 = vst [vmem:[#allocation2 + $0xb8] sm:$0xf] %v1136_v62  ;;  %1310 = vst [vmem:[#allocation2 + $0xbc] sm:$0x1] %v1309_v19  ;;  %v3437_v54 = vshll.u32 %v9004_v50, 16  ;;  %v1566_v8 = vsel %vm8708_vm7, %v1561_v34, %v1565_v59  ;;  %v1570_v9 = vor.u32 %v1569_v0, %v1565_v59  ;;  %v3441_v51 = vshrl.u32 %v9004_v50, 16 }
 0x1eb   : > { %v3447_v10 = vshll.u32 %v9014_v61, 16  ;;  %v1575_v60 = vrot.slane %v1573_v2, 5  ;;  %v3430_v15 = vrot.slane %v3428_v57, 4  ;;  %v3433_v4 = vrot.slane %v3431_v7, 5  ;;  %v3258_v43 = vld [vmem:[#allocation2 + $0x68] sm:$0x1] }
 0x1ec   : > { %v3439_v5 = vrot.slane %v3437_v54, 5  ;;  %v1571_v31 = vrot.slane %v1570_v9, 4  ;;  %v3443_v21 = vrot.slane %v3441_v51, 4  ;;  %v1578_v20 = vshrl.u32 %v9021_v46, 16  ;;  %v1336_v1 = vld [vmem:[#allocation2 + $0x6c] sm:$0xf] }
 0x1ed   : > { %v3449_v16 = vrot.slane %v3447_v10, 5  ;;  %v3434_v13 = vor.u32 %v3433_v4, %v3430_v15  ;;  %v1581_v22 = vshll.u32 %v9021_v46, 16  ;;  %v1587_v23 = vshll.u32 %v9027_v3, 16  ;;  %v1337_v52 = vld [vmem:[#allocation2 + $0x70] sm:$0xf] }
 0x1ee   : > { %v1591_v17 = vshrl.u32 %v9027_v3, 16  ;;  %v1576_v24 = vsel %vm8708_vm7, %v1571_v31, %v1575_v60  ;;  %v3444_v27 = vor.u32 %v3443_v21, %v3439_v5  ;;  %v1580_v63 = vrot.slane %v1578_v20, 4  ;;  %v1375_v2 = vld [vmem:[#allocation2 + $0x74] sm:$0x1]  ;;  %v3259_v54 = vld [vmem:[#allocation2 + $0x6c] sm:$0xf] }
 0x1ef   : > { %v1597_v35 = vshll.u32 %v1374_v14, 16  ;;  %v6540_v28 = vcombine.low %v1566_v8, %v1576_v24  ;;  %v3435_v30 = vrot.slane %v3434_v13, 4  ;;  %v1583_v32 = vrot.slane %v1581_v22, 5  ;;  %v9047_v14 = vld [vmem:[#allocation2 + $0x70] sm:$0xf] }
 0x1f0   : > { %v1589_v33 = vrot.slane %v1587_v23, 5  ;;  %v3445_v36 = vrot.slane %v3444_v27, 4  ;;  %v1593_v37 = vrot.slane %v1591_v17, 4  ;;  %v3452_v40 = vshrl.u32 %v3256_v11, 16  ;;  %v9051_v22 = vld [vmem:[#allocation2 + $0x74] sm:$0x1] }
 0x1f1   : > { %v1599_v38 = vrot.slane %v1597_v35, 5  ;;  %7313 = vmatmul.mubr.bf16.gmra.mrb[44].mxu0 %v6540_v28  ;;  %v3440_v41 = vsel %vm8708_vm7, %v3435_v30, %v3439_v5  ;;  %v1584_v42 = vor.u32 %v1583_v32, %v1580_v63  ;;  %v3455_v44 = vshll.u32 %v3256_v11, 16  ;;  %v9054_v24 = vld [vmem:[#allocation2 + $0x78] sm:$0xf]  ;;  %v9058_v30 = vld [vmem:[#allocation2 + $0x7c] sm:$0xf] }
 0x1f2   : > { %v3461_v45 = vshll.u32 %v9035_v26, 16  ;;  %v3450_v47 = vsel %vm8708_vm7, %v3445_v36, %v3449_v16  ;;  %v1594_v49 = vor.u32 %v1593_v37, %v1589_v33  ;;  %v3454_v48 = vrot.slane %v3452_v40, 4  ;;  %v3262_v40 = vld [vmem:[#allocation2 + $0x78] sm:$0xf] }
 0x1f3   : > { %v3465_v6 = vshrl.u32 %v9035_v26, 16  ;;  %v6651_v53 = vcombine.low %v3440_v41, %v3450_v47  ;;  %v1585_v12 = vrot.slane %v1584_v42, 4  ;;  %v3457_v55 = vrot.slane %v3455_v44, 5 }
 0x1f4   : > { %v3463_v56 = vrot.slane %v3461_v45, 5  ;;  %v1595_v58 = vrot.slane %v1594_v49, 4  ;;  %v3471_v62 = vshll.u32 %v3258_v43, 16  ;;  %v1602_v19 = vshrl.u32 %v1336_v1, 16 }
 0x1f5   : > { %v3467_v59 = vrot.slane %v3465_v6, 4  ;;  %7504 = vmatprep.mubr.bf16.mxu1 %v6651_v53  ;;  %v1590_v34 = vsel %vm8708_vm7, %v1585_v12, %v1589_v33  ;;  %v3458_v0 = vor.u32 %v3457_v55, %v3454_v48  ;;  %v1605_v57 = vshll.u32 %v1336_v1, 16 }
 0x1f6   : > { %v1611_v7 = vshll.u32 %v1337_v52, 16  ;;  %v1600_v8 = vsel %vm8708_vm7, %v1595_v58, %v1599_v38  ;;  %v3473_v51 = vrot.slane %v3471_v62, 5  ;;  %v1604_v10 = vrot.slane %v1602_v19, 4  ;;  %v1376_v38 = vld [vmem:[#allocation2 + $0x80] sm:$0x1] }
 0x1f7   : > { %v3468_v9 = vor.u32 %v3467_v59, %v3463_v56  ;;  %v6541_v60 = vcombine.low %v1590_v34, %v1600_v8  ;;  %v3459_v15 = vrot.slane %v3458_v0, 4  ;;  %v1607_v4 = vrot.slane %v1605_v57, 5  ;;  %v9070_v34 = vld [vmem:[#allocation2 + $0x7c] sm:$0xf]  ;;  %v9074_v8 = vld [vmem:[#allocation2 + $0x80] sm:$0x1] }
 0x1f8   : > { %v1613_v5 = vrot.slane %v1611_v7, 5  ;;  %v1615_v31 = vshrl.u32 %v1337_v52, 16  ;;  %v1621_v21 = vshll.u32 %v1375_v2, 16  ;;  %v3476_v16 = vshrl.u32 %v3259_v54, 16 }
 0x1f9   : > { %v3469_v11 = vrot.slane %v3468_v9, 4  ;;  %7316 = vmatprep.mubr.bf16.mxu0 %v6541_v60  ;;  %v3464_v20 = vsel %vm8708_vm7, %v3459_v15, %v3463_v56  ;;  %v1608_v13 = vor.u32 %v1607_v4, %v1604_v10  ;;  %v3479_v23 = vshll.u32 %v3259_v54, 16  ;;  %v9076_v9 = vld [vmem:[#allocation2 + $0x84] sm:$0xf] }
 0x1fa   : > { %v3485_v17 = vshll.u32 %v9047_v14, 16  ;;  %v1617_v63 = vrot.slane %v1615_v31, 4  ;;  %v1623_v35 = vrot.slane %v1621_v21, 5  ;;  %v3478_v28 = vrot.slane %v3476_v16, 4 }
 0x1fb   : > { %v3474_v27 = vsel %vm8708_vm7, %v3469_v11, %v3473_v51  ;;  %v1609_v33 = vrot.slane %v1608_v13, 4  ;;  %v3481_v36 = vrot.slane %v3479_v23, 5  ;;  %v3489_v42 = vshrl.u32 %v9047_v14, 16  ;;  %v9083_v13 = vld [vmem:[#allocation2 + $0x88] sm:$0xf] }
 0x1fc   : > { %v6652_v32 = vcombine.low %v3464_v20, %v3474_v27  ;;  %v3487_v37 = vrot.slane %v3485_v17, 5  ;;  %v1618_v41 = vor.u32 %v1617_v63, %v1613_v5  ;;  %v3495_v43 = vshll.u32 %v9051_v22, 16 }
 0x1fd   : > { %v1626_v44 = vshrl.u32 %v9054_v24, 16  ;;  %v1614_v45 = vsel %vm8708_vm7, %v1609_v33, %v1613_v5  ;;  %v3482_v1 = vor.u32 %v3481_v36, %v3478_v28  ;;  %v1629_v47 = vshll.u32 %v9054_v24, 16  ;;  %v1377_v28 = vld [vmem:[#allocation2 + $0x8c] sm:$0x1] }
 0x1fe   : > { %7505 = vmatmul.mubr.bf16.gmra.mrb[12].mxu1 %v6652_v32  ;;  %v1635_v49 = vshll.u32 %v9058_v30, 16  ;;  %v1619_v48 = vrot.slane %v1618_v41, 4  ;;  %v3491_v6 = vrot.slane %v3489_v42, 4  ;;  %v3497_v52 = vrot.slane %v3495_v43, 5 }
 0x1ff   : > { %v1628_v53 = vrot.slane %v1626_v44, 4  ;;  %v3483_v12 = vrot.slane %v3482_v1, 4  ;;  %v1631_v55 = vrot.slane %v1629_v47, 5  ;;  %v1639_v58 = vshrl.u32 %v9058_v30, 16 }
 0x200   : > { %v1637_v56 = vrot.slane %v1635_v49, 5  ;;  %v1624_v59 = vsel %vm8708_vm7, %v1619_v48, %v1623_v35  ;;  %v3492_v62 = vor.u32 %v3491_v6, %v3487_v37  ;;  %v1645_v19 = vshll.u32 %v1376_v38, 16  ;;  %v3265_v38 = vld [vmem:[#allocation2 + $0x84] sm:$0xf]  ;;  %v9093_v49 = vld [vmem:[#allocation2 + $0x88] sm:$0xf] }
 0x201   : > { %v3500_v0 = vshrl.u32 %v3262_v40, 16  ;;  %v6542_v2 = vcombine.low %v1614_v45, %v1624_v59  ;;  %v3488_v57 = vsel %vm8708_vm7, %v3483_v12, %v3487_v37  ;;  %v1632_v7 = vor.u32 %v1631_v55, %v1628_v53  ;;  %v9095_v53 = vld [vmem:[#allocation2 + $0x8c] sm:$0x1] }
 0x202   : > { %v1641_v54 = vrot.slane %v1639_v58, 4  ;;  %v3493_v51 = vrot.slane %v3492_v62, 4  ;;  %v1647_v10 = vrot.slane %v1645_v19, 5  ;;  %v3503_v15 = vshll.u32 %v3262_v40, 16 }
 0x203   : > { %v3502_v60 = vrot.slane %v3500_v0, 4  ;;  %7317 = vmatmul.mubr.bf16.gmra.mrb[48].mxu0 %v6542_v2  ;;  %v1633_v4 = vrot.slane %v1632_v7, 4  ;;  %v3509_v11 = vshll.u32 %v9070_v34, 16  ;;  %v3513_v31 = vshrl.u32 %v9070_v34, 16 }
 0x204   : > { %v1642_v5 = vor.u32 %v1641_v54, %v1637_v56  ;;  %v3498_v21 = vsel %vm8708_vm7, %v3493_v51, %v3497_v52  ;;  %v3505_v16 = vrot.slane %v3503_v15, 5  ;;  %v3519_v20 = vshll.u32 %v9074_v8, 16 }
 0x205   : > { %v1650_v23 = vshrl.u32 %v9076_v9, 16  ;;  %v6653_v17 = vcombine.low %v3488_v57, %v3498_v21  ;;  %v1638_v27 = vsel %vm8708_vm7, %v1633_v4, %v1637_v56  ;;  %v3511_v35 = vrot.slane %v3509_v11, 5  ;;  %v9100_v57 = vld [vmem:[#allocation2 + $0x90] sm:$0xf] }
 0x206   : > { %v1643_v63 = vrot.slane %v1642_v5, 4  ;;  %v3506_v32 = vor.u32 %v3505_v16, %v3502_v60  ;;  %v3515_v33 = vrot.slane %v3513_v31, 4  ;;  %v3521_v36 = vrot.slane %v3519_v20, 5  ;;  %v9106_v60 = vld [vmem:[#allocation2 + $0x94] sm:$0xf] }
 0x207   : > { %v1652_v37 = vrot.slane %v1650_v23, 4  ;;  %7508 = vmatprep.mubr.bf16.mxu1 %v6653_v17  ;;  %v1653_v41 = vshll.u32 %v9076_v9, 16  ;;  %v1659_v42 = vshll.u32 %v9083_v13, 16  ;;  %v1663_v43 = vshrl.u32 %v9083_v13, 16  ;;  %v1378_v20 = vld [vmem:[#allocation2 + $0x98] sm:$0x1] }
 0x208   : > { %v1648_v40 = vsel %vm8708_vm7, %v1643_v63, %v1647_v10  ;;  %v3507_v45 = vrot.slane %v3506_v32, 4  ;;  %v3516_v1 = vor.u32 %v3515_v33, %v3511_v35  ;;  %v1669_v47 = vshll.u32 %v1377_v28, 16  ;;  %v3268_v28 = vld [vmem:[#allocation2 + $0x90] sm:$0xf] }
 0x209   : > { %v6543_v44 = vcombine.low %v1638_v27, %v1648_v40  ;;  %v1655_v48 = vrot.slane %v1653_v41, 5  ;;  %v1661_v6 = vrot.slane %v1659_v42, 5  ;;  %v1665_v52 = vrot.slane %v1663_v43, 4 }
 0x20a   : > { %v3524_v12 = vshrl.u32 %v3265_v38, 16  ;;  %v3512_v55 = vsel %vm8708_vm7, %v3507_v45, %v3511_v35  ;;  %v3517_v56 = vrot.slane %v3516_v1, 4  ;;  %v1671_v58 = vrot.slane %v1669_v47, 5  ;;  %v9120_v1 = vld [vmem:[#allocation2 + $0x98] sm:$0x1] }
 0x20b   : > { %7320 = vmatprep.mubr.bf16.mxu0 %v6543_v44  ;;  %v3527_v59 = vshll.u32 %v3265_v38, 16  ;;  %v1656_v62 = vor.u32 %v1655_v48, %v1652_v37  ;;  %v1666_v19 = vor.u32 %v1665_v52, %v1661_v6  ;;  %v3533_v2 = vshll.u32 %v9093_v49, 16  ;;  %v9115_v38 = vld [vmem:[#allocation2 + $0x94] sm:$0xf] }
 0x20c   : > { %v3526_v0 = vrot.slane %v3524_v12, 4  ;;  %v3522_v7 = vsel %vm8708_vm7, %v3517_v56, %v3521_v36  ;;  %v3537_v51 = vshrl.u32 %v9093_v49, 16  ;;  %v3543_v10 = vshll.u32 %v9095_v53, 16  ;;  %v9123_v56 = vld [vmem:[#allocation2 + $0x9c] sm:$0xf] }
 0x20d   : > { %v3529_v54 = vrot.slane %v3527_v59, 5  ;;  %v6654_v15 = vcombine.low %v3512_v55, %v3522_v7  ;;  %v1657_v4 = vrot.slane %v1656_v62, 4  ;;  %v1667_v5 = vrot.slane %v1666_v19, 4 }
 0x20e   : > { %v3535_v11 = vrot.slane %v3533_v2, 5  ;;  %v3539_v21 = vrot.slane %v3537_v51, 4  ;;  %v3545_v16 = vrot.slane %v3543_v10, 5  ;;  %v1674_v23 = vshrl.u32 %v9100_v57, 16 }
 0x20f   : > { %v3530_v31 = vor.u32 %v3529_v54, %v3526_v0  ;;  %7509 = vmatmul.mubr.bf16.gmra.mrb[16].mxu1 %v6654_v15  ;;  %v1662_v17 = vsel %vm8708_vm7, %v1657_v4, %v1661_v6  ;;  %v1672_v27 = vsel %vm8708_vm7, %v1667_v5, %v1671_v58  ;;  %v1677_v63 = vshll.u32 %v9100_v57, 16  ;;  %v9128_v0 = vld [vmem:[#allocation2 + $0xa0] sm:$0xf] }
 0x210   : > { %v1683_v35 = vshll.u32 %v9106_v60, 16  ;;  %v6544_v32 = vcombine.low %v1662_v17, %v1672_v27  ;;  %v3540_v36 = vor.u32 %v3539_v21, %v3535_v11  ;;  %v1676_v37 = vrot.slane %v1674_v23, 4  ;;  %v1379_v21 = vld [vmem:[#allocation2 + $0xa4] sm:$0x1] }
 0x211   : > { %v3531_v33 = vrot.slane %v3530_v31, 4  ;;  %v1679_v40 = vrot.slane %v1677_v63, 5  ;;  %v1687_v42 = vshrl.u32 %v9106_v60, 16  ;;  %v1693_v43 = vshll.u32 %v1378_v20, 16 }
 0x212   : > { %v1685_v41 = vrot.slane %v1683_v35, 5  ;;  %7321 = vmatmul.mubr.bf16.gmra.mrb[52].mxu0 %v6544_v32  ;;  %v3541_v45 = vrot.slane %v3540_v36, 4  ;;  %v3548_v47 = vshrl.u32 %v3268_v28, 16  ;;  %v3551_v48 = vshll.u32 %v3268_v28, 16  ;;  %v3271_v35 = vld [vmem:[#allocation2 + $0x9c] sm:$0xf] }
 0x213   : > { %v3536_v44 = vsel %vm8708_vm7, %v3531_v33, %v3535_v11  ;;  %v1680_v6 = vor.u32 %v1679_v40, %v1676_v37  ;;  %v1689_v52 = vrot.slane %v1687_v42, 4  ;;  %v1695_v12 = vrot.slane %v1693_v43, 5  ;;  %v9139_v37 = vld [vmem:[#allocation2 + $0xa0] sm:$0xf] }
 0x214   : > { %v3557_v55 = vshll.u32 %v9115_v38, 16  ;;  %v3546_v58 = vsel %vm8708_vm7, %v3541_v45, %v3545_v16  ;;  %v3550_v59 = vrot.slane %v3548_v47, 4  ;;  %v3553_v62 = vrot.slane %v3551_v48, 5  ;;  %v9143_v47 = vld [vmem:[#allocation2 + $0xa4] sm:$0x1] }
 0x215   : > { %v3561_v19 = vshrl.u32 %v9115_v38, 16  ;;  %v6655_v2 = vcombine.low %v3536_v44, %v3546_v58  ;;  %v1681_v7 = vrot.slane %v1680_v6, 4  ;;  %v1690_v54 = vor.u32 %v1689_v52, %v1685_v41 }
 0x216   : > { %v3559_v51 = vrot.slane %v3557_v55, 5  ;;  %v3554_v10 = vor.u32 %v3553_v62, %v3550_v59  ;;  %v3567_v4 = vshll.u32 %v9120_v1, 16  ;;  %v1698_v5 = vshrl.u32 %v9123_v56, 16  ;;  %v9149_v59 = vld [vmem:[#allocation2 + $0xa8] sm:$0xf] }
 0x217   : > { %v3563_v15 = vrot.slane %v3561_v19, 4  ;;  %7512 = vmatprep.mubr.bf16.mxu1 %v6655_v2  ;;  %v1686_v11 = vsel %vm8708_vm7, %v1681_v7, %v1685_v41  ;;  %v1691_v31 = vrot.slane %v1690_v54, 4  ;;  %v1701_v16 = vshll.u32 %v9123_v56, 16  ;;  %v9151_v54 = vld [vmem:[#allocation2 + $0xac] sm:$0xf] }
 0x218   : > { %v1707_v20 = vshll.u32 %v9128_v0, 16  ;;  %v3555_v23 = vrot.slane %v3554_v10, 4  ;;  %v3569_v27 = vrot.slane %v3567_v4, 5  ;;  %v1700_v63 = vrot.slane %v1698_v5, 4  ;;  %v1380_v5 = vld [vmem:[#allocation2 + $0xb0] sm:$0x1] }
 0x219   : > { %v3564_v17 = vor.u32 %v3563_v15, %v3559_v51  ;;  %v1696_v28 = vsel %vm8708_vm7, %v1691_v31, %v1695_v12  ;;  %v1703_v32 = vrot.slane %v1701_v16, 5  ;;  %v1711_v36 = vshrl.u32 %v9128_v0, 16 }
 0x21a   : > { %v1709_v33 = vrot.slane %v1707_v20, 5  ;;  %v6545_v40 = vcombine.low %v1686_v11, %v1696_v28  ;;  %v3560_v41 = vsel %vm8708_vm7, %v3555_v23, %v3559_v51  ;;  %v1717_v43 = vshll.u32 %v1379_v21, 16  ;;  %v3274_v20 = vld [vmem:[#allocation2 + $0xa8] sm:$0xf] }
 0x21b   : > { %v3565_v42 = vrot.slane %v3564_v17, 4  ;;  %v1704_v44 = vor.u32 %v1703_v32, %v1700_v63  ;;  %v1713_v45 = vrot.slane %v1711_v36, 4  ;;  %v3572_v48 = vshrl.u32 %v3271_v35, 16 }
 0x21c   : > { %v3575_v6 = vshll.u32 %v3271_v35, 16  ;;  %7324 = vmatprep.mubr.bf16.mxu0 %v6545_v40  ;;  %v1719_v12 = vrot.slane %v1717_v43, 5  ;;  %v3581_v55 = vshll.u32 %v9139_v37, 16  ;;  %v3585_v58 = vshrl.u32 %v9139_v37, 16  ;;  %v9159_v35 = vld [vmem:[#allocation2 + $0xac] sm:$0xf] }
 0x21d   : > { %v3570_v52 = vsel %vm8708_vm7, %v3565_v42, %v3569_v27  ;;  %v1705_v19 = vrot.slane %v1704_v44, 4  ;;  %v1714_v2 = vor.u32 %v1713_v45, %v1709_v33  ;;  %v3574_v7 = vrot.slane %v3572_v48, 4 }
 0x21e   : > { %v6656_v62 = vcombine.low %v3560_v41, %v3570_v52  ;;  %v3577_v51 = vrot.slane %v3575_v6, 5  ;;  %v3583_v10 = vrot.slane %v3581_v55, 5  ;;  %v3587_v15 = vrot.slane %v3585_v58, 4 }
 0x21f   : > { %v3591_v4 = vshll.u32 %v9143_v47, 16  ;;  %v1710_v11 = vsel %vm8708_vm7, %v1705_v19, %v1709_v33  ;;  %v1715_v31 = vrot.slane %v1714_v2, 4  ;;  %v1722_v21 = vshrl.u32 %v9149_v59, 16  ;;  %v9171_v19 = vld [vmem:[#allocation2 + $0xb4] sm:$0xf] }
 0x220   : > { %7513 = vmatmul.mubr.bf16.gmra.mrb[20].mxu1 %v6656_v62  ;;  %v1725_v16 = vshll.u32 %v9149_v59, 16  ;;  %v3578_v23 = vor.u32 %v3577_v51, %v3574_v7  ;;  %v3588_v17 = vor.u32 %v3587_v15, %v3583_v10  ;;  %v1731_v63 = vshll.u32 %v9151_v54, 16  ;;  %10379 = vst [vmem:[#allocation16_spill] sm:$0xff] %v9171_v19  ;;  %v9173_v2 = vld [vmem:[#allocation2 + $0x1c] sm:$0xf] }
 0x221   : > { %v3593_v27 = vrot.slane %v3591_v4, 5  ;;  %v1720_v28 = vsel %vm8708_vm7, %v1715_v31, %v1719_v12  ;;  %v1724_v32 = vrot.slane %v1722_v21, 4  ;;  %v1735_v33 = vshrl.u32 %v9151_v54, 16  ;;  %v9168_v12 = vld [vmem:[#allocation2 + $0xb0] sm:$0x1] }
 0x222   : > { %v1727_v36 = vrot.slane %v1725_v16, 5  ;;  %v6546_v40 = vcombine.low %v1710_v11, %v1720_v28  ;;  %v3579_v41 = vrot.slane %v3578_v23, 4  ;;  %v3589_v42 = vrot.slane %v3588_v17, 4  ;;  %v1381_v16 = vld [vmem:[#allocation2 + $0xbc] sm:$0x1] }
 0x223   : > { %v1733_v43 = vrot.slane %v1731_v63, 5  ;;  %v1737_v45 = vrot.slane %v1735_v33, 4  ;;  %v1741_v48 = vshll.u32 %v1380_v5, 16  ;;  %v3596_v6 = vshrl.u32 %v3274_v20, 16  ;;  %v9176_v5 = vld [vmem:[#allocation2 + $0xb8] sm:$0xf] }
 0x224   : > { %v1728_v44 = vor.u32 %v1727_v36, %v1724_v32  ;;  %7325 = vmatmul.mubr.bf16.gmra.mrb[56].mxu0 %v6546_v40  ;;  %v3584_v52 = vsel %vm8708_vm7, %v3579_v41, %v3583_v10  ;;  %v3594_v55 = vsel %vm8708_vm7, %v3589_v42, %v3593_v27  ;;  %v3599_v58 = vshll.u32 %v3274_v20, 16  ;;  %10380 = vst [vmem:[#allocation17_spill] sm:$0xff] %v9176_v5  ;;  %v3277_v63 = vld [vmem:[#allocation2 + $0xb4] sm:$0xf] }
 0x225   : > { %v3605_v62 = vshll.u32 %v9159_v35, 16  ;;  %v4062_v7 = vrot.slane %v9173_v2, 5  ;;  %v6657_v51 = vcombine.low %v3584_v52, %v3594_v55  ;;  %v1738_v4 = vor.u32 %v1737_v45, %v1733_v43  ;;  %v9188_v55 = vld [vmem:[#allocation2 + $0xb8] sm:$0xf] }
 0x226   : > { %v1729_v15 = vrot.slane %v1728_v44, 4  ;;  %v3598_v10 = vrot.slane %v3596_v6, 4  ;;  %v3601_v11 = vrot.slane %v3599_v58, 5  ;;  %v3609_v21 = vshrl.u32 %v9159_v35, 16 }
 0x227   : > { %v3607_v31 = vrot.slane %v3605_v62, 5  ;;  %7516 = vmatprep.mubr.bf16.mxu1 %v6657_v51  ;;  %v1739_v20 = vrot.slane %v1738_v4, 4  ;;  %v1743_v23 = vrot.slane %v1741_v48, 5  ;;  %v3615_v17 = vshll.u32 %v9168_v12, 16 }
 0x228   : > { %v1746_v27 = vshrl.u32 %v9171_v19, 16  ;;  %v3602_v28 = vor.u32 %v3601_v11, %v3598_v10  ;;  %v3611_v32 = vrot.slane %v3609_v21, 4  ;;  %v1749_v36 = vshll.u32 %v9171_v19, 16  ;;  %v8209_v19 = vld [vmem:[#allocation2 + $0x44] sm:$0x1] }
 0x229   : > { %v1755_v33 = vshll.u32 %v9176_v5, 16  ;;  %v1734_v40 = vsel %vm8708_vm7, %v1729_v15, %v1733_v43  ;;  %v1744_v41 = vsel %vm8708_vm7, %v1739_v20, %v1743_v23  ;;  %v1759_v44 = vshrl.u32 %v9176_v5, 16  ;;  %v9192_v23 = vld [vmem:[#allocation2 + $0xbc] sm:$0x1] }
 0x22a   : > { %v1748_v42 = vrot.slane %v1746_v27, 4  ;;  %v6547_v45 = vcombine.low %v1734_v40, %v1744_v41  ;;  %v3603_v48 = vrot.slane %v3602_v28, 4  ;;  %v3612_v6 = vor.u32 %v3611_v32, %v3607_v31  ;;  %v3280_v32 = vld [vmem:[#allocation2 + $0xc0] sm:$0xf] }
 0x22b   : > { %v1751_v52 = vrot.slane %v1749_v36, 5  ;;  %v1757_v58 = vrot.slane %v1755_v33, 5  ;;  %v1761_v62 = vrot.slane %v1759_v44, 4  ;;  %v1765_v51 = vshll.u32 %v1381_v16, 16 }
 0x22c   : > { %v3620_v4 = vshrl.u32 %v3277_v63, 16  ;;  %7328 = vmatprep.mubr.bf16.mxu0 %v6547_v45  ;;  %v3613_v10 = vrot.slane %v3612_v6, 4  ;;  %v3617_v11 = vrot.slane %v3615_v17, 5  ;;  %v3623_v15 = vshll.u32 %v3277_v63, 16  ;;  %v9198_v17 = vld [vmem:[#allocation2 + $0xc4] sm:$0xf] }
 0x22d   : > { %v1752_v43 = vor.u32 %v1751_v52, %v1748_v42  ;;  %v3608_v21 = vsel %vm8708_vm7, %v3603_v48, %v3607_v31  ;;  %v1762_v20 = vor.u32 %v1761_v62, %v1757_v58  ;;  %v3629_v28 = vshll.u32 %v9188_v55, 16 }
 0x22e   : > { %v3622_v27 = vrot.slane %v3620_v4, 4  ;;  %v3618_v36 = vsel %vm8708_vm7, %v3613_v10, %v3617_v11  ;;  %v3625_v33 = vrot.slane %v3623_v15, 5  ;;  %v3633_v40 = vshrl.u32 %v9188_v55, 16 }
 0x22f   : > { %v1753_v16 = vrot.slane %v1752_v43, 4  ;;  %v6658_v63 = vcombine.low %v3608_v21, %v3618_v36  ;;  %v1763_v41 = vrot.slane %v1762_v20, 4  ;;  %v1767_v42 = vrot.slane %v1765_v51, 5  ;;  %v9206_v51 = vld [vmem:[#allocation2 + $0xc8] sm:$0x1] }
 0x230   : > { %v3631_v31 = vrot.slane %v3629_v28, 5  ;;  %v3626_v44 = vor.u32 %v3625_v33, %v3622_v27  ;;  %v3635_v45 = vrot.slane %v3633_v40, 4  ;;  %v3639_v48 = vshll.u32 %v9192_v23, 16 }
 0x231   : > { %v3644_v6 = vshrl.u32 %v3280_v32, 16  ;;  %7517 = vmatmul.mubr.bf16.gmra.mrb[24].mxu1 %v6658_v63  ;;  %v1758_v52 = vsel %vm8708_vm7, %v1753_v16, %v1757_v58  ;;  %v1768_v62 = vsel %vm8708_vm7, %v1763_v41, %v1767_v42  ;;  %v3647_v4 = vshll.u32 %v3280_v32, 16  ;;  %v8190_v32 = vld [vmem:[#allocation2 + $0x20] sm:$0x1]  ;;  %v3990_v42 = vld [vmem:[#allocation2 + $0x18] sm:$0xe] }
 0x232   : > { %v3653_v10 = vshll.u32 %v9198_v17, 16  ;;  %v6548_v11 = vcombine.low %v1758_v52, %v1768_v62  ;;  %v3627_v43 = vrot.slane %v3626_v44, 4  ;;  %v3636_v15 = vor.u32 %v3635_v45, %v3631_v31  ;;  %v8191_v52 = vld [vmem:[#allocation2 + $0x10] sm:$0xf] }
 0x233   : > { %v3646_v21 = vrot.slane %v3644_v6, 4  ;;  %v4064_v20 = vrot.slane %v4062_v7, 4  ;;  %v3649_v27 = vrot.slane %v3647_v4, 5  ;;  %v3657_v36 = vshrl.u32 %v9198_v17, 16  ;;  %v3989_v6 = vld [vmem:[#allocation2 + $0xc] sm:$0xe] }
 0x234   : > { %v3655_v28 = vrot.slane %v3653_v10, 5  ;;  %7329 = vmatmul.mubr.bf16.gmra.mrb[60].mxu0 %v6548_v11  ;;  %v3637_v58 = vrot.slane %v3636_v15, 4  ;;  %v3641_v16 = vrot.slane %v3639_v48, 5  ;;  %v4065_v33 = vrot.slane %v8190_v32, 5  ;;  %v8192_v4 = vld [vmem:[#allocation2] sm:$0xf] }
 0x235   : > { %v3650_v40 = vor.u32 %v3649_v27, %v3646_v21  ;;  %v3659_v63 = vrot.slane %v3657_v36, 4  ;;  %v3663_v41 = vshll.u32 %v9206_v51, 16  ;;  %v3632_v44 = vsel %vm8708_vm7, %v3627_v43, %v3631_v31  ;;  %v9216_v48 = vld [vmem:[#allocation2 + $0x4] sm:$0xf]  ;;  %v8194_v31 = vld [vmem:[#allocation2 + $0x14] sm:$0x1] }
 0x236   : > { %v3642_v45 = vsel %vm8708_vm7, %v3637_v58, %v3641_v16  ;;  %v4055_v62 = vrot.slane %v8191_v52, 5  ;;  %v6557_v10 = vcombine.low %v8192_v4, %v9216_v48  ;;  %v4058_v43 = vrot.slane %v8194_v31, 5  ;;  %v9231_v52 = vld [vmem:[#allocation2 + $0x10] sm:$0xf] }
 0x237   : > { %v6659_v11 = vcombine.low %v3632_v44, %v3642_v45  ;;  %v3651_v15 = vrot.slane %v3650_v40, 4  ;;  %v3660_v21 = vor.u32 %v3659_v63, %v3655_v28  ;;  %v6670_v58 = vrot.slane %v3990_v42, 9  ;;  %v8195_v45 = vld [vmem:[#allocation2 + $0xc] sm:$0xf] }
 0x238   : > { %v4057_v36 = vrot.slane %v4055_v62, 4  ;;  %7348 = vmatprep.mubr.bf16.mxu0 %v6557_v10  ;;  %v9227_v16 = vsel %vm9221_vm14, %v4064_v20, %v4065_v33  ;;  %v3665_v44 = vrot.slane %v3663_v41, 5  ;;  %v6669_v40 = vrot.slane %v3989_v6, 9  ;;  %v8197_v10 = vld [vmem:[#allocation2 + $0x28] sm:$0xf]  ;;  %v8117_v33 = vld [vmem:[#allocation8 + $0x88] sm:$0xff]  }
 0x239   : > { %7520 = vmatprep.mubr.bf16.mxu1 %v6659_v11  ;;  %v3661_v32 = vrot.slane %v3660_v21, 4  ;;  %v6558_v4 = vcombine.low %v8195_v45, %v9231_v52  ;;  %v4063_v42 = vsel %vm9221_vm14, %v6670_v58, %v4062_v7  ;;  %v4069_v20 = vrot.slane %v8197_v10, 5  ;;  %v8198_v11 = vld [vmem:[#allocation2 + $0x18] sm:$0xf]  ;;  %v9242_v21 = vld [vmem:[#allocation2 + $0x1c] sm:$0xf] }
 0x23a   : > { %v4059_v63 = vsel %vm9221_vm14, %v4057_v36, %v4058_v43  ;;  %v3656_v41 = vsel %vm8708_vm7, %v3651_v15, %v3655_v28  ;;  %v6559_v31 = vcombine.low %v8198_v11, %v9242_v21  ;;  %v6686_v43 = vcombine.low %v4063_v42, %v9227_v16  ;;  %v8119_v15 = vld [vmem:[#allocation8 + $0x90] sm:$0xff]   ;;  %v3991_v58 = vld [vmem:[#allocation2 + $0x24] sm:$0xe]  ;;  %v8201_v45 = vld [vmem:[#allocation2 + $0x40] sm:$0xf] }
 0x23b   : > { %v3666_v6 = vsel %vm8708_vm7, %v3661_v32, %v3665_v44  ;;  %v4056_v7 = vsel %vm9221_vm14, %v6669_v40, %v4055_v62  ;;  %v4071_v28 = vrot.slane %v4069_v20, 4  ;;  %v8200_v32 = vld [vmem:[#allocation2 + $0x34] sm:$0xf]  ;;  %v4083_v10 = vrot.slane %v8201_v45, 5  ;;  %v8202_v16 = vld [vmem:[#allocation2 + $0x2c] sm:$0x1] }
 0x23c   : > { %v6660_v2 = vcombine.low %v3656_v41, %v3666_v6  ;;  %7349 = vmatmul.mubr.bf16.vlgmr.msra.gmra.mrb[32].mxu0 %v6558_v4  ;;  %v6685_v36 = vcombine.low %v4056_v7, %v4059_v63  ;;  %v4076_v44 = vrot.slane %v8200_v32, 5  ;;  %v4072_v42 = vrot.slane %v8202_v16, 5  ;;  %v8203_v40 = vld [vmem:[#allocation2 + $0x24] sm:$0xf]  ;;  %v9251_v63 = vld [vmem:[#allocation2 + $0x28] sm:$0xf] }
 0x23d   : > { %7352 = vmatprep.mubr.bf16.mxu0 %v6559_v31  ;;  %7381 = vmatpush3.bf16.msra.mxu0 %v8999_v18  ;;  %v6671_v41 = vrot.slane %v3991_v58, 9  ;;  %10383 = vst [vmem:[#allocation18_spill] sm:$0xff] %v9251_v63  ;;  %v6560_v18 = vcombine.low %v8203_v40, %v9251_v63  ;;  %v3992_v4 = vld [vmem:[#allocation2 + $0x30] sm:$0xe]  ;;  %v8105_v11 = vld [vmem:[#allocation8 + $0x188] sm:$0xff]   ;;  %v4079_v63 = vrot.slane %v8208_v39, 5 }
 0x23e   : > { %7521 = vmatmul.mubr.bf16.gmra.mrb[28].mxu1 %v6660_v2  ;;  %7382 = vmatprep.subr.bf16.mxu0 %v8117_v33  ;;  %v4073_v62 = vsel %vm9221_vm14, %v4071_v28, %v4072_v42  ;;  %v8122_v6 = vld [vmem:[#allocation8 + $0x98] sm:$0xff]   ;;  %v3993_v28 = vld [vmem:[#allocation2 + $0x3c] sm:$0xe]  ;;  %v3994_v32 = vld [vmem:[#allocation2 + $0x48] sm:$0xe]  ;;  %v4097_v42 = vrot.slane %v9004_v50, 5 }
 0x23f   : > { %7540 = vmatprep.mubr.bf16.mxu1 %v6685_v36  ;;  %v8205_v31 = vld [vmem:[#allocation2 + $0x30] sm:$0xf]  ;;  %v9254_v2 = vld [vmem:[#allocation2 + $0x34] sm:$0xf]  ;;  %v4078_v36 = vrot.slane %v4076_v44, 4  ;;  %v4070_v58 = vsel %vm9221_vm14, %v6671_v41, %v4069_v20  ;;  %v6672_v29 = vrot.slane %v3992_v4, 9 }
 0x240   : > { %10384 = vst [vmem:[#allocation19_spill] sm:$0xff] %v9254_v2  ;;  %v6561_v7 = vcombine.low %v8205_v31, %v9254_v2  ;;  %v8207_v45 = vld [vmem:[#allocation2 + $0x4c] sm:$0xf]  ;;  %v6687_v40 = vcombine.low %v4070_v58, %v4073_v62  ;;  %v4086_v5 = vrot.slane %v8209_v19, 5  ;;  %v3995_v31 = vld [vmem:[#allocation2 + $0x54] sm:$0xe] }
 0x241   : > { %7383 = vmatpush3.bf16.msra.mxu0 %v8117_v33  ;;  %v4085_v33 = vrot.slane %v4083_v10, 4  ;;  %v4090_v16 = vrot.slane %v8207_v45, 5  ;;  %v8210_v2 = vld [vmem:[#allocation2 + $0x3c] sm:$0xf]  ;;  %v8212_v41 = vld [vmem:[#allocation2 + $0x48] sm:$0xf]  ;;  %v4077_v39 = vsel %vm9221_vm14, %v6672_v29, %v4076_v44  ;;  %v4080_v19 = vsel %vm9221_vm14, %v4078_v36, %v4079_v63 }
 0x242   : > { %7384 = vmatprep.subr.bf16.mxu0 %v8119_v15  ;;  %v6562_v20 = vcombine.low %v8210_v2, %v9260_v25  ;;  %v8124_v62 = vld [vmem:[#allocation8 + $0xa0] sm:$0xff]   ;;  %v8108_v2 = vld [vmem:[#allocation8 + $0x190] sm:$0xff]   ;;  %v6675_v45 = vrot.slane %v3995_v31, 9  ;;  %v4100_v29 = vrot.slane %v9014_v61, 5  ;;  %v4125_v44 = vrot.slane %v9093_v49, 5 }
 0x243   : > { %v8214_v4 = vld [vmem:[#allocation8 + $0x180] sm:$0xff]   ;;  %v4092_v58 = vrot.slane %v4090_v16, 4  ;;  %v6688_v63 = vcombine.low %v4077_v39, %v4080_v19  ;;  %v4128_v39 = vrot.slane %v9095_v53, 5  ;;  %v6565_v19 = vcombine.low %v9021_v46, %v9027_v3 }
 0x244   : > { %7353 = vmatmul.mubr.bf16.gmra.mrb[36].mxu0 %v6560_v18  ;;  %v9263_v18 = vld [vmem:[#allocation2 + $0x4c] sm:$0xf]  ;;  %v9284_v31 = vld [vmem:[#allocation2 + $0x58] sm:$0xf]  ;;  %v4104_v53 = vrot.slane %v9035_v26, 5 }
 0x245   : > { %7356 = vmatprep.mubr.bf16.mxu0 %v6561_v7  ;;  %7385 = vmatpush3.bf16.msra.mxu0 %v8119_v15  ;;  %10386 = vst [vmem:[#allocation21_spill] sm:$0xff] %v9263_v18  ;;  %v6563_v50 = vcombine.low %v8212_v41, %v9263_v18  ;;  %v4087_v15 = vsel %vm9221_vm14, %v4085_v33, %v4086_v5  ;;  %v6674_v7 = vrot.slane %v3994_v32, 9  ;;  %v4099_v41 = vrot.slane %v4097_v42, 4  ;;  %v3999_v18 = vld [vmem:[#allocation2 + $0x84] sm:$0xe] }
 0x246   : > { %7541 = vmatmul.mubr.bf16.vlgmr.msra.gmra.mrb[0].mxu1 %v6686_v43  ;;  %7386 = vmatprep.subr.bf16.mxu0 %v8122_v6  ;;  %v6673_v43 = vrot.slane %v3993_v28, 9  ;;  %v9282_v33 = vsel %vm9221_vm14, %v6675_v45, %v4097_v42  ;;  %v4000_v28 = vld [vmem:[#allocation2 + $0x90] sm:$0xe]  ;;  %v8216_v32 = vld [vmem:[#allocation2 + $0x54] sm:$0xf]  ;;  %v6679_v49 = vrot.slane %v3999_v18, 9 }
 0x247   : > { %7573 = vmatpush3.bf16.msra.mxu1 %v8214_v4  ;;  %7544 = vmatprep.mubr.bf16.mxu1 %v6687_v40  ;;  %v8215_v4 = vld [vmem:[#allocation2 + $0x50] sm:$0x1]  ;;  %v9278_v5 = vsel %vm9221_vm14, %v6674_v7, %v4090_v16  ;;  %v6564_v61 = vcombine.low %v8216_v32, %v9284_v31  ;;  %v9294_v42 = vsel %vm9221_vm14, %v4099_v41, %v4100_v29  ;;  %v4001_v18 = vld [vmem:[#allocation2 + $0x9c] sm:$0xe]  ;;  %v4002_v7 = vld [vmem:[#allocation2 + $0xa8] sm:$0xe] }
 0x248   : > { %7574 = vmatprep.subr.bf16.mxu1 %v8105_v11  ;;  %v4084_v40 = vsel %vm9221_vm14, %v6673_v43, %v4083_v10  ;;  %v4093_v25 = vrot.slane %v8215_v4, 5  ;;  %v8127_v10 = vld [vmem:[#allocation8 + $0xa8] sm:$0xff]   ;;  %v4132_v43 = vrot.slane %v9115_v38, 5  ;;  %v4135_v38 = vrot.slane %v9120_v1, 5  ;;  %v8115_v1 = vld [vmem:[#allocation8 + $0x1a0] sm:$0xff]  }
 0x249   : > { %7387 = vmatpush3.bf16.msra.mxu0 %v8122_v6  ;;  %v6689_v36 = vcombine.low %v4084_v40, %v4087_v15  ;;  %v4127_v6 = vrot.slane %v4125_v44, 4  ;;  %v6680_v15 = vrot.slane %v4000_v28, 9  ;;  %v6681_v40 = vrot.slane %v4001_v18, 9  ;;  %v3998_v26 = vld [vmem:[#allocation2 + $0x78] sm:$0xe] }
 0x24a   : > { %7388 = vmatprep.subr.bf16.mxu0 %v8124_v62  ;;  %v9290_v16 = vsel %vm9221_vm14, %v4092_v58, %v4093_v25  ;;  %v4134_v3 = vrot.slane %v4132_v43, 4  ;;  %v8129_v58 = vld [vmem:[#allocation8 + $0xb0] sm:$0xff]   ;;  %v4142_v29 = vrot.slane %v9143_v47, 5  ;;  %v4160_v18 = vrot.slane %v9198_v17, 5 }
 0x24b   : > { %7575 = vmatpush3.bf16.msra.mxu1 %v8105_v11  ;;  %v8111_v11 = vld [vmem:[#allocation8 + $0x198] sm:$0xff]   ;;  %v9306_v25 = vsel %vm9221_vm14, %v4127_v6, %v4128_v39  ;;  %v6690_v45 = vcombine.low %v9278_v5, %v9290_v16  ;;  %v9318_v41 = vsel %vm9221_vm14, %v6680_v15, %v4132_v43  ;;  %v6682_v5 = vrot.slane %v4002_v7, 9  ;;  %v4004_v16 = vld [vmem:[#allocation2 + $0xc0] sm:$0xe] }
 0x24c   : > { %7357 = vmatmul.mubr.bf16.gmra.mrb[40].mxu0 %v6562_v20  ;;  %7576 = vmatprep.subr.bf16.mxu1 %v8108_v2  ;;  %v9302_v20 = vsel %vm9221_vm14, %v6679_v49, %v4125_v44  ;;  %v4146_v44 = vrot.slane %v9159_v35, 5  ;;  %v4149_v35 = vrot.slane %v9168_v12, 5  ;;  %v8132_v49 = vld [vmem:[#allocation8 + $0xb8] sm:$0xff]   ;;  %v8120_v43 = vld [vmem:[#allocation8 + $0x1a8] sm:$0xff]   ;;  %v4163_v7 = vrot.slane %v9206_v51, 5 }
 0x24d   : > { %7360 = vmatprep.mubr.bf16.mxu0 %v6563_v50  ;;  %7389 = vmatpush3.bf16.msra.mxu0 %v8124_v62  ;;  %v6695_v46 = vcombine.low %v9302_v20, %v9306_v25  ;;  %v4139_v50 = vrot.slane %v9139_v37, 5  ;;  %v6691_v62 = vcombine.low %v9282_v33, %v9294_v42  ;;  %v9322_v37 = vsel %vm9221_vm14, %v4134_v3, %v4135_v38  ;;  %v3996_v38 = vld [vmem:[#allocation2 + $0x60] sm:$0xe] }
 0x24e   : > { %7545 = vmatmul.mubr.bf16.gmra.mrb[4].mxu1 %v6688_v63  ;;  %7390 = vmatprep.subr.bf16.mxu0 %v8127_v10  ;;  %v4111_v63 = vrot.slane %v9047_v14, 5  ;;  %v4153_v33 = vrot.slane %v9188_v55, 5  ;;  %v4148_v47 = vrot.slane %v4146_v44, 4  ;;  %v4106_v42 = vrot.slane %v4104_v53, 4 }
 0x24f   : > { %7548 = vmatprep.mubr.bf16.mxu1 %v6689_v36  ;;  %7577 = vmatpush3.bf16.msra.mxu1 %v8108_v2  ;;  %v4141_v4 = vrot.slane %v4139_v50, 4  ;;  %v4003_v2 = vld [vmem:[#allocation2 + $0xb4] sm:$0xe]  ;;  %v6696_v36 = vcombine.low %v9318_v41, %v9322_v37  ;;  %v9332_v28 = vsel %vm9221_vm14, %v6681_v40, %v4139_v50  ;;  %v9346_v12 = vsel %vm9221_vm14, %v6682_v5, %v4146_v44  ;;  %v9368_v40 = vld [vmem:[#allocation8 + $0xc0] sm:$0xff]   ;;  %v3997_v44 = vld [vmem:[#allocation2 + $0x6c] sm:$0xe] }
 0x250   : > { %7578 = vmatprep.subr.bf16.mxu1 %v8111_v11  ;;  %v6683_v39 = vrot.slane %v4003_v2, 9  ;;  %v4155_v55 = vrot.slane %v4153_v33, 4  ;;  %v4162_v50 = vrot.slane %v4160_v18, 4  ;;  %v4114_v2 = vrot.slane %v9051_v22, 5  ;;  %v10388_v41 = vld [vmem:[#allocation17_spill] sm:$0xff]  ;;  %v10389_v37 = vld [vmem:[#allocation16_spill] sm:$0xff] }
 0x251   : > { %7391 = vmatpush3.bf16.msra.mxu0 %v8127_v10  ;;  %v9336_v32 = vsel %vm9221_vm14, %v4141_v4, %v4142_v29  ;;  %v4156_v10 = vrot.slane %v9192_v23, 5  ;;  %v4113_v23 = vrot.slane %v4111_v63, 4  ;;  %v8218_v4 = vld [vmem:[#allocation2 + $0x68] sm:$0x1]  ;;  %v6676_v51 = vrot.slane %v3996_v38, 9 }
 0x252   : > { %7392 = vmatprep.subr.bf16.mxu0 %v8129_v58  ;;  %v6697_v6 = vcombine.low %v9332_v28, %v9336_v32  ;;  %v9359_v15 = vsel %vm9221_vm14, %v6683_v39, %v4153_v33  ;;  %v4107_v29 = vrot.slane %v8218_v4, 5  ;;  %v9377_v5 = vsel %vm9221_vm14, %v4162_v50, %v4163_v7  ;;  %v9386_v39 = vld [vmem:[#allocation2 + $0x70] sm:$0xf]  ;;  %v2366_v32 = vld [vmem:[#allocation2 + $0x18] sm:$0xe] }
 0x253   : > { %7579 = vmatpush3.bf16.msra.mxu1 %v8111_v11  ;;  %v9350_v11 = vsel %vm9221_vm14, %v4148_v47, %v4149_v35  ;;  %v9363_v3 = vsel %vm9221_vm14, %v4155_v55, %v4156_v10  ;;  %v4118_v33 = vrot.slane %v9070_v34, 5  ;;  %v6677_v22 = vrot.slane %v3997_v44, 9  ;;  %v8219_v35 = vld [vmem:[#allocation2 + $0x6c] sm:$0xf] }
 0x254   : > { %7361 = vmatmul.mubr.bf16.gmra.mrb[44].mxu0 %v6564_v61  ;;  %7580 = vmatprep.subr.bf16.mxu1 %v8115_v1  ;;  %v6698_v61 = vcombine.low %v9346_v12, %v9350_v11  ;;  %v6699_v17 = vcombine.low %v9359_v15, %v9363_v3  ;;  %v4115_v47 = vsel %vm9221_vm14, %v4113_v23, %v4114_v2  ;;  %v2365_v44 = vld [vmem:[#allocation2 + $0xc] sm:$0xe]  ;;  %v2367_v15 = vld [vmem:[#allocation2 + $0x24] sm:$0xe] }
 0x255   : > { %7364 = vmatprep.mubr.bf16.mxu0 %v6565_v19  ;;  %7393 = vmatpush3.bf16.msra.mxu0 %v8129_v58  ;;  %v6684_v19 = vrot.slane %v4004_v16, 9  ;;  %v8125_v58 = vld [vmem:[#allocation8 + $0x1b0] sm:$0xff]   ;;  %v6566_v55 = vcombine.low %v8219_v35, %v9386_v39  ;;  %v4105_v34 = vsel %vm9221_vm14, %v6676_v51, %v4104_v53  ;;  %v6567_v10 = vcombine.low %v9054_v24, %v9058_v30  ;;  %v9401_v24 = vld [vmem:[#allocation8 + $0x1c0] sm:$0xff]   ;;  %v8149_v3 = vld [vmem:[#allocation8 + $0xc8] sm:$0xff]  }
 0x256   : > { %7549 = vmatmul.mubr.bf16.gmra.mrb[8].mxu1 %v6690_v45  ;;  %7394 = vmatprep.subr.bf16.mxu0 %v8132_v49  ;;  %v4112_v16 = vsel %vm9221_vm14, %v6677_v22, %v4111_v63  ;;  %v4120_v23 = vrot.slane %v4118_v33, 4  ;;  %v4121_v53 = vrot.slane %v9074_v8, 5  ;;  %v6678_v30 = vrot.slane %v3998_v26, 9  ;;  %v10391_v22 = vld [vmem:[#allocation19_spill] sm:$0xff] }
 0x257   : > { %7552 = vmatprep.mubr.bf16.mxu1 %v6691_v62  ;;  %7581 = vmatpush3.bf16.msra.mxu1 %v8115_v1  ;;  %v9373_v45 = vsel %vm9221_vm14, %v6684_v19, %v4160_v18  ;;  %v4108_v62 = vsel %vm9221_vm14, %v4106_v42, %v4107_v29  ;;  %v8130_v42 = vld [vmem:[#allocation8 + $0x1b8] sm:$0xff]   ;;  %v6693_v18 = vcombine.low %v4112_v16, %v4115_v47  ;;  %v2417_v8 = vrot.slane %v9216_v48, 5 }
 0x258   : > { %7582 = vmatprep.subr.bf16.mxu1 %v8120_v43  ;;  %v6700_v1 = vcombine.low %v9373_v45, %v9377_v5  ;;  %v4122_v14 = vsel %vm9221_vm14, %v4120_v23, %v4121_v53  ;;  %v6568_v63 = vcombine.low %v9076_v9, %v9083_v13  ;;  %v6569_v38 = vcombine.low %v9100_v57, %v9106_v60  ;;  %v2364_v9 = vld [vmem:[#allocation2] sm:$0xe]  ;;  %v8221_v57 = vld [vmem:[#allocation2 + $0x8] sm:$0x1]  ;;  %v10392_v16 = vld [vmem:[#allocation20_spill] sm:$0xff] }
 0x259   : > { %7395 = vmatpush3.bf16.msra.mxu0 %v8132_v49  ;;  %v6692_v49 = vcombine.low %v4105_v34, %v4108_v62  ;;  %v6570_v13 = vcombine.low %v9123_v56, %v9128_v0  ;;  %v6581_v50 = vrot.slane %v2364_v9, 9  ;;  %v2419_v7 = vrot.slane %v2417_v8, 4  ;;  %v726_v56 = vld [vmem:[#allocation2 + $0xcc] sm:$0x1]  ;;  %v10390_v62 = vld [vmem:[#allocation18_spill] sm:$0xff] }
 0x25a   : > { %7428 = vmatprep.subr.bf16.mxu0 %v9368_v40  ;;  %v2420_v60 = vrot.slane %v8221_v57, 5  ;;  %v6571_v4 = vcombine.low %v9149_v59, %v9151_v54  ;;  %v2424_v0 = vrot.slane %v9231_v52, 5  ;;  %v2431_v59 = vrot.slane %v9242_v21, 5  ;;  %v8223_v52 = vld [vmem:[#allocation2 + $0x20] sm:$0x1] }
 0x25b   : > { %7583 = vmatpush3.bf16.msra.mxu1 %v8120_v43  ;;  %v4119_v43 = vsel %vm9221_vm14, %v6678_v30, %v4118_v33  ;;  %v2418_v48 = vsel %vm9221_vm14, %v6581_v50, %v2417_v8  ;;  %v2434_v21 = vrot.slane %v8223_v52, 5  ;;  %v2438_v33 = vrot.slane %v10390_v62, 5  ;;  %v8224_v23 = vld [vmem:[#allocation2 + $0x2c] sm:$0x1]  ;;  %v8225_v53 = vld [vmem:[#allocation2 + $0x38] sm:$0x1] }
 0x25c   : > { %7365 = vmatmul.mubr.bf16.gmra.mrb[48].mxu0 %v6566_v55  ;;  %7584 = vmatprep.subr.bf16.mxu1 %v8125_v58  ;;  %v6694_v19 = vcombine.low %v4119_v43, %v4122_v14  ;;  %v2421_v20 = vsel %vm9221_vm14, %v2419_v7, %v2420_v60  ;;  %v2426_v29 = vrot.slane %v2424_v0, 4  ;;  %v2433_v2 = vrot.slane %v2431_v59, 4  ;;  %v10393_v14 = vld [vmem:[#allocation21_spill] sm:$0xff]  ;;  %v8226_v5 = vld [vmem:[#allocation2 + $0x44] sm:$0x1] }
 0x25d   : > { %7368 = vmatprep.mubr.bf16.mxu0 %v6567_v10  ;;  %v6597_v54 = vcombine.low %v2418_v48, %v2421_v20  ;;  %v2445_v47 = vrot.slane %v10391_v22, 5  ;;  %v6583_v35 = vrot.slane %v2366_v32, 9  ;;  %v2440_v34 = vrot.slane %v2438_v33, 4  ;;  %v2368_v10 = vld [vmem:[#allocation2 + $0x30] sm:$0xe] }
 0x25e   : > { %7553 = vmatmul.mubr.bf16.gmra.mrb[12].mxu1 %v6692_v49  ;;  %v2435_v55 = vsel %vm9221_vm14, %v2433_v2, %v2434_v21  ;;  %v2441_v26 = vrot.slane %v8224_v23, 5  ;;  %v2448_v30 = vrot.slane %v8225_v53, 5  ;;  %v6584_v43 = vrot.slane %v2367_v15, 9  ;;  %v2370_v57 = vld [vmem:[#allocation2 + $0x48] sm:$0xe]  ;;  %v8135_v32 = vld [vmem:[#allocation2 + $0x30] sm:$0xff]  }
 0x25f   : > { %7556 = vmatprep.mubr.bf16.mxu1 %v6693_v18  ;;  %7585 = vmatpush3.bf16.msra.mxu1 %v8125_v58  ;;  %v8222_v58 = vld [vmem:[#allocation2 + $0x14] sm:$0x1]  ;;  %v2447_v49 = vrot.slane %v2445_v47, 4  ;;  %v8131_v18 = vld [vmem:[#allocation2 + $0x18] sm:$0xff]   ;;  %v2466_v7 = vrot.slane %v9284_v31, 5  ;;  %v8134_v2 = vld [vmem:[#allocation2 + $0x24] sm:$0xff]  }
 0x260   : > { %7586 = vmatprep.subr.bf16.mxu1 %v8130_v42  ;;  %v2427_v28 = vrot.slane %v8222_v58, 5  ;;  %v2442_v8 = vsel %vm9221_vm14, %v2440_v34, %v2441_v26  ;;  %v8136_v58 = vld [vmem:[#allocation8 + $0x1c8] sm:$0xff]   ;;  %v4875_v23 = vld [vmem:[#allocation2 + $0x1c] sm:$0xf]  ;;  %v8233_v53 = vld [vmem:[#allocation2 + $0x74] sm:$0x1] }
 0x261   : > { %v2449_v9 = vsel %vm9221_vm14, %v2447_v49, %v2448_v30  ;;  %v2372_v62 = vld [vmem:[#allocation2 + $0x60] sm:$0xe]  ;;  %v2483_v30 = vrot.slane %v8233_v53, 5  ;;  %v8164_v53 = vld [vmem:[#allocation8 + $0xf8] sm:$0xff]  }
 0x262   : > { %v2428_v51 = vsel %vm9221_vm14, %v2426_v29, %v2427_v28  ;;  %v9475_v29 = vld [vmem:[#allocation2 + $0x7c] sm:$0xf]  ;;  %v6587_v28 = vrot.slane %v2370_v57, 9  ;;  %v4932_v57 = vshll.u32 %v4875_v23, 16 }
 0x263   : > { %7587 = vmatpush3.bf16.msra.mxu1 %v8130_v42  ;;  %v2452_v42 = vrot.slane %v10392_v16, 5  ;;  %v6589_v16 = vrot.slane %v2372_v62, 9 }
 0x264   : > { %7369 = vmatmul.mubr.bf16.gmra.mrb[52].mxu0 %v6568_v63  ;;  %7620 = vmatprep.subr.bf16.mxu1 %v9401_v24  ;;  %v2459_v63 = vrot.slane %v10393_v14, 5  ;;  %v8234_v14 = vld [vmem:[#allocation2 + $0x80] sm:$0x1]  ;;  %v9540_v62 = vrot.slane %v4932_v57, 5 }
 0x265   : > { %7372 = vmatprep.mubr.bf16.mxu0 %v6569_v38  ;;  %v6585_v38 = vrot.slane %v2368_v10, 9  ;;  %v2454_v50 = vrot.slane %v2452_v42, 4  ;;  %v8139_v10 = vld [vmem:[#allocation8 + $0x1d0] sm:$0xff]  }
 0x266   : > { %7557 = vmatmul.mubr.bf16.gmra.mrb[16].mxu1 %v6694_v19  ;;  %v8150_v19 = vld [vmem:[#allocation8 + $0xd0] sm:$0xff]   ;;  %v2461_v60 = vrot.slane %v2459_v63, 4 }
 0x267   : > { %7560 = vmatprep.mubr.bf16.mxu1 %v6695_v46  ;;  %v727_v46 = vsel %vm8658_vm2, 0, %v726_v56  ;;  %v2446_v45 = vsel %vm9221_vm14, %v6585_v38, %v2445_v47  ;;  %v2460_v47 = vsel %vm9221_vm14, %v6587_v28, %v2459_v63  ;;  %v2490_v63 = vrot.slane %v8234_v14, 5 }
 0x268   : > { %728 = vst [vmem:[#allocation2 + $0xcc] sm:$0x1] %v727_v46  ;;  %v6601_v56 = vcombine.low %v2446_v45, %v2449_v9  ;;  %v2371_v46 = vld [vmem:[#allocation2 + $0x54] sm:$0xe] }
 0x26c   : > { %7373 = vmatmul.mubr.bf16.gmra.mrb[56].mxu0 %v6570_v13  ;;  %v2369_v13 = vld [vmem:[#allocation2 + $0x3c] sm:$0xe] }
 0x26d   : > { %7376 = vmatprep.mubr.bf16.mxu0 %v6571_v4  ;;  %v9467_v4 = vld [vmem:[#allocation2 + $0x64] sm:$0xf] }
 0x26e   : > { %7561 = vmatmul.mubr.bf16.gmra.mrb[20].mxu1 %v6696_v36  ;;  %v6572_v36 = vcombine.low %v10389_v37, %v10388_v41  ;;  %v2473_v48 = vrot.slane %v9467_v4, 5  ;;  %v2468_v37 = vrot.slane %v2466_v7, 4  ;;  %v8137_v4 = vld [vmem:[#allocation2 + $0x3c] sm:$0xff]  }
 0x26f   : > { %7564 = vmatprep.mubr.bf16.mxu1 %v6697_v6  ;;  %v6582_v6 = vrot.slane %v2365_v44, 9  ;;  %v2487_v44 = vrot.slane %v9475_v29, 5  ;;  %v8236_v29 = vld [vmem:[#allocation2 + $0x8c] sm:$0x1] }
 0x270   : > { %v9506_v9 = vsel %vm9221_vm14, %v6589_v16, %v2473_v48 }
 0x271   : > { %v2425_v12 = vsel %vm9221_vm14, %v6582_v6, %v2424_v0  ;;  %v6586_v0 = vrot.slane %v2369_v13, 9  ;;  %v8230_v6 = vld [vmem:[#allocation2 + $0x5c] sm:$0x1]  ;;  %v2489_v34 = vrot.slane %v2487_v44, 4 }
 0x272   : > { %v6598_v11 = vcombine.low %v2425_v12, %v2428_v51  ;;  %v2469_v51 = vrot.slane %v8230_v6, 5  ;;  %v8155_v12 = vld [vmem:[#allocation8 + $0xe0] sm:$0xff]  }
 0x273   : > { %v2453_v52 = vsel %vm9221_vm14, %v6586_v0, %v2452_v42  ;;  %v8232_v42 = vld [vmem:[#allocation2 + $0x88] sm:$0xf] }
 0x274   : > { %7377 = vmatmul.mubr.bf16.gmra.mrb[60].mxu0 %v6572_v36  ;;  %v2480_v36 = vrot.slane %v9386_v39, 5 }
 0x275   : > { %7396 = vmatprep.mubr.bf16.mxu0 %v6597_v54  ;;  %v8154_v54 = vld [vmem:[#allocation8 + $0xd8] sm:$0xff]  }
 0x276   : > { %7565 = vmatmul.mubr.bf16.gmra.mrb[24].mxu1 %v6698_v61  ;;  %v2432_v61 = vsel %vm9221_vm14, %v6583_v35, %v2431_v59  ;;  %v8228_v59 = vld [vmem:[#allocation2 + $0x50] sm:$0x1]  ;;  %v6588_v35 = vrot.slane %v2371_v46, 9  ;;  %v2377_v46 = vld [vmem:[#allocation2 + $0x9c] sm:$0xe] }
 0x277   : > { %7568 = vmatprep.mubr.bf16.mxu1 %v6699_v17  ;;  %v6599_v17 = vcombine.low %v2432_v61, %v2435_v55  ;;  %v2462_v31 = vrot.slane %v8228_v59, 5  ;;  %v2373_v55 = vld [vmem:[#allocation2 + $0x6c] sm:$0xe]  ;;  %v8231_v61 = vld [vmem:[#allocation2 + $0x68] sm:$0x1] }
 0x278   : > { %v2476_v15 = vrot.slane %v8231_v61, 5  ;;  %v6590_v13 = vrot.slane %v2373_v55, 9  ;;  %v6594_v55 = vrot.slane %v2377_v46, 9 }
 0x279   : > { %v2463_v21 = vsel %vm9221_vm14, %v2461_v60, %v2462_v31  ;;  %v4936_v60 = vshrl.u32 %v4875_v23, 16 }
 0x27a   : > { %v6603_v49 = vcombine.low %v2460_v47, %v2463_v21  ;;  %v9522_v0 = vsel %vm9221_vm14, %v6590_v13, %v2480_v36  ;;  %v8237_v21 = vld [vmem:[#allocation2 + $0x98] sm:$0x1]  ;;  %v4880_v13 = vld [vmem:[#allocation2 + $0x30] sm:$0xf] }
 0x27b   : > { %v2504_v6 = vrot.slane %v8237_v21, 5 }
 0x27c   : > { %7397 = vmatmul.mubr.bf16.vlgmr.msra.gmra.mrb[32].mxu0 %v6598_v11  ;;  %v9488_v11 = vsel %vm9221_vm14, %v2468_v37, %v2469_v51  ;;  %v9538_v51 = vld [vmem:[#allocation2 + $0xa8] sm:$0xe] }
 0x27d   : > { %7400 = vmatprep.mubr.bf16.mxu0 %v6599_v17  ;;  %7429 = vmatpush3.bf16.msra.mxu0 %v9368_v40  ;;  %v2439_v40 = vsel %vm9221_vm14, %v6584_v43, %v2438_v33  ;;  %v2475_v33 = vrot.slane %v2473_v48, 4  ;;  %v2374_v17 = vld [vmem:[#allocation2 + $0x78] sm:$0xe]  ;;  %v8235_v43 = vld [vmem:[#allocation2 + $0x94] sm:$0xf]  ;;  %v8138_v48 = vld [vmem:[#allocation2 + $0x48] sm:$0xff]  }
 0x27e   : > { %7569 = vmatmul.mubr.bf16.gmra.mrb[28].mxu1 %v6700_v1  ;;  %7430 = vmatprep.subr.bf16.mxu0 %v8149_v3  ;;  %v2455_v1 = vrot.slane %v8226_v5, 5  ;;  %v6600_v20 = vcombine.low %v2439_v40, %v2442_v8  ;;  %v2501_v38 = vrot.slane %v8235_v43, 5  ;;  %v8159_v40 = vld [vmem:[#allocation8 + $0xe8] sm:$0xff]   ;;  %v9514_v5 = vsel %vm9221_vm14, %v2489_v34, %v2490_v63 }
 0x27f   : > { %7588 = vmatprep.mubr.bf16.mxu1 %v8131_v18  ;;  %v2494_v18 = vrot.slane %v8232_v42, 5  ;;  %v9500_v26 = vsel %vm9221_vm14, %v2475_v33, %v2476_v15  ;;  %v4938_v33 = vrot.slane %v4936_v60, 4  ;;  %v4878_v15 = vld [vmem:[#allocation2 + $0x28] sm:$0xf]  ;;  %v8240_v42 = vld [vmem:[#allocation2 + $0xa4] sm:$0x1] }
 0x280   : > { %v9472_v25 = vsel %vm9221_vm14, %v2454_v50, %v2455_v1  ;;  %v6591_v50 = vrot.slane %v2374_v17, 9  ;;  %v2376_v1 = vld [vmem:[#allocation2 + $0x90] sm:$0xe]  ;;  %v8239_v17 = vld [vmem:[#allocation2 + $0xac] sm:$0xf]  ;;  %v6595_v23 = vrot.slane %v9538_v51, 9 }
 0x281   : > { %7431 = vmatpush3.bf16.msra.mxu0 %v8149_v3  ;;  %v6602_v22 = vcombine.low %v2453_v52, %v9472_v25  ;;  %v2482_v3 = vrot.slane %v2480_v36, 4  ;;  %v2496_v31 = vrot.slane %v2494_v18, 4  ;;  %v2503_v25 = vrot.slane %v2501_v38, 4 }
 0x282   : > { %7432 = vmatprep.subr.bf16.mxu0 %v8150_v19  ;;  %v9528_v59 = vsel %vm9221_vm14, %v6591_v50, %v2487_v44  ;;  %v6593_v28 = vrot.slane %v2376_v1, 9  ;;  %v8160_v44 = vld [vmem:[#allocation8 + $0xf0] sm:$0xff]   ;;  %v2515_v34 = vrot.slane %v8239_v17, 5  ;;  %v2522_v63 = vrot.slane %v10388_v41, 5  ;;  %v8140_v50 = vld [vmem:[#allocation2 + $0x54] sm:$0xff]  }
 0x283   : > { %v9510_v45 = vsel %vm9221_vm14, %v2482_v3, %v2483_v30  ;;  %v6607_v36 = vcombine.low %v9528_v59, %v9514_v5  ;;  %v9552_v3 = vsel %vm9221_vm14, %v2503_v25, %v2504_v6  ;;  %v4939_v43 = vor.u32 %v4938_v33, %v9540_v62 }
 0x284   : > { %7401 = vmatmul.mubr.bf16.gmra.mrb[36].mxu0 %v6600_v20  ;;  %v8142_v20 = vld [vmem:[#allocation8 + $0x1d8] sm:$0xff]   ;;  %v6606_v39 = vcombine.low %v9522_v0, %v9510_v45 }
 0x285   : > { %7404 = vmatprep.mubr.bf16.mxu0 %v6601_v56  ;;  %7433 = vmatpush3.bf16.msra.mxu0 %v8150_v19  ;;  %v4874_v19 = vld [vmem:[#allocation2 + $0x18] sm:$0xf]  ;;  %v6605_v56 = vcombine.low %v9506_v9, %v9500_v26  ;;  %v2524_v26 = vrot.slane %v2522_v63, 4  ;;  %v4940_v9 = vrot.slane %v4939_v43, 4  ;;  %v8161_v43 = vld [vmem:[#allocation8 + $0x1f8] sm:$0xff]  }
 0x286   : > { %7589 = vmatmul.mubr.bf16.vlgmr.msra.gmra.mrb[0].mxu1 %v8134_v2  ;;  %7434 = vmatprep.subr.bf16.mxu0 %v8154_v54  ;;  %v4923_v37 = vshrl.u32 %v4874_v19, 16  ;;  %v4926_v2 = vshll.u32 %v4874_v19, 16  ;;  %v4960_v19 = vshrl.u32 %v4878_v15, 16 }
 0x287   : > { %7621 = vmatpush3.bf16.msra.mxu1 %v9401_v24  ;;  %7592 = vmatprep.mubr.bf16.mxu1 %v8135_v32  ;;  %v9496_v24 = vsel %vm9221_vm14, %v6588_v35, %v2466_v7  ;;  %v2375_v7 = vld [vmem:[#allocation2 + $0x84] sm:$0xe]  ;;  %v9548_v35 = vsel %vm9221_vm14, %v6593_v28, %v2501_v38  ;;  %v4956_v38 = vshll.u32 %v4878_v15, 16  ;;  %v8156_v28 = vld [vmem:[#allocation8 + $0x1f0] sm:$0xff]  }
 0x288   : > { %7622 = vmatprep.subr.bf16.mxu1 %v8136_v58  ;;  %v6604_v8 = vcombine.low %v9496_v24, %v9488_v11  ;;  %v4877_v32 = vld [vmem:[#allocation2 + $0x24] sm:$0xf]  ;;  %v4928_v16 = vrot.slane %v4926_v2, 5  ;;  %v6609_v1 = vcombine.low %v9548_v35, %v9552_v3  ;;  %v2517_v11 = vrot.slane %v2515_v34, 4  ;;  %v8241_v24 = vld [vmem:[#allocation2 + $0xb0] sm:$0x1] }
 0x289   : > { %7435 = vmatpush3.bf16.msra.mxu0 %v8154_v54  ;;  %v6592_v54 = vrot.slane %v2375_v7, 9  ;;  %v4947_v30 = vshrl.u32 %v4877_v32, 16  ;;  %v4950_v14 = vshll.u32 %v4877_v32, 16  ;;  %v4974_v2 = vshll.u32 %v4880_v13, 16  ;;  %v4879_v32 = vld [vmem:[#allocation2 + $0x2c] sm:$0x1] }
 0x28a   : > { %7436 = vmatprep.subr.bf16.mxu0 %v8155_v12 }
 0x28b   : > { %7623 = vmatpush3.bf16.msra.mxu1 %v8136_v58  ;;  %v2497_v58 = vrot.slane %v8236_v29, 5  ;;  %v9536_v52 = vsel %vm9221_vm14, %v6592_v54, %v2494_v18  ;;  %v2511_v18 = vrot.slane %v8240_v42, 5  ;;  %v2379_v54 = vld [vmem:[#allocation2 + $0xb4] sm:$0xe]  ;;  %v4949_v25 = vrot.slane %v4947_v30, 4 }
 0x28c   : > { %7405 = vmatmul.mubr.bf16.gmra.mrb[40].mxu0 %v6602_v22  ;;  %7624 = vmatprep.subr.bf16.mxu1 %v8139_v10  ;;  %v8146_v22 = vld [vmem:[#allocation8 + $0x1e0] sm:$0xff]   ;;  %v4952_v46 = vrot.slane %v4950_v14, 5  ;;  %v4962_v29 = vrot.slane %v4960_v19, 4  ;;  %v6596_v33 = vrot.slane %v2379_v54, 9  ;;  %v4966_v30 = vshll.u32 %v4879_v32, 16 }
 0x28d   : > { %7408 = vmatprep.mubr.bf16.mxu0 %v6603_v49  ;;  %7437 = vmatpush3.bf16.msra.mxu0 %v8155_v12  ;;  %v9544_v47 = vsel %vm9221_vm14, %v2496_v31, %v2497_v58  ;;  %v8238_v12 = vld [vmem:[#allocation2 + $0xa0] sm:$0xf]  ;;  %v4925_v49 = vrot.slane %v4923_v37, 4  ;;  %v9571_v31 = vld [vmem:[#allocation2 + $0x34] sm:$0xf]  ;;  %v4971_v37 = vshrl.u32 %v4880_v13, 16 }
 0x28e   : > { %7593 = vmatmul.mubr.bf16.gmra.mrb[4].mxu1 %v8137_v4  ;;  %7438 = vmatprep.subr.bf16.mxu0 %v8159_v40  ;;  %v2508_v61 = vrot.slane %v8238_v12, 5  ;;  %v6608_v7 = vcombine.low %v9536_v52, %v9544_v47  ;;  %v8141_v4 = vld [vmem:[#allocation2 + $0x60] sm:$0xff]   ;;  %v4980_v21 = vshll.u32 %v9571_v31, 16  ;;  %v4984_v6 = vshrl.u32 %v9571_v31, 16  ;;  %v9600_v14 = vld [vmem:[#allocation2 + $0x38] sm:$0x1] }
 0x28f   : > { %7596 = vmatprep.mubr.bf16.mxu1 %v8138_v48  ;;  %7625 = vmatpush3.bf16.msra.mxu1 %v8139_v10  ;;  %v4876_v10 = vld [vmem:[#allocation2 + $0x20] sm:$0x1]  ;;  %v4929_v48 = vor.u32 %v4928_v16, %v4925_v49  ;;  %v4953_v17 = vor.u32 %v4952_v46, %v4949_v25  ;;  %v4990_v41 = vshll.u32 %v9600_v14, 16  ;;  %v9632_v54 = vld [vmem:[#allocation8 + $0x200] sm:$0xff]   ;;  %v9659_v47 = vld [vmem:[#allocation2 + $0x64] sm:$0xf] }
 0x290   : > { %7626 = vmatprep.subr.bf16.mxu1 %v8142_v20  ;;  %v9566_v57 = vsel %vm9221_vm14, %v6594_v55, %v2508_v61  ;;  %v2510_v60 = vrot.slane %v2508_v61, 4  ;;  %v4883_v61 = vld [vmem:[#allocation2 + $0x3c] sm:$0xf]  ;;  %v9591_v49 = vld [vmem:[#allocation2 + $0x40] sm:$0xf]  ;;  %v4986_v19 = vrot.slane %v4984_v6, 4 }
 0x291   : > { %7439 = vmatpush3.bf16.msra.mxu0 %v8159_v40  ;;  %v8151_v40 = vld [vmem:[#allocation8 + $0x1e8] sm:$0xff]   ;;  %v4930_v15 = vrot.slane %v4929_v48, 4  ;;  %v4995_v13 = vshrl.u32 %v4883_v61, 16  ;;  %v5004_v45 = vshll.u32 %v9591_v49, 16  ;;  %v5008_v0 = vshrl.u32 %v9591_v49, 16 }
 0x292   : > { %7440 = vmatprep.subr.bf16.mxu0 %v8160_v44  ;;  %v9579_v58 = vsel %vm9221_vm14, %v2510_v60, %v2511_v18  ;;  %v4954_v59 = vrot.slane %v4953_v17, 4  ;;  %v4968_v48 = vrot.slane %v4966_v30, 5  ;;  %v4892_v17 = vld [vmem:[#allocation2 + $0x60] sm:$0xf]  ;;  %v8148_v30 = vld [vmem:[#allocation2 + $0x90] sm:$0xff]  }
 0x293   : > { %7627 = vmatpush3.bf16.msra.mxu1 %v8142_v20  ;;  %v4942_v20 = vshll.u32 %v4876_v10, 16  ;;  %v4973_v10 = vrot.slane %v4971_v37, 4  ;;  %v6610_v60 = vcombine.low %v9566_v57, %v9579_v58  ;;  %v4935_v5 = vsel %vm8708_vm7, %v4930_v15, %v9540_v62  ;;  %v782_v58 = vld [vmem:[#allocation2 + $0xd4] sm:$0x1]  ;;  %v8246_v42 = vld [vmem:[#allocation2 + $0x2c] sm:$0x1] }
 0x294   : > { %7409 = vmatmul.mubr.bf16.gmra.mrb[44].mxu0 %v6604_v8  ;;  %7628 = vmatprep.subr.bf16.mxu1 %v8146_v22  ;;  %v2518_v8 = vrot.slane %v8241_v24, 5  ;;  %v4997_v46 = vrot.slane %v4995_v13, 4 }
 0x295   : > { %7412 = vmatprep.mubr.bf16.mxu0 %v6605_v56  ;;  %7441 = vmatpush3.bf16.msra.mxu0 %v8160_v44  ;;  %v9575_v56 = vrot.slane %v4956_v38, 5  ;;  %v9583_v44 = vsel %vm9221_vm14, %v6595_v23, %v2515_v34  ;;  %v4944_v12 = vrot.slane %v4942_v20, 5  ;;  %v4976_v34 = vrot.slane %v4974_v2, 5  ;;  %v9630_v20 = vld [vmem:[#allocation2 + $0x4c] sm:$0xf] }
 0x296   : > { %7597 = vmatmul.mubr.bf16.gmra.mrb[8].mxu1 %v8140_v50  ;;  %7442 = vmatprep.subr.bf16.mxu0 %v8164_v53  ;;  %v9589_v51 = vsel %vm9221_vm14, %v2517_v11, %v2518_v8  ;;  %v9605_v38 = vrot.slane %v4980_v21, 5  ;;  %v4998_v50 = vshll.u32 %v4883_v61, 16  ;;  %v4886_v11 = vld [vmem:[#allocation2 + $0x48] sm:$0xf]  ;;  %v9635_v2 = vld [vmem:[#allocation2 + $0x58] sm:$0xf] }
 0x297   : > { %7600 = vmatprep.mubr.bf16.mxu1 %v8141_v4  ;;  %7629 = vmatpush3.bf16.msra.mxu1 %v8146_v22  ;;  %v8242_v22 = vld [vmem:[#allocation2 + $0xbc] sm:$0x1]  ;;  %v4945_v18 = vsel %vm8708_vm7, %v4940_v9, %v4944_v12  ;;  %v4963_v23 = vor.u32 %v4962_v29, %v9575_v56  ;;  %v6611_v4 = vcombine.low %v9583_v44, %v9589_v51  ;;  %v9639_v9 = vrot.slane %v5004_v45, 5  ;;  %v9663_v45 = vld [vmem:[#allocation2 + $0x50] sm:$0x1] }
 0x298   : > { %7630 = vmatprep.subr.bf16.mxu1 %v8151_v40  ;;  %v2525_v55 = vrot.slane %v8242_v22, 5  ;;  %v9627_v8 = vcombine.low %v4935_v5, %v4945_v18  ;;  %v4987_v25 = vor.u32 %v4986_v19, %v9605_v38  ;;  %v5000_v37 = vrot.slane %v4998_v50, 5  ;;  %v4898_v51 = vld [vmem:[#allocation2 + $0x78] sm:$0xf] }
 0x299   : > { %7443 = vmatpush3.bf16.msra.mxu0 %v8164_v53  ;;  %v8143_v53 = vld [vmem:[#allocation2 + $0x6c] sm:$0xff]   ;;  %v4964_v62 = vrot.slane %v4963_v23, 4  ;;  %v5010_v29 = vrot.slane %v5008_v0, 4  ;;  %v5022_v32 = vshll.u32 %v4886_v11, 16  ;;  %v4959_v21 = vsel %vm8708_vm7, %v4954_v59, %v9575_v56 }
 0x29a   : > { %v9595_v16 = vsel %vm9221_vm14, %v2524_v26, %v2525_v55  ;;  %v9637_v26 = vld [vmem:[#allocation2 + $0x44] sm:$0x1]  ;;  %v5032_v22 = vshrl.u32 %v9630_v20, 16  ;;  %v5052_v61 = vshll.u32 %v9635_v2, 16  ;;  %v5056_v15 = vshrl.u32 %v9635_v2, 16 }
 0x29b   : > { %7631 = vmatpush3.bf16.msra.mxu1 %v8151_v40  ;;  %v8144_v40 = vld [vmem:[#allocation2 + $0x78] sm:$0xff]   ;;  %v4969_v56 = vsel %vm8708_vm7, %v4964_v62, %v4968_v48  ;;  %v4992_v18 = vrot.slane %v4990_v41, 5  ;;  %v5014_v23 = vshll.u32 %v9637_v26, 16  ;;  %v5024_v52 = vrot.slane %v5022_v32, 5 }
 0x29c   : > { %7413 = vmatmul.mubr.bf16.gmra.mrb[48].mxu0 %v6606_v39  ;;  %7632 = vmatprep.subr.bf16.mxu1 %v8156_v28  ;;  %v9620_v39 = vsel %vm9221_vm14, %v6596_v33, %v2522_v63  ;;  %v4889_v63 = vld [vmem:[#allocation2 + $0x54] sm:$0xf]  ;;  %v5028_v33 = vshll.u32 %v9630_v20, 16  ;;  %v5034_v13 = vrot.slane %v5032_v22, 4  ;;  %v5067_v50 = vshrl.u32 %v4892_v17, 16 }
 0x29d   : > { %7416 = vmatprep.mubr.bf16.mxu0 %v6607_v36  ;;  %v4977_v36 = vor.u32 %v4976_v34, %v4973_v10  ;;  %v6612_v24 = vcombine.low %v9620_v39, %v9595_v16  ;;  %v5043_v55 = vshrl.u32 %v4889_v63, 16  ;;  %v5046_v12 = vshll.u32 %v4889_v63, 16  ;;  %v8147_v10 = vld [vmem:[#allocation2 + $0x84] sm:$0xff]  }
 0x29e   : > { %7601 = vmatmul.mubr.bf16.gmra.mrb[12].mxu1 %v8143_v53  ;;  %v4988_v34 = vrot.slane %v4987_v25, 4  ;;  %v5001_v53 = vor.u32 %v5000_v37, %v4997_v46  ;;  %v9665_v35 = vrot.slane %v5052_v61, 5  ;;  %v5058_v3 = vrot.slane %v5056_v15, 4  ;;  %v4895_v46 = vld [vmem:[#allocation2 + $0x6c] sm:$0xf] }
 0x29f   : > { %7604 = vmatprep.mubr.bf16.mxu1 %v8144_v40  ;;  %7633 = vmatpush3.bf16.msra.mxu1 %v8156_v28  ;;  %v5019_v28 = vshrl.u32 %v4886_v11, 16  ;;  %v4978_v6 = vrot.slane %v4977_v36, 4  ;;  %v5070_v40 = vshll.u32 %v4892_v17, 16  ;;  %v5045_v0 = vrot.slane %v5043_v55, 4  ;;  %v9672_v36 = vld [vmem:[#allocation2 + $0x5c] sm:$0x1] }
 0x2a0   : > { %7634 = vmatprep.subr.bf16.mxu1 %v8161_v43  ;;  %v5048_v5 = vrot.slane %v5046_v12, 5  ;;  %v5076_v11 = vshll.u32 %v9659_v47, 16  ;;  %v5080_v48 = vshrl.u32 %v9659_v47, 16  ;;  %v4993_v41 = vsel %vm8708_vm7, %v4988_v34, %v4992_v18  ;;  %v8152_v55 = vld [vmem:[#allocation2 + $0x9c] sm:$0xff]  }
 0x2a1   : > { %v5021_v19 = vrot.slane %v5019_v28, 4  ;;  %v4983_v59 = vsel %vm8708_vm7, %v4978_v6, %v9605_v38  ;;  %v5002_v63 = vrot.slane %v5001_v53, 4  ;;  %v5016_v25 = vrot.slane %v5014_v23, 5  ;;  %v9680_v38 = vld [vmem:[#allocation2 + $0x70] sm:$0xf] }
 0x2a2   : > { %v5069_v28 = vrot.slane %v5067_v50, 4  ;;  %v5072_v32 = vrot.slane %v5070_v40, 5  ;;  %v5049_v6 = vor.u32 %v5048_v5, %v5045_v0  ;;  %v5062_v22 = vshll.u32 %v9672_v36, 16  ;;  %v9701_v53 = vld [vmem:[#allocation2 + $0x68] sm:$0x1] }
 0x2a3   : > { %7635 = vmatpush3.bf16.msra.mxu1 %v8161_v43  ;;  %v5011_v43 = vor.u32 %v5010_v29, %v9639_v9  ;;  %v5038_v29 = vshll.u32 %v9663_v45, 16  ;;  %v9687_v12 = vrot.slane %v5076_v11, 5  ;;  %v5082_v61 = vrot.slane %v5080_v48, 4  ;;  %v9706_v0 = vld [vmem:[#allocation2 + $0x7c] sm:$0xf] }
 0x2a4   : > { %7417 = vmatmul.mubr.bf16.gmra.mrb[52].mxu0 %v6608_v7  ;;  %7668 = vmatprep.subr.bf16.mxu1 %v9632_v54  ;;  %v9661_v7 = vrot.slane %v5028_v33, 5  ;;  %v5059_v33 = vor.u32 %v5058_v3, %v9665_v35  ;;  %v5091_v15 = vshrl.u32 %v4895_v46, 16  ;;  %v5094_v17 = vshll.u32 %v4895_v46, 16 }
 0x2a5   : > { %7420 = vmatprep.mubr.bf16.mxu0 %v6609_v1  ;;  %v9667_v1 = vcombine.low %v4959_v21, %v4969_v56  ;;  %v5012_v62 = vrot.slane %v5011_v43, 4  ;;  %v5025_v21 = vor.u32 %v5024_v52, %v5021_v19  ;;  %v9692_v56 = vcombine.low %v4983_v59, %v4993_v41  ;;  %v9703_v52 = vld [vmem:[#allocation2 + $0x74] sm:$0x1] }
 0x2a6   : > { %7605 = vmatmul.mubr.bf16.gmra.mrb[16].mxu1 %v8147_v10  ;;  %v5035_v37 = vor.u32 %v5034_v13, %v9661_v7  ;;  %v8153_v10 = vld [vmem:[#allocation2 + $0xa8] sm:$0xff]   ;;  %v5007_v34 = vsel %vm8708_vm7, %v5002_v63, %v9639_v9  ;;  %v5100_v18 = vshll.u32 %v9680_v38, 16  ;;  %v5104_v57 = vshrl.u32 %v9680_v38, 16 }
 0x2a7   : > { %7608 = vmatprep.mubr.bf16.mxu1 %v8148_v30  ;;  %v5040_v30 = vrot.slane %v5038_v29, 5  ;;  %v5073_v44 = vor.u32 %v5072_v32, %v5069_v28  ;;  %v5050_v43 = vrot.slane %v5049_v6, 4  ;;  %v5060_v19 = vrot.slane %v5059_v33, 4  ;;  %v8162_v29 = vld [vmem:[#allocation2 + $0xc] sm:$0xff]   ;;  %v8157_v33 = vld [vmem:[#allocation2 + $0xb4] sm:$0xff]  }
 0x2a8   : > { %v5036_v23 = vrot.slane %v5035_v37, 4  ;;  %v5064_v9 = vrot.slane %v5062_v22, 5  ;;  %v5083_v13 = vor.u32 %v5082_v61, %v9687_v12  ;;  %v5093_v50 = vrot.slane %v5091_v15, 4  ;;  %v4901_v37 = vld [vmem:[#allocation2 + $0x84] sm:$0xf] }
 0x2a9   : > { %v5096_v40 = vrot.slane %v5094_v17, 5  ;;  %v783_v3 = vsel %vm8665_vm4, 0, %v782_v58  ;;  %v9710_v59 = vrot.slane %v5100_v18, 5  ;;  %v5106_v11 = vrot.slane %v5104_v57, 4  ;;  %v8158_v17 = vld [vmem:[#allocation2 + $0xc0] sm:$0xff]  }
 0x2aa   : > { %v5115_v48 = vshrl.u32 %v4898_v51, 16  ;;  %v5118_v41 = vshll.u32 %v4898_v51, 16  ;;  %784 = vst [vmem:[#allocation2 + $0xd4] sm:$0x1] %v783_v3  ;;  %v5086_v46 = vshll.u32 %v9701_v53, 16  ;;  %v5065_v28 = vsel %vm8708_vm7, %v5060_v19, %v5064_v9 }
 0x2ab   : > { %v5110_v32 = vshll.u32 %v9703_v52, 16  ;;  %v5128_v6 = vshrl.u32 %v9706_v0, 16  ;;  %v9733_v61 = vrot.slane %v5083_v13, 4  ;;  %v5097_v15 = vor.u32 %v5096_v40, %v5093_v50  ;;  %v9752_v58 = vld [vmem:[#allocation2 + $0x88] sm:$0xf] }
 0x2ac   : > { %7421 = vmatmul.mubr.bf16.gmra.mrb[56].mxu0 %v6610_v60  ;;  %v5017_v60 = vsel %vm8708_vm7, %v5012_v62, %v5016_v25  ;;  %v5041_v62 = vsel %vm8708_vm7, %v5036_v23, %v5040_v30  ;;  %v9716_v25 = vrot.slane %v5073_v44, 4  ;;  %v9738_v18 = vrot.slane %v5115_v48, 4  ;;  %v9769_v13 = vld [vmem:[#allocation2 + $0x94] sm:$0xf]  ;;  %v5632_v40 = vld [vmem:[#allocation2 + $0x48] sm:$0xe] }
 0x2ad   : > { %7424 = vmatprep.mubr.bf16.mxu0 %v6611_v4  ;;  %v5026_v4 = vrot.slane %v5025_v21, 4  ;;  %v9712_v63 = vcombine.low %v5007_v34, %v5017_v60  ;;  %v5124_v21 = vshll.u32 %v9706_v0, 16  ;;  %v9736_v34 = vld [vmem:[#allocation2 + $0x80] sm:$0x1]  ;;  %v9740_v16 = vrot.slane %v5118_v41, 5 }
 0x2ae   : > { %7609 = vmatmul.mubr.bf16.gmra.mrb[20].mxu1 %v8152_v55  ;;  %v5055_v55 = vsel %vm8708_vm7, %v5050_v43, %v9665_v35  ;;  %v5139_v39 = vshrl.u32 %v4901_v37, 16  ;;  %v9750_v57 = vrot.slane %v5086_v46, 5  ;;  %v9754_v60 = vld [vmem:[#allocation2 + $0x90] sm:$0xf]  ;;  %v9756_v23 = vrot.slane %v5110_v32, 5  ;;  %v8165_v46 = vld [vmem:[#allocation2 + $0x18] sm:$0xff]  }
 0x2af   : > { %7612 = vmatprep.mubr.bf16.mxu1 %v8153_v10  ;;  %v5031_v22 = vsel %vm8708_vm7, %v5026_v4, %v9661_v7  ;;  %v5107_v10 = vor.u32 %v5106_v11, %v9710_v59  ;;  %v9744_v7 = vcombine.low %v5055_v55, %v5065_v28  ;;  %v9758_v30 = vrot.slane %v5124_v21, 5  ;;  %v5630_v4 = vld [vmem:[#allocation2 + $0x30] sm:$0xe]  ;;  %v5631_v41 = vld [vmem:[#allocation2 + $0x3c] sm:$0xe] }
 0x2b0   : > { %v9760_v44 = vrot.slane %v5128_v6, 4  ;;  %v5142_v51 = vshll.u32 %v4901_v37, 16  ;;  %v9766_v19 = vrot.slane %v5097_v15, 4  ;;  %v5708_v50 = vrot.slane %v9571_v31, 5  ;;  %v8167_v31 = vld [vmem:[#allocation2 + $0x24] sm:$0xff]  }
 0x2b1   : > { %v9772_v5 = vrot.slane %v5107_v10, 4  ;;  %v9776_v11 = vrot.slane %v5139_v39, 4  ;;  %v5711_v32 = vrot.slane %v9600_v14, 5  ;;  %v5635_v39 = vld [vmem:[#allocation2 + $0x6c] sm:$0xe] }
 0x2b2   : > { %v5710_v28 = vrot.slane %v5708_v50, 4  ;;  %v9783_v6 = vrot.slane %v5142_v51, 5  ;;  %v6761_v51 = vrot.slane %v5632_v40, 9  ;;  %v5725_v40 = vrot.slane %v9663_v45, 5  ;;  %v5637_v21 = vld [vmem:[#allocation2 + $0x84] sm:$0xe] }
 0x2b3   : > { %v9880_v35 = vld [vmem:[#allocation2 + $0xa4] sm:$0x1]  ;;  %v5640_v43 = vld [vmem:[#allocation2 + $0xa8] sm:$0xe]  ;;  %v9897_v48 = vld [vmem:[#allocation2 + $0xb8] sm:$0xf] }
 0x2b4   : > { %7425 = vmatmul.mubr.bf16.gmra.mrb[60].mxu0 %v6612_v24  ;;  %v9742_v24 = vcombine.low %v5031_v22, %v5041_v62  ;;  %v8163_v62 = vld [vmem:[#allocation2 + $0xcc] sm:$0xff]   ;;  %v5715_v22 = vrot.slane %v9591_v49, 5  ;;  %v9794_v14 = vsel %vm9221_vm14, %v5710_v28, %v5711_v32  ;;  %v6760_v49 = vrot.slane %v5631_v41, 9  ;;  %v5634_v28 = vld [vmem:[#allocation2 + $0x60] sm:$0xe] }
 0x2b5   : > { %7444 = vmatprep.mubr.bf16.mxu0 %v8162_v29  ;;  %v6759_v29 = vrot.slane %v5630_v4, 9  ;;  %v5633_v4 = vld [vmem:[#allocation2 + $0x54] sm:$0xe]  ;;  %v5729_v41 = vrot.slane %v9635_v2, 5 }
 0x2b6   : > { %7613 = vmatmul.mubr.bf16.gmra.mrb[24].mxu1 %v8157_v33  ;;  %v8168_v2 = vld [vmem:[#allocation2 + $0x30] sm:$0xff]  }
 0x2b7   : > { %7616 = vmatprep.mubr.bf16.mxu1 %v8158_v17  ;;  %v9790_v15 = vsel %vm9221_vm14, %v6759_v29, %v5708_v50  ;;  %v5722_v17 = vrot.slane %v9630_v20, 5  ;;  %v5717_v50 = vrot.slane %v5715_v22, 4  ;;  %v5718_v29 = vrot.slane %v9637_v26, 5 }
 0x2b8   : > { %v9805_v20 = vsel %vm9221_vm14, %v6760_v49, %v5715_v22  ;;  %v6762_v26 = vrot.slane %v5633_v4, 9  ;;  %v5731_v45 = vrot.slane %v5729_v41, 4  ;;  %v6763_v49 = vrot.slane %v5634_v28, 9  ;;  %v9832_v22 = vld [vmem:[#allocation2 + $0x8c] sm:$0x1] }
 0x2b9   : > { %v5724_v9 = vrot.slane %v5722_v17, 4  ;;  %v9809_v32 = vsel %vm9221_vm14, %v6761_v51, %v5722_v17  ;;  %v8170_v51 = vld [vmem:[#allocation2 + $0x3c] sm:$0xff]   ;;  %v5739_v4 = vrot.slane %v9701_v53, 5  ;;  %v9857_v53 = vld [vmem:[#allocation2 + $0xac] sm:$0xf] }
 0x2bb   : > { %v9823_v17 = vsel %vm9221_vm14, %v5724_v9, %v5725_v40  ;;  %v6764_v40 = vrot.slane %v5635_v39, 9 }
 0x2bc   : > { %7445 = vmatmul.mubr.bf16.vlgmr.msra.gmra.mrb[32].mxu0 %v8165_v46  ;;  %v9888_v46 = vld [vmem:[#allocation2 + $0xc4] sm:$0xf] }
 0x2bd   : > { %7448 = vmatprep.mubr.bf16.mxu0 %v8167_v31  ;;  %v5732_v31 = vrot.slane %v9672_v36, 5  ;;  %v9829_v36 = vsel %vm9221_vm14, %v6762_v26, %v5729_v41  ;;  %v8169_v41 = vld [vmem:[#allocation8 + $0x208] sm:$0xff]   ;;  %v9843_v26 = vld [vmem:[#allocation2 + $0x98] sm:$0x1] }
 0x2be   : > { %7617 = vmatmul.mubr.bf16.gmra.mrb[28].mxu1 %v8163_v62  ;;  %v9815_v62 = vsel %vm9221_vm14, %v5717_v50, %v5718_v29  ;;  %v5636_v29 = vld [vmem:[#allocation2 + $0x78] sm:$0xe]  ;;  %v5743_v50 = vrot.slane %v9680_v38, 5  ;;  %v5639_v38 = vld [vmem:[#allocation2 + $0x9c] sm:$0xe]  ;;  %v5767_v37 = vrot.slane %v9843_v26, 5 }
 0x2bf   : > { %7636 = vmatprep.mubr.bf16.mxu1 %v9627_v8  ;;  %v5736_v8 = vrot.slane %v9659_v47, 5  ;;  %v9836_v9 = vsel %vm9221_vm14, %v5731_v45, %v5732_v31  ;;  %v5746_v31 = vrot.slane %v9703_v52, 5  ;;  %v6765_v45 = vrot.slane %v5636_v29, 9  ;;  %v9868_v29 = vld [vmem:[#allocation2 + $0xb0] sm:$0x1] }
 0x2c0   : > { %v5745_v39 = vrot.slane %v5743_v50, 4 }
 0x2c1   : > { %v5738_v47 = vrot.slane %v5736_v8, 4  ;;  %v9840_v28 = vsel %vm9221_vm14, %v6763_v49, %v5736_v8  ;;  %v5750_v8 = vrot.slane %v9706_v0, 5  ;;  %v5753_v49 = vrot.slane %v9736_v34, 5 }
 0x2c2   : > { %v5757_v0 = vrot.slane %v9752_v58, 5 }
 0x2c3   : > { %v9849_v3 = vsel %vm9221_vm14, %v5738_v47, %v5739_v4  ;;  %v9861_v47 = vsel %vm9221_vm14, %v6764_v40, %v5743_v50  ;;  %v5752_v52 = vrot.slane %v5750_v8, 4  ;;  %v6766_v4 = vrot.slane %v5637_v21, 9 }
 0x2c4   : > { %7449 = vmatmul.mubr.bf16.gmra.mrb[36].mxu0 %v8168_v2  ;;  %10396 = vst [vmem:[#allocation13_spill] sm:$0xff] %v9849_v3  ;;  %v5638_v2 = vld [vmem:[#allocation2 + $0x90] sm:$0xe]  ;;  %10397 = vst [vmem:[#allocation17_spill] sm:$0xff] %v9861_v47  ;;  %v9876_v50 = vsel %vm9221_vm14, %v6765_v45, %v5750_v8  ;;  %v5760_v21 = vrot.slane %v9832_v22, 5  ;;  %v5764_v40 = vrot.slane %v9769_v13, 5 }
 0x2c5   : > { %7452 = vmatprep.mubr.bf16.mxu0 %v8170_v51  ;;  %v9866_v51 = vld [vmem:[#allocation2 + $0xa0] sm:$0xf]  ;;  %10399 = vst [vmem:[#allocation18_spill] sm:$0xff] %v9876_v50  ;;  %v6767_v8 = vrot.slane %v5638_v2, 9  ;;  %v8173_v45 = vld [vmem:[#allocation2 + $0x54] sm:$0xff]   ;;  %v9894_v55 = vsel %vm9221_vm14, %v6766_v4, %v5757_v0  ;;  %v5781_v47 = vrot.slane %v9868_v29, 5 }
 0x2c6   : > { %7637 = vmatmul.mubr.bf16.vlgmr.msra.gmra.mrb[0].mxu1 %v9667_v1  ;;  %v9872_v1 = vsel %vm9221_vm14, %v5745_v39, %v5746_v31  ;;  %v9886_v31 = vsel %vm9221_vm14, %v5752_v52, %v5753_v49  ;;  %v5759_v39 = vrot.slane %v5757_v0, 4  ;;  %v5766_v33 = vrot.slane %v5764_v40, 4  ;;  %v9908_v4 = vld [vmem:[#allocation2 + $0xbc] sm:$0x1]  ;;  %v9910_v0 = vld [vmem:[#allocation2 + $0xc8] sm:$0x1] }
 0x2c7   : > { %7669 = vmatpush3.bf16.msra.mxu1 %v9632_v54  ;;  %7640 = vmatprep.mubr.bf16.mxu1 %v9692_v56  ;;  %10398 = vst [vmem:[#allocation16_spill] sm:$0xff] %v9872_v1  ;;  %v8171_v54 = vld [vmem:[#allocation2 + $0x48] sm:$0xff]   ;;  %10400 = vst [vmem:[#allocation19_spill] sm:$0xff] %v9886_v31  ;;  %v9905_v2 = vsel %vm9221_vm14, %v6767_v8, %v5764_v40  ;;  %v6768_v52 = vrot.slane %v5639_v38, 9  ;;  %v5771_v10 = vrot.slane %v9866_v51, 5  ;;  %v5778_v40 = vrot.slane %v9857_v53, 5 }
 0x2c8   : > { %7670 = vmatprep.subr.bf16.mxu1 %v8169_v41  ;;  %v8172_v56 = vld [vmem:[#allocation8 + $0x210] sm:$0xff]   ;;  %v9901_v49 = vsel %vm9221_vm14, %v5759_v39, %v5760_v21  ;;  %10402 = vst [vmem:[#allocation21_spill] sm:$0xff] %v9905_v2  ;;  %v5641_v31 = vld [vmem:[#allocation2 + $0xb4] sm:$0xe]  ;;  %v9916_v21 = vsel %vm9221_vm14, %v5766_v33, %v5767_v37  ;;  %v5774_v39 = vrot.slane %v9880_v35, 5  ;;  %v6769_v1 = vrot.slane %v5640_v43, 9 }
 0x2c9   : > { %10401 = vst [vmem:[#allocation20_spill] sm:$0xff] %v9901_v49  ;;  %10403 = vst [vmem:[#allocation15_spill] sm:$0xff] %v9916_v21  ;;  %v8175_v38 = vld [vmem:[#allocation8 + $0x218] sm:$0xff]   ;;  %v5773_v8 = vrot.slane %v5771_v10, 4  ;;  %v5642_v3 = vld [vmem:[#allocation2 + $0xc0] sm:$0xe]  ;;  %v9925_v37 = vsel %vm9221_vm14, %v6768_v52, %v5771_v10 }
 0x2ca   : > { %10404 = vst [vmem:[#allocation14_spill] sm:$0xff] %v9925_v37  ;;  %v5780_v33 = vrot.slane %v5778_v40, 4  ;;  %v6770_v50 = vrot.slane %v5641_v31, 9  ;;  %v5785_v49 = vrot.slane %v9897_v48, 5  ;;  %v9935_v43 = vsel %vm9221_vm14, %v6769_v1, %v5778_v40  ;;  %v9940_v31 = vld [vmem:[#allocation2 + $0xd0] sm:$0xf] }
 0x2cb   : > { %7671 = vmatpush3.bf16.msra.mxu1 %v8169_v41  ;;  %v9931_v41 = vsel %vm9221_vm14, %v5773_v8, %v5774_v39  ;;  %10406 = vst [vmem:[#allocation23_spill] sm:$0xff] %v9935_v43  ;;  %v5792_v10 = vrot.slane %v9888_v46, 5  ;;  %v6771_v8 = vrot.slane %v5642_v3, 9  ;;  %v8178_v1 = vld [vmem:[#allocation8 + $0x220] sm:$0xff]   ;;  %v9948_v40 = vld [vmem:[#allocation2 + $0xd4] sm:$0x1] }
 0x2cc   : > { %7453 = vmatmul.mubr.bf16.gmra.mrb[40].mxu0 %v8171_v54  ;;  %7672 = vmatprep.subr.bf16.mxu1 %v8172_v56  ;;  %v5643_v54 = vld [vmem:[#allocation2 + $0xcc] sm:$0xe]  ;;  %10405 = vst [vmem:[#allocation22_spill] sm:$0xff] %v9931_v41  ;;  %v9946_v52 = vsel %vm9221_vm14, %v5780_v33, %v5781_v47  ;;  %v5787_v39 = vrot.slane %v5785_v49, 4  ;;  %v5799_v3 = vrot.slane %v9940_v31, 5  ;;  %v5802_v33 = vrot.slane %v9948_v40, 5 }
 0x2cd   : > { %7456 = vmatprep.mubr.bf16.mxu0 %v8173_v45  ;;  %v5788_v45 = vrot.slane %v9908_v4, 5  ;;  %10407 = vst [vmem:[#allocation24_spill] sm:$0xff] %v9946_v52  ;;  %v6772_v2 = vrot.slane %v5643_v54, 9  ;;  %v8174_v41 = vld [vmem:[#allocation2 + $0x60] sm:$0xff]   ;;  %v10409_v37 = vshll.u32 %v9752_v58, 16  ;;  %v10425_v27 = vld [vmem:[#allocation13_spill] sm:$0xff] }
 0x2ce   : > { %7641 = vmatmul.mubr.bf16.gmra.mrb[4].mxu1 %v9712_v63  ;;  %v9955_v63 = vsel %vm9221_vm14, %v6770_v50, %v5785_v49  ;;  %v9971_v50 = vsel %vm9221_vm14, %v6771_v8, %v5792_v10  ;;  %v4907_v43 = vld [vmem:[#allocation2 + $0x9c] sm:$0xf] }
 0x2cf   : > { %7644 = vmatprep.mubr.bf16.mxu1 %v9742_v24  ;;  %7673 = vmatpush3.bf16.msra.mxu1 %v8172_v56  ;;  %v5794_v24 = vrot.slane %v5792_v10, 4  ;;  %v5795_v56 = vrot.slane %v9910_v0, 5  ;;  %v9959_v47 = vsel %vm9221_vm14, %v5787_v39, %v5788_v45  ;;  %v9965_v21 = vrot.slane %v10409_v37, 5  ;;  %v8176_v45 = vld [vmem:[#allocation2 + $0x6c] sm:$0xff]  }
 0x2d0   : > { %7674 = vmatprep.subr.bf16.mxu1 %v8175_v38  ;;  %10408 = vst [vmem:[#allocation25_spill] sm:$0xff] %v9959_v47  ;;  %v10411_v39 = vshrl.u32 %v9752_v58, 16  ;;  %v9983_v54 = vsel %vm9221_vm14, %v6772_v2, %v5799_v3  ;;  %v5801_v47 = vrot.slane %v5799_v3, 4  ;;  %v10412_v10 = vshrl.u32 %v9754_v60, 16 }
 0x2d1   : > { %v9975_v49 = vsel %vm9221_vm14, %v5794_v24, %v5795_v56  ;;  %v10413_v24 = vshll.u32 %v9754_v60, 16  ;;  %v10414_v58 = vshll.u32 %v9769_v13, 16  ;;  %v10416_v2 = vsel %vm8708_vm7, %v9733_v61, %v9750_v57 }
 0x2d2   : > { %10410 = vst [vmem:[#allocation26_spill] sm:$0xff] %v9975_v49  ;;  %v5154_v52 = vrot.slane %v10411_v39, 4  ;;  %v5165_v8 = vrot.slane %v10412_v10, 4  ;;  %v10415_v39 = vshrl.u32 %v9769_v13, 16  ;;  %v8181_v49 = vld [vmem:[#allocation8 + $0x228] sm:$0xff]   ;;  %v5113_v3 = vsel %vm8708_vm7, %v9772_v5, %v9756_v23 }
 0x2d3   : > { %7675 = vmatpush3.bf16.msra.mxu1 %v8175_v38  ;;  %v5168_v38 = vrot.slane %v10413_v24, 5  ;;  %v9991_v56 = vrot.slane %v10414_v58, 5  ;;  %v10418_v13 = vor.u32 %v9740_v16, %v9738_v18  ;;  %v10014_v24 = vsel %vm9221_vm14, %v5801_v47, %v5802_v33  ;;  %v8184_v33 = vld [vmem:[#allocation8 + $0x230] sm:$0xff]  }
 0x2d4   : > { %7457 = vmatmul.mubr.bf16.gmra.mrb[44].mxu0 %v8174_v41  ;;  %7676 = vmatprep.subr.bf16.mxu1 %v8178_v1  ;;  %v5178_v37 = vrot.slane %v10415_v39, 4  ;;  %v10417_v41 = vsel %vm8708_vm7, %v9716_v25, %v9687_v12  ;;  %v5103_v12 = vsel %vm8708_vm7, %v9766_v19, %v9710_v59  ;;  %v10419_v25 = vor.u32 %v9760_v44, %v9758_v30  ;;  %v8179_v58 = vld [vmem:[#allocation2 + $0x84] sm:$0xff]  }
 0x2d5   : > { %v6739_v60 = vcombine.low %v10417_v41, %v10416_v2  ;;  %7460 = vmatprep.mubr.bf16.mxu0 %v8176_v45  ;;  %v5122_v10 = vrot.slane %v10418_v13, 4  ;;  %v6788_v57 = vcombine.low %v9983_v54, %v10014_v24  ;;  %v5145_v18 = vor.u32 %v9783_v6, %v9776_v11  ;;  %v8187_v13 = vld [vmem:[#allocation8 + $0x238] sm:$0xff]  }
 0x2d6   : > { %7645 = vmatmul.mubr.bf16.gmra.mrb[8].mxu1 %v9744_v7  ;;  %v5132_v61 = vrot.slane %v10419_v25, 4  ;;  %v5155_v16 = vor.u32 %v5154_v52, %v9965_v21  ;;  %v5187_v7 = vshrl.u32 %v4907_v43, 16  ;;  %v5190_v23 = vshll.u32 %v4907_v43, 16  ;;  %v4910_v43 = vld [vmem:[#allocation2 + $0xa8] sm:$0xf] }
 0x2d7   : > { %7648 = vmatprep.mubr.bf16.mxu1 %v6739_v60  ;;  %7677 = vmatpush3.bf16.msra.mxu1 %v8178_v1  ;;  %v6740_v5 = vcombine.low %v5103_v12, %v5113_v3  ;;  %v10420_v47 = vshll.u32 %v9736_v34, 16  ;;  %v5169_v19 = vor.u32 %v5168_v38, %v5165_v8  ;;  %v5179_v44 = vor.u32 %v5178_v37, %v9991_v56  ;;  %v8177_v1 = vld [vmem:[#allocation2 + $0x78] sm:$0xff]  }
 0x2d8   : > { %7678 = vmatprep.subr.bf16.mxu1 %v8181_v49  ;;  %v5127_v45 = vsel %vm8708_vm7, %v5122_v10, %v9758_v30  ;;  %v5158_v11 = vshll.u32 %v9832_v22, 16  ;;  %v5196_v6 = vshll.u32 %v9866_v51, 16  ;;  %v5200_v52 = vshrl.u32 %v9866_v51, 16 }
 0x2d9   : > { %v5136_v59 = vrot.slane %v10420_v47, 5  ;;  %v5182_v8 = vshll.u32 %v9843_v26, 16  ;;  %v5220_v37 = vshll.u32 %v9857_v53, 16  ;;  %v5224_v38 = vshrl.u32 %v9857_v53, 16 }
 0x2da   : > { %v5146_v39 = vrot.slane %v5145_v18, 4  ;;  %v5156_v30 = vrot.slane %v5155_v16, 4  ;;  %v5189_v2 = vrot.slane %v5187_v7, 4  ;;  %v5192_v22 = vrot.slane %v5190_v23, 5  ;;  %v4913_v16 = vld [vmem:[#allocation2 + $0xb4] sm:$0xf] }
 0x2db   : > { %v5137_v34 = vsel %vm8708_vm7, %v5132_v61, %v5136_v59  ;;  %7679 = vmatpush3.bf16.msra.mxu1 %v8181_v49  ;;  %v5170_v41 = vrot.slane %v5169_v19, 4  ;;  %v5180_v51 = vrot.slane %v5179_v44, 4  ;;  %v5211_v60 = vshrl.u32 %v4910_v43, 16 }
 0x2dc   : > { %7461 = vmatmul.mubr.bf16.gmra.mrb[48].mxu0 %v8177_v1  ;;  %v5214_v3 = vshll.u32 %v4910_v43, 16  ;;  %7680 = vmatprep.subr.bf16.mxu1 %v8184_v33  ;;  %v6741_v10 = vcombine.low %v5127_v45, %v5137_v34  ;;  %v5160_v26 = vrot.slane %v5158_v11, 5  ;;  %v10043_v12 = vrot.slane %v5196_v6, 5 }
 0x2dd   : > { %7464 = vmatprep.mubr.bf16.mxu0 %v8179_v58  ;;  %v5202_v25 = vrot.slane %v5200_v52, 4  ;;  %v5184_v53 = vrot.slane %v5182_v8, 5  ;;  %v10045_v61 = vrot.slane %v5220_v37, 5  ;;  %v5226_v18 = vrot.slane %v5224_v38, 4  ;;  %v4916_v52 = vld [vmem:[#allocation2 + $0xc0] sm:$0xf] }
 0x2de   : > { %7649 = vmatmul.mubr.bf16.gmra.mrb[12].mxu1 %v6740_v5  ;;  %v5151_v49 = vsel %vm8708_vm7, %v5146_v39, %v9965_v21  ;;  %v5161_v7 = vsel %vm8708_vm7, %v5156_v30, %v5160_v26  ;;  %v5193_v23 = vor.u32 %v5192_v22, %v5189_v2  ;;  %v5206_v47 = vshll.u32 %v9880_v35, 16  ;;  %v8180_v35 = vld [vmem:[#allocation2 + $0x90] sm:$0xff]   ;;  %v8182_v37 = vld [vmem:[#allocation2 + $0x9c] sm:$0xff]   ;;  %v4919_v22 = vld [vmem:[#allocation2 + $0xcc] sm:$0xf] }
 0x2df   : > { %7652 = vmatprep.mubr.bf16.mxu1 %v6741_v10  ;;  %7681 = vmatpush3.bf16.msra.mxu1 %v8184_v33  ;;  %v5175_v5 = vsel %vm8708_vm7, %v5170_v41, %v9991_v56  ;;  %v5185_v59 = vsel %vm8708_vm7, %v5180_v51, %v5184_v53  ;;  %v5213_v19 = vrot.slane %v5211_v60, 4  ;;  %v5216_v44 = vrot.slane %v5214_v3, 5 }
 0x2e0   : > { %7682 = vmatprep.subr.bf16.mxu1 %v8187_v13  ;;  %v5203_v45 = vor.u32 %v5202_v25, %v10043_v12  ;;  %v5235_v21 = vshrl.u32 %v4913_v16, 16  ;;  %v5244_v11 = vshll.u32 %v9897_v48, 16  ;;  %v5248_v6 = vshrl.u32 %v9897_v48, 16 }
 0x2e1   : > { %v5227_v33 = vor.u32 %v5226_v18, %v10045_v61  ;;  %v5238_v43 = vshll.u32 %v4913_v16, 16  ;;  %v5268_v56 = vshll.u32 %v9888_v46, 16  ;;  %v5272_v34 = vshrl.u32 %v9888_v46, 16 }
 0x2e2   : > { %v6742_v1 = vcombine.low %v5151_v49, %v5161_v7  ;;  %v6743_v8 = vcombine.low %v5175_v5, %v5185_v59  ;;  %v5194_v38 = vrot.slane %v5193_v23, 4  ;;  %v5208_v58 = vrot.slane %v5206_v47, 5 }
 0x2e3   : > { %7683 = vmatpush3.bf16.msra.mxu1 %v8187_v13  ;;  %v5217_v39 = vor.u32 %v5216_v44, %v5213_v19  ;;  %v5230_v30 = vshll.u32 %v9868_v29, 16  ;;  %v5259_v48 = vshrl.u32 %v4916_v52, 16  ;;  %v5262_v2 = vshll.u32 %v4916_v52, 16  ;;  %v8183_v44 = vld [vmem:[#allocation2 + $0xa8] sm:$0xff]  }
 0x2e4   : > { %7465 = vmatmul.mubr.bf16.gmra.mrb[52].mxu0 %v8180_v35  ;;  %v5204_v41 = vrot.slane %v5203_v45, 4  ;;  %v5237_v51 = vrot.slane %v5235_v21, 4  ;;  %v5246_v60 = vrot.slane %v5244_v11, 5  ;;  %v5250_v3 = vrot.slane %v5248_v6, 4  ;;  %v8185_v11 = vld [vmem:[#allocation2 + $0xb4] sm:$0xff]  }
 0x2e5   : > { %7468 = vmatprep.mubr.bf16.mxu0 %v8182_v37  ;;  %v5228_v46 = vrot.slane %v5227_v33, 4  ;;  %v5240_v10 = vrot.slane %v5238_v43, 5  ;;  %v5270_v26 = vrot.slane %v5268_v56, 5  ;;  %v5274_v25 = vrot.slane %v5272_v34, 4 }
 0x2e6   : > { %7653 = vmatmul.mubr.bf16.gmra.mrb[16].mxu1 %v6742_v1  ;;  %v5283_v53 = vshrl.u32 %v4919_v22, 16  ;;  %v5286_v13 = vshll.u32 %v4919_v22, 16  ;;  %v5292_v18 = vshll.u32 %v9940_v31, 16  ;;  %v5296_v29 = vshrl.u32 %v9940_v31, 16  ;;  %v8186_v22 = vld [vmem:[#allocation2 + $0xc0] sm:$0xff]  }
 0x2e7   : > { %7656 = vmatprep.mubr.bf16.mxu1 %v6743_v8  ;;  %v5218_v16 = vrot.slane %v5217_v39, 4  ;;  %v5232_v49 = vrot.slane %v5230_v30, 5  ;;  %v5261_v7 = vrot.slane %v5259_v48, 4  ;;  %v5264_v23 = vrot.slane %v5262_v2, 5 }
 0x2e8   : > { %v5199_v47 = vsel %vm8708_vm7, %v5194_v38, %v10043_v12  ;;  %v5209_v5 = vsel %vm8708_vm7, %v5204_v41, %v5208_v58  ;;  %v5251_v59 = vor.u32 %v5250_v3, %v5246_v60  ;;  %v5241_v45 = vor.u32 %v5240_v10, %v5237_v51  ;;  %v8243_v41 = vld [vmem:[#allocation2 + $0x1c] sm:$0xf] }
 0x2e9   : > { %v5233_v19 = vsel %vm8708_vm7, %v5228_v46, %v5232_v49  ;;  %v5254_v21 = vshll.u32 %v9908_v4, 16  ;;  %v5275_v31 = vor.u32 %v5274_v25, %v5270_v26  ;;  %v5285_v6 = vrot.slane %v5283_v53, 4  ;;  %v5628_v49 = vld [vmem:[#allocation2 + $0x18] sm:$0xe] }
 0x2ea   : > { %v5288_v52 = vrot.slane %v5286_v13, 5  ;;  %v5294_v35 = vrot.slane %v5292_v18, 5  ;;  %v5298_v33 = vrot.slane %v5296_v29, 4  ;;  %v6744_v43 = vcombine.low %v5199_v47, %v5209_v5 }
 0x2eb   : > { %v5223_v12 = vsel %vm8708_vm7, %v5218_v16, %v10045_v61  ;;  %v5265_v56 = vor.u32 %v5264_v23, %v5261_v7  ;;  %v5278_v34 = vshll.u32 %v9910_v0, 16  ;;  %v5252_v8 = vrot.slane %v5251_v59, 4  ;;  %v8245_v23 = vld [vmem:[#allocation2 + $0x28] sm:$0xf] }
 0x2ec   : > { %7469 = vmatmul.mubr.bf16.gmra.mrb[56].mxu0 %v8183_v44  ;;  %v6745_v1 = vcombine.low %v5223_v12, %v5233_v19  ;;  %v5256_v4 = vrot.slane %v5254_v21, 5  ;;  %v5276_v37 = vrot.slane %v5275_v31, 4  ;;  %v5242_v38 = vrot.slane %v5241_v45, 4  ;;  %v5629_v21 = vld [vmem:[#allocation2 + $0x24] sm:$0xe] }
 0x2ed   : > { %7472 = vmatprep.mubr.bf16.mxu0 %v8185_v11  ;;  %v5289_v58 = vor.u32 %v5288_v52, %v5285_v6  ;;  %v5299_v39 = vor.u32 %v5298_v33, %v5294_v35  ;;  %v5302_v30 = vshll.u32 %v9948_v40, 16  ;;  %v5266_v48 = vrot.slane %v5265_v56, 4 }
 0x2ee   : > { %7657 = vmatmul.mubr.bf16.gmra.mrb[20].mxu1 %v6744_v43  ;;  %v5280_v2 = vrot.slane %v5278_v34, 5  ;;  %v5257_v61 = vsel %vm8708_vm7, %v5252_v8, %v5256_v4  ;;  %v5694_v51 = vrot.slane %v8243_v41, 5  ;;  %v5247_v3 = vsel %vm8708_vm7, %v5242_v38, %v5246_v60  ;;  %v8244_v60 = vld [vmem:[#allocation2 + $0x20] sm:$0x1]  ;;  %v10428_v8 = vld [vmem:[#allocation16_spill] sm:$0xff]  ;;  %v10431_v4 = vld [vmem:[#allocation19_spill] sm:$0xff] }
 0x2ef   : > { %7660 = vmatprep.mubr.bf16.mxu1 %v6745_v1  ;;  %v5290_v46 = vrot.slane %v5289_v58, 4  ;;  %v5300_v10 = vrot.slane %v5299_v39, 4  ;;  %v5304_v25 = vrot.slane %v5302_v30, 5  ;;  %v6746_v53 = vcombine.low %v5247_v3, %v5257_v61  ;;  %v10427_v1 = vld [vmem:[#allocation17_spill] sm:$0xff]  ;;  %v10439_v38 = vld [vmem:[#allocation22_spill] sm:$0xff]  ;;  %v10441_v58 = vld [vmem:[#allocation23_spill] sm:$0xff] }
 0x2f0   : > { %v5281_v0 = vsel %vm8708_vm7, %v5276_v37, %v5280_v2  ;;  %v5271_v40 = vsel %vm8708_vm7, %v5266_v48, %v5270_v26  ;;  %v5696_v18 = vrot.slane %v5694_v51, 4  ;;  %v5697_v7 = vrot.slane %v8244_v60, 5  ;;  %v10436_v37 = vld [vmem:[#allocation15_spill] sm:$0xff]  ;;  %v10442_v39 = vld [vmem:[#allocation24_spill] sm:$0xff]  ;;  %v10444_v48 = vld [vmem:[#allocation25_spill] sm:$0xff] }
 0x2f1   : > { %v6747_v13 = vcombine.low %v5271_v40, %v5281_v0  ;;  %v5295_v29 = vsel %vm8708_vm7, %v5290_v46, %v5294_v35  ;;  %v5305_v16 = vsel %vm8708_vm7, %v5300_v10, %v5304_v25  ;;  %v5701_v47 = vrot.slane %v8245_v23, 5  ;;  %v10446_v61 = vld [vmem:[#allocation26_spill] sm:$0xff] }
 0x2f2   : > { %v6748_v5 = vcombine.low %v5295_v29, %v5305_v16  ;;  %v6757_v59 = vrot.slane %v5628_v49, 9  ;;  %v5698_v26 = vsel %vm9221_vm14, %v5696_v18, %v5697_v7  ;;  %v5704_v31 = vrot.slane %v8246_v42, 5 }
 0x2f3   : > { %v5703_v45 = vrot.slane %v5701_v47, 4  ;;  %v6758_v11 = vrot.slane %v5629_v21, 9  ;;  %v10421_v33 = vcombine.low %v9790_v15, %v9794_v14  ;;  %v10422_v43 = vcombine.low %v9805_v20, %v9815_v62  ;;  %v10430_v14 = vld [vmem:[#allocation18_spill] sm:$0xff]  ;;  %v10433_v62 = vld [vmem:[#allocation20_spill] sm:$0xff] }
 0x2f4   : > { %7473 = vmatmul.mubr.bf16.gmra.mrb[60].mxu0 %v8186_v22  ;;  %v5695_v19 = vsel %vm9221_vm14, %v6757_v59, %v5694_v51  ;;  %v10423_v12 = vcombine.low %v9809_v32, %v9823_v17  ;;  %v10424_v56 = vcombine.low %v9829_v36, %v9836_v9  ;;  %v10426_v34 = vcombine.low %v9840_v28, %v10425_v27  ;;  %v10435_v17 = vld [vmem:[#allocation21_spill] sm:$0xff]  ;;  %v10438_v9 = vld [vmem:[#allocation14_spill] sm:$0xff] }
 0x2f5   : > { %v6773_v44 = vcombine.low %v5695_v19, %v5698_v26  ;;  %v5705_v6 = vsel %vm9221_vm14, %v5703_v45, %v5704_v31  ;;  %v5702_v52 = vsel %vm9221_vm14, %v6758_v11, %v5701_v47  ;;  %v10429_v15 = vcombine.low %v10427_v1, %v10428_v8  ;;  %v10193_v11 = vld [vmem:[%s10326_s4] ss:$0 sm:$0xff] }
 0x2f6   : > { %7661 = vmatmul.mubr.bf16.gmra.mrb[24].mxu1 %v6746_v53  ;;  %v6774_v35 = vcombine.low %v5702_v52, %v5705_v6  ;;  %v10432_v20 = vcombine.low %v10430_v14, %v10431_v4  ;;  %v10434_v32 = vcombine.low %v9894_v55, %v10433_v62  ;;  %v10437_v36 = vcombine.low %v10435_v17, %v10436_v37 }
 0x2f7   : > { %7664 = vmatprep.mubr.bf16.mxu1 %v6747_v13  ;;  %v10440_v28 = vcombine.low %v10438_v9, %v10439_v38  ;;  %v10443_v30 = vcombine.low %v10441_v58, %v10442_v39  ;;  %v10445_v2 = vcombine.low %v9955_v63, %v10444_v48  ;;  %v10447_v55 = vcombine.low %v9971_v50, %v10446_v61 }
 0x2fe   : > { %7665 = vmatmul.mubr.bf16.gmra.mrb[28].mxu1 %v6748_v5 }
 0x2ff   : > { %7684 = vmatprep.mubr.bf16.mxu1 %v6773_v44 }
 0x306   : > { %7685 = vmatmul.mubr.bf16.vlgmr.msra.gmra.mrb[0].mxu1 %v6774_v35 }
 0x307   : > { %7688 = vmatprep.mubr.bf16.mxu1 %v10421_v33 }
 0x30e   : > { %7689 = vmatmul.mubr.bf16.gmra.mrb[4].mxu1 %v10422_v43 }
 0x30f   : > { %7692 = vmatprep.mubr.bf16.mxu1 %v10423_v12 }
 0x316   : > { %7693 = vmatmul.mubr.bf16.gmra.mrb[8].mxu1 %v10424_v56 }
 0x317   : > { %7696 = vmatprep.mubr.bf16.mxu1 %v10426_v34 }
 0x31e   : > { %7697 = vmatmul.mubr.bf16.gmra.mrb[12].mxu1 %v10429_v15 }
 0x31f   : > { %7700 = vmatprep.mubr.bf16.mxu1 %v10432_v20 }
 0x326   : > { %7701 = vmatmul.mubr.bf16.gmra.mrb[16].mxu1 %v10434_v32 }
 0x327   : > { %7704 = vmatprep.mubr.bf16.mxu1 %v10437_v36 }
 0x32e   : > { %7705 = vmatmul.mubr.bf16.gmra.mrb[20].mxu1 %v10440_v28 }
 0x32f   : > { %7708 = vmatprep.mubr.bf16.mxu1 %v10443_v30 }
 0x336   : > { %7709 = vmatmul.mubr.bf16.gmra.mrb[24].mxu1 %v10445_v2 }
 0x337   : > { %7712 = vmatprep.mubr.bf16.mxu1 %v10447_v55 }
 0x33e   : > { %7713 = vmatmul.mubr.bf16.gmra.mrb[28].mxu1 %v6788_v57 }
 0x38f   : > { %v7446_v0 = vpop.f32.mrb[32].mxu0 }
 0x390   : > { %v3076_v22 = vpop.f32.mrb[33].mxu0 }
 0x391   : > { %v7447_v41 = vpop.f32.mrb[34].mxu0 }
 0x392   : > { %v3079_v51 = vpop.f32.mrb[35].mxu0 }
 0x397   : > { %v7450_v3 = vpop.f32.mrb[36].mxu0 }
 0x398   : > { %v3092_v46 = vpop.f32.mrb[37].mxu0 }
 0x399   : > { %v7451_v10 = vpop.f32.mrb[38].mxu0 }
 0x39a   : > { %v3095_v25 = vpop.f32.mrb[39].mxu0 }
 0x39f   : > { %v10142_v53 = vpop.f32.mrb[40].mxu0 }
 0x3a0   : > { %v10144_v63 = vpop.f32.mrb[41].mxu0 }
 0x3a1   : > { %v10146_v40 = vpop.f32.mrb[42].mxu0 }
 0x3a2   : > { %v10148_v50 = vpop.f32.mrb[43].mxu0 }
 0x3a7   : > { %v10150_v13 = vpop.f32.mrb[44].mxu0 }
 0x3a8   : > { %v10152_v54 = vpop.f32.mrb[45].mxu0 }
 0x3a9   : > { %v10154_v24 = vpop.f32.mrb[46].mxu0 }
 0x3aa   : > { %v10156_v57 = vpop.f32.mrb[47].mxu0 }
 0x3af   : > { %v10158_v18 = vpop.f32.mrb[48].mxu0 }
 0x3b0   : > { %v10160_v29 = vpop.f32.mrb[49].mxu0 }
 0x3b1   : > { %v10162_v16 = vpop.f32.mrb[50].mxu0 }
 0x3b2   : > { %v10164_v49 = vpop.f32.mrb[51].mxu0 }
 0x3b7   : > { %v10166_v60 = vpop.f32.mrb[52].mxu0 }
 0x3b8   : > { %v10168_v7 = vpop.f32.mrb[53].mxu0 }
 0x3b9   : > { %v10170_v23 = vpop.f32.mrb[54].mxu0 }
 0x3ba   : > { %v10172_v47 = vpop.f32.mrb[55].mxu0 }
 0x3bf   : > { %v10174_v5 = vpop.f32.mrb[56].mxu0 }
 0x3c0   : > { %v10176_v59 = vpop.f32.mrb[57].mxu0 }
 0x3c1   : > { %v10178_v26 = vpop.f32.mrb[58].mxu0 }
 0x3c2   : > { %v10180_v19 = vpop.f32.mrb[59].mxu0 }
 0x3c7   : > { %v10182_v44 = vpop.f32.mrb[60].mxu0 }
 0x3c8   : > { %v10184_v45 = vpop.f32.mrb[61].mxu0 }
 0x3c9   : > { %v10186_v21 = vpop.f32.mrb[62].mxu0 }
 0x3ca   : > { %v10188_v42 = vpop.f32.mrb[63].mxu0 }
 0x3d9   : > { %v7686_v31 = vpop.f32.mrb[0].mxu1 }
 0x3da   : > { %v7716_v6 = vadd.f32 %v7686_v31, %v7446_v0  ;;  %v5967_v52 = vpop.f32.mrb[1].mxu1 }
 0x3db   : > { %v7717_v35 = vadd.f32 %v5967_v52, %v3076_v22  ;;  %v7687_v33 = vpop.f32.mrb[2].mxu1 }
 0x3dc   : > { %v6135_v43 = vadd.f32 %v7716_v6, %v10193_v11  ;;  %v7718_v12 = vadd.f32 %v7687_v33, %v7447_v41  ;;  %v5970_v56 = vpop.f32.mrb[3].mxu1 }
 0x3dd   : > { %v6133_v27 = vadd.f32 %v7717_v35, %v10193_v11  ;;  %v7719_v34 = vadd.f32 %v5970_v56, %v3079_v51 }
 0x3de   : > { %v6136_v1 = vadd.f32 %v7718_v12, %v10193_v11  ;;  %v6167_v15 = vmax.f32 %v6135_v43, 0.0 }
 0x3df   : > { %v6134_v8 = vadd.f32 %v7719_v34, %v10193_v11  ;;  %v6165_v4 = vmax.f32 %v6133_v27, 0.0 }
 0x3e0   : > { %v6168_v14 = vmax.f32 %v6136_v1, 0.0 }
 0x3e1   : > { %v6166_v20 = vmax.f32 %v6134_v8, 0.0  ;;  %v7690_v62 = vpop.f32.mrb[4].mxu1 }
 0x3e2   : > { %v6909_v32 = vpack.c.bf16 %v6168_v14, %v6167_v15  ;;  %v7720_v17 = vadd.f32 %v7690_v62, %v7450_v3  ;;  %v5983_v37 = vpop.f32.mrb[5].mxu1 }
 0x3e3   : > { %v6904_v36 = vpack.c.bf16 %v6166_v20, %v6165_v4  ;;  %v7721_v9 = vadd.f32 %v5983_v37, %v3092_v46  ;;  %v7691_v38 = vpop.f32.mrb[6].mxu1 }
 0x3e4   : > { %6981 = vst [vmem:[%s10201_s13 + $0x8] sm:$0xff] %v6909_v32   ;;  %v6139_v28 = vadd.f32 %v7720_v17, %v10193_v11  ;;  %v7722_v58 = vadd.f32 %v7691_v38, %v7451_v10  ;;  %v5986_v39 = vpop.f32.mrb[7].mxu1 }
 0x3e5   : > { %6905 = vst [vmem:[%s10201_s13] sm:$0xff] %v6904_v36   ;;  %v6137_v30 = vadd.f32 %v7721_v9, %v10193_v11  ;;  %v7723_v48 = vadd.f32 %v5986_v39, %v3095_v25 }
 0x3e6   : > { %v6140_v2 = vadd.f32 %v7722_v58, %v10193_v11  ;;  %v6171_v55 = vmax.f32 %v6139_v28, 0.0 }
 0x3e7   : > { %v6138_v61 = vadd.f32 %v7723_v48, %v10193_v11  ;;  %v6169_v22 = vmax.f32 %v6137_v30, 0.0 }
 0x3e8   : > { %v6172_v0 = vmax.f32 %v6140_v2, 0.0 }
 0x3e9   : > { %v6170_v41 = vmax.f32 %v6138_v61, 0.0  ;;  %v7694_v51 = vpop.f32.mrb[8].mxu1 }
 0x3ea   : > { %v6919_v3 = vpack.c.bf16 %v6172_v0, %v6171_v55  ;;  %v7724_v46 = vadd.f32 %v7694_v51, %v10142_v53  ;;  %v5999_v10 = vpop.f32.mrb[9].mxu1 }
 0x3eb   : > { %v6914_v31 = vpack.c.bf16 %v6170_v41, %v6169_v22  ;;  %v7725_v6 = vadd.f32 %v5999_v10, %v10144_v63  ;;  %v7695_v52 = vpop.f32.mrb[10].mxu1 }
 0x3ec   : > { %6983 = vst [vmem:[%s10201_s13 + $0x18] sm:$0xff] %v6919_v3   ;;  %v6143_v25 = vadd.f32 %v7724_v46, %v10193_v11  ;;  %v7726_v35 = vadd.f32 %v7695_v52, %v10146_v40  ;;  %v6002_v33 = vpop.f32.mrb[11].mxu1 }
 0x3ed   : > { %6982 = vst [vmem:[%s10201_s13 + $0x10] sm:$0xff] %v6914_v31   ;;  %v6141_v43 = vadd.f32 %v7725_v6, %v10193_v11  ;;  %v7727_v12 = vadd.f32 %v6002_v33, %v10148_v50 }
 0x3ee   : > { %v6144_v56 = vadd.f32 %v7726_v35, %v10193_v11  ;;  %v6175_v27 = vmax.f32 %v6143_v25, 0.0 }
 0x3ef   : > { %v6142_v53 = vadd.f32 %v7727_v12, %v10193_v11  ;;  %v6173_v34 = vmax.f32 %v6141_v43, 0.0 }
 0x3f0   : > { %v6176_v63 = vmax.f32 %v6144_v56, 0.0 }
 0x3f1   : > { %v6174_v1 = vmax.f32 %v6142_v53, 0.0  ;;  %v7698_v8 = vpop.f32.mrb[12].mxu1 }
 0x3f2   : > { %v6929_v15 = vpack.c.bf16 %v6176_v63, %v6175_v27  ;;  %v7728_v40 = vadd.f32 %v7698_v8, %v10150_v13  ;;  %v6015_v14 = vpop.f32.mrb[13].mxu1 }
 0x3f3   : > { %v6924_v4 = vpack.c.bf16 %v6174_v1, %v6173_v34  ;;  %v7729_v20 = vadd.f32 %v6015_v14, %v10152_v54  ;;  %v7699_v62 = vpop.f32.mrb[14].mxu1 }
 0x3f4   : > { %6985 = vst [vmem:[%s10201_s13 + $0x28] sm:$0xff] %v6929_v15   ;;  %v6147_v50 = vadd.f32 %v7728_v40, %v10193_v11  ;;  %v7730_v32 = vadd.f32 %v7699_v62, %v10154_v24  ;;  %v6018_v17 = vpop.f32.mrb[15].mxu1 }
 0x3f5   : > { %6984 = vst [vmem:[%s10201_s13 + $0x20] sm:$0xff] %v6924_v4   ;;  %v6145_v37 = vadd.f32 %v7729_v20, %v10193_v11  ;;  %v7731_v36 = vadd.f32 %v6018_v17, %v10156_v57 }
 0x3f6   : > { %v6148_v9 = vadd.f32 %v7730_v32, %v10193_v11  ;;  %v6179_v38 = vmax.f32 %v6147_v50, 0.0 }
 0x3f7   : > { %v6146_v13 = vadd.f32 %v7731_v36, %v10193_v11  ;;  %v6177_v28 = vmax.f32 %v6145_v37, 0.0 }
 0x3f8   : > { %v6180_v54 = vmax.f32 %v6148_v9, 0.0 }
 0x3f9   : > { %v6178_v58 = vmax.f32 %v6146_v13, 0.0  ;;  %v7702_v39 = vpop.f32.mrb[16].mxu1 }
 0x3fa   : > { %v6939_v30 = vpack.c.bf16 %v6180_v54, %v6179_v38  ;;  %v7732_v24 = vadd.f32 %v7702_v39, %v10158_v18  ;;  %v6031_v48 = vpop.f32.mrb[17].mxu1 }
 0x3fb   : > { %v6934_v2 = vpack.c.bf16 %v6178_v58, %v6177_v28  ;;  %v7733_v61 = vadd.f32 %v6031_v48, %v10160_v29  ;;  %v7703_v55 = vpop.f32.mrb[18].mxu1 }
 0x3fc   : > { %6987 = vst [vmem:[%s10201_s13 + $0x38] sm:$0xff] %v6939_v30   ;;  %v6151_v57 = vadd.f32 %v7732_v24, %v10193_v11  ;;  %v7734_v0 = vadd.f32 %v7703_v55, %v10162_v16  ;;  %v6034_v22 = vpop.f32.mrb[19].mxu1 }
 0x3fd   : > { %6986 = vst [vmem:[%s10201_s13 + $0x30] sm:$0xff] %v6934_v2   ;;  %v6149_v41 = vadd.f32 %v7733_v61, %v10193_v11  ;;  %v7735_v51 = vadd.f32 %v6034_v22, %v10164_v49 }
 0x3fe   : > { %v6152_v3 = vadd.f32 %v7734_v0, %v10193_v11  ;;  %v6183_v46 = vmax.f32 %v6151_v57, 0.0 }
 0x3ff   : > { %v6150_v18 = vadd.f32 %v7735_v51, %v10193_v11  ;;  %v6181_v10 = vmax.f32 %v6149_v41, 0.0 }
 0x400   : > { %v6184_v29 = vmax.f32 %v6152_v3, 0.0 }
 0x401   : > { %v6182_v31 = vmax.f32 %v6150_v18, 0.0  ;;  %v7706_v6 = vpop.f32.mrb[20].mxu1 }
 0x402   : > { %v6949_v52 = vpack.c.bf16 %v6184_v29, %v6183_v46  ;;  %v7736_v16 = vadd.f32 %v7706_v6, %v10166_v60  ;;  %v6047_v25 = vpop.f32.mrb[21].mxu1 }
 0x403   : > { %v6944_v35 = vpack.c.bf16 %v6182_v31, %v6181_v10  ;;  %v7737_v33 = vadd.f32 %v6047_v25, %v10168_v7  ;;  %v7707_v43 = vpop.f32.mrb[22].mxu1 }
 0x404   : > { %6989 = vst [vmem:[%s10201_s13 + $0x48] sm:$0xff] %v6949_v52   ;;  %v6155_v49 = vadd.f32 %v7736_v16, %v10193_v11  ;;  %v7738_v12 = vadd.f32 %v7707_v43, %v10170_v23  ;;  %v6050_v56 = vpop.f32.mrb[23].mxu1 }
 0x405   : > { %6988 = vst [vmem:[%s10201_s13 + $0x40] sm:$0xff] %v6944_v35   ;;  %v6153_v53 = vadd.f32 %v7737_v33, %v10193_v11  ;;  %v7739_v27 = vadd.f32 %v6050_v56, %v10172_v47 }
 0x406   : > { %v6156_v63 = vadd.f32 %v7738_v12, %v10193_v11  ;;  %v6187_v34 = vmax.f32 %v6155_v49, 0.0 }
 0x407   : > { %v6154_v60 = vadd.f32 %v7739_v27, %v10193_v11  ;;  %v6185_v1 = vmax.f32 %v6153_v53, 0.0 }
 0x408   : > { %v6188_v7 = vmax.f32 %v6156_v63, 0.0 }
 0x409   : > { %v6186_v8 = vmax.f32 %v6154_v60, 0.0  ;;  %v7710_v15 = vpop.f32.mrb[24].mxu1 }
 0x40a   : > { %v6959_v40 = vpack.c.bf16 %v6188_v7, %v6187_v34  ;;  %v7740_v23 = vadd.f32 %v7710_v15, %v10174_v5  ;;  %v6063_v14 = vpop.f32.mrb[25].mxu1 }
 0x40b   : > { %v6954_v4 = vpack.c.bf16 %v6186_v8, %v6185_v1  ;;  %v7741_v20 = vadd.f32 %v6063_v14, %v10176_v59  ;;  %v7711_v62 = vpop.f32.mrb[26].mxu1 }
 0x40c   : > { %6991 = vst [vmem:[%s10201_s13 + $0x58] sm:$0xff] %v6959_v40   ;;  %v6159_v47 = vadd.f32 %v7740_v23, %v10193_v11  ;;  %v7742_v50 = vadd.f32 %v7711_v62, %v10178_v26  ;;  %v6066_v32 = vpop.f32.mrb[27].mxu1 }
 0x40d   : > { %6990 = vst [vmem:[%s10201_s13 + $0x50] sm:$0xff] %v6954_v4   ;;  %v6157_v17 = vadd.f32 %v7741_v20, %v10193_v11  ;;  %v7743_v37 = vadd.f32 %v6066_v32, %v10180_v19 }
 0x40e   : > { %v6160_v36 = vadd.f32 %v7742_v50, %v10193_v11  ;;  %v6191_v9 = vmax.f32 %v6159_v47, 0.0 }
 0x40f   : > { %v6158_v5 = vadd.f32 %v7743_v37, %v10193_v11  ;;  %v6189_v13 = vmax.f32 %v6157_v17, 0.0 }
 0x410   : > { %v6192_v59 = vmax.f32 %v6160_v36, 0.0 }
 0x411   : > { %v6190_v38 = vmax.f32 %v6158_v5, 0.0  ;;  %v7714_v54 = vpop.f32.mrb[28].mxu1 }
 0x412   : > { %v6969_v28 = vpack.c.bf16 %v6192_v59, %v6191_v9  ;;  %v7744_v26 = vadd.f32 %v7714_v54, %v10182_v44  ;;  %v6079_v58 = vpop.f32.mrb[29].mxu1 }
 0x413   : > { %v6964_v39 = vpack.c.bf16 %v6190_v38, %v6189_v13  ;;  %v7745_v30 = vadd.f32 %v6079_v58, %v10184_v45  ;;  %v7715_v19 = vpop.f32.mrb[30].mxu1 }
 0x414   : > { %6993 = vst [vmem:[%s10201_s13 + $0x68] sm:$0xff] %v6969_v28   ;;  %v6163_v24 = vadd.f32 %v7744_v26, %v10193_v11  ;;  %v7746_v48 = vadd.f32 %v7715_v19, %v10186_v21  ;;  %v6082_v2 = vpop.f32.mrb[31].mxu1 }
 0x415   : > { %6992 = vst [vmem:[%s10201_s13 + $0x60] sm:$0xff] %v6964_v39   ;;  %v6161_v61 = vadd.f32 %v7745_v30, %v10193_v11  ;;  %v7747_v55 = vadd.f32 %v6082_v2, %v10188_v42 }
 0x416   : > { %v6164_v44 = vadd.f32 %v7746_v48, %v10193_v11  ;;  %v6195_v45 = vmax.f32 %v6163_v24, 0.0 }
 0x417   : > { %v6162_v57 = vadd.f32 %v7747_v55, %v10193_v11  ;;  %v6193_v22 = vmax.f32 %v6161_v61, 0.0 }
 0x418   : > { %v6196_v0 = vmax.f32 %v6164_v44, 0.0 }
 0x419   : > { %v6194_v21 = vmax.f32 %v6162_v57, 0.0 }
 0x41a   : > { %v6979_v41 = vpack.c.bf16 %v6196_v0, %v6195_v45 }
 0x41b   : > { %v6974_v42 = vpack.c.bf16 %v6194_v21, %v6193_v22 }
 0x41c   : > { %6995 = vst [vmem:[%s10201_s13 + $0x78] sm:$0xff] %v6979_v41  }
 0x41d   : > { %6994 = vst [vmem:[%s10201_s13 + $0x70] sm:$0xff] %v6974_v42  }
 0x41e   : > { %8346 = shalt.err (!%p8343_p1)
}
 0x41f   : > { %s8347_s26 = scalar_lea.hbm %s10274_s7, 2048  ;;  %s8351_s10 = scalar_lea.hbm %s10327_s5, 4096 }
 0x420   : > { %p8348_p13 = scmp.ne.s32.totalorder %s10274_s7, %s8347_s26  ;;  %p8352_p4 = scmp.lt.u32.totalorder %s10274_s7, %s10327_s5 }
 0x421   : > { %p8353_p5 = scmp.lt.u32.totalorder %s8351_s10, %s8347_s26  ;;  %p8355_p11 = scmp.lt.u32.totalorder %s8347_s26, %s10274_s7 }
 0x422   : > { %p8349_p6 = pnand %p8348_p13, %p10448_p0 }
 0x423   : > { %p8354_p8 = por %p8353_p5, %p8352_p4 }
 0x424   : > { %p8350_p10 = pneg %p8349_p6 }
 0x425   : > { %p8356_p2 = por %p8355_p11, %p8354_p8 }
 0x427   : > { %p8357_p3 = pnand %p8356_p2, %p8350_p10 }
 0x429   : > { %8360 = shalt.err (!%p8357_p3)
}
 0x42a   : > { %s8412_s9 = smov 64   ;;  %s8413_s11 = smov 4  }
 0x42b   : > { %7982 = dma.vmem_to_hbm [thread:$0]  (%p10448_p0), %s10276_s30, 2048, %s10274_s7, %s6358_s22, %s8412_s9, %s8412_s9, %s8413_s11  }
 0x42c PF: > { %s6386_s17 = sand.u32 1, %s8391_s18   ;;  %p10449_p7 = scmp.ne.s32.totalorder %s10357_s25, 0 }
 0x42d   : > { %p10450_p9 = scmp.ge.s32.totalorder %s8403_s21, 2  ;;  %s6387_s6 = scalar_lea.sflag [#allocation5], %s6386_s17 }
 0x42f   : > { %p7996_p12 = pnand %p10450_p9, %p10449_p7 }
 0x431   : > { %8386 = dma.done.wait (!%p7996_p12), %s6387_s6, 2048  }
 0x432   : > { %8388 = vsyncadd (!%p7996_p12), %s6387_s6, 4294965248  ;;  %p19_p1 = scmp.ge.s32.totalorder %s8560_s29, 4   ;;  %s10451_s18 = smov %s8395_s19 }
 0x433   : > { %s10452_s19 = smov %s8399_s20  ;;  %s10453_s20 = smov %s8576_s27 }
 0x434   : > { %s10454_s21 = smov %s8560_s29  ;;  %21 = sbr.rel (!%p19_p1) target bundleno = 6 (0x6), region = 104 }
 0x43b   :  { %6392 = vsyncpa [#allocation4], 1 }
 0x43c   :  { %6394 = vsyncpa [#allocation4 + $0x1], 1 }
 0x43d   :  { %6395 = vsyncpa [#allocation7], 1 }
 0x43e   :  { %6396 = vsyncpa [#allocation5], 1 }
 0x43f   :  { %6398 = vsyncpa [#allocation5 + $0x1], 1 }

</bundles_post_ra>
